<compile_context>
chip_gen: v6e
topology: v6e:2x2x1
jax: 0.10.0
libtpu: 0.0.40
codegen_flags: <defaults>
</compile_context>

<pallas_src>
import functools

import jax
import jax.numpy as jnp
from jax import lax
from jax.experimental import pallas as pl
from jax.experimental.pallas import tpu as pltpu

INPUT_SIZE = 63
HIDDEN_SIZE = 128
FPAD = 128          # lane-dense padded output feature dim (63 -> 128)


def _lstm_fc_kernel(x_ref,            # (tc*bb, 63)  bf16  current (batch-block, time-chunk) inputs
                    wih0_ref,         # (63, 4H)     bf16  layer-0 input weights (transposed)
                    whh0_ref,         # (H, 4H)      bf16  layer-0 recurrent weights (transposed)
                    b0_ref,           # (1, 4H)      f32   layer-0 bias_ih + bias_hh
                    wih1_ref,         # (H, 4H)      bf16  layer-1 input weights (transposed)
                    whh1_ref,         # (H, 4H)      bf16  layer-1 recurrent weights (transposed)
                    b1_ref,           # (1, 4H)      f32   layer-1 bias_ih + bias_hh
                    wfc_ref,          # (H, 128)     bf16  fc weight, zero-padded 63 -> 128 cols
                    bfc_ref,          # (1, 128)     f32   fc bias, zero-padded
                    out_ref,          # (tc*bb, 128) f32   lane-dense output slab for this chunk
                    h0, c0, h1, c1,   # (bb, H)      f32   persistent state scratch
                    pre0,             # (tc*bb, 4H)  f32   hoisted layer-0 input projection
                    h1_all,           # (tc*bb, H)   f32   per-step h1 for the hoisted fc matmul
                    *, bb, tc, unroll):
    H = HIDDEN_SIZE
    chunk = pl.program_id(1)

    @pl.when(chunk == 0)
    def _init():
        h0[...] = jnp.zeros_like(h0)
        c0[...] = jnp.zeros_like(c0)
        h1[...] = jnp.zeros_like(h1)
        c1[...] = jnp.zeros_like(c1)

    # Hoisted layer-0 input projection for the whole chunk: one large bf16 MXU matmul
    # instead of `tc` tiny matmuls on the serial chain.
    pre0[...] = (jnp.dot(x_ref[...], wih0_ref[...],
                         preferred_element_type=jnp.float32) + b0_ref[...])

    # Load weights once, outside the time loop.
    whh0 = whh0_ref[...]
    wih1 = wih1_ref[...]
    whh1 = whh1_ref[...]
    b1 = b1_ref[...]

    def sig(z):
        # One EUP tanh per gate instead of exp + reciprocal.
        return 0.5 * (jnp.tanh(0.5 * z) + 1.0)

    def gates(pre, c_prev):
        # PyTorch LSTM gate order: i, f, g, o  (all math in f32)
        i = sig(pre[:, 0 * H:1 * H])
        f = sig(pre[:, 1 * H:2 * H])
        g = jnp.tanh(pre[:, 2 * H:3 * H])
        o = sig(pre[:, 3 * H:4 * H])
        c_new = f * c_prev + i * g
        h_new = o * jnp.tanh(c_new)
        return h_new, c_new

    def step(t, carry):
        row = pl.multiple_of(t * bb, 8)
        # Layer-1 recurrent half first: depends only on previous-step state, so it can
        # overlap layer-0's matmul and transcendentals.
        rec1 = jnp.dot(h1[...].astype(jnp.bfloat16), whh1,
                       preferred_element_type=jnp.float32)
        # Layer 0: only the recurrent matmul remains on the serial dependency chain.
        pre_l0 = pre0[pl.ds(row, bb), :] + jnp.dot(
            h0[...].astype(jnp.bfloat16), whh0, preferred_element_type=jnp.float32)
        h0_new, c0_new = gates(pre_l0, c0[...])
        h0[...] = h0_new
        c0[...] = c0_new
        # Layer 1: input half once h0_new exists.
        pre_l1 = rec1 + jnp.dot(h0_new.astype(jnp.bfloat16), wih1,
                                preferred_element_type=jnp.float32) + b1
        h1_new, c1_new = gates(pre_l1, c1[...])
        h1[...] = h1_new
        c1[...] = c1_new
        # Stash h1_t; the fc matmul is hoisted out of the recurrence.
        h1_all[pl.ds(row, bb), :] = h1_new
        return carry

    lax.fori_loop(0, tc, step, 0, unroll=unroll)

    # Hoisted final Linear: one MXU-efficient matmul + a single lane-dense 128-wide store.
    out_ref[...] = (jnp.dot(h1_all[...].astype(jnp.bfloat16), wfc_ref[...],
                            preferred_element_type=jnp.float32) + bfc_ref[...])


def trajectory_model_forward(x, params, *, time_chunk=None, batch_block=None):
    """x: (B, T, 63) float32 -> (B, T, 63) float32  (2-layer LSTM + Linear)."""
    B, T, F = x.shape
    assert F == INPUT_SIZE
    wih0, whh0, b0, wih1, whh1, b1, wfc, bfc = params

    H = HIDDEN_SIZE
    H4 = 4 * H

    # Pad batch to a multiple of 8 so sublanes / MXU rows are actually used.
    b_pad = max(8, ((B + 7) // 8) * 8)

    # batch_block: rows per "parallel" grid block.  Default is the whole padded batch
    # (single block — best on 1-TC v5e/v6e).  On v7x, pass batch_block=b_pad//2 when
    # b_pad >= 16 so the independent batch recurrences are split across both TensorCores.
    if batch_block is None:
        batch_block = b_pad
    bb = batch_block
    assert bb % 8 == 0 and b_pad % bb == 0
    n_bb = b_pad // bb

    if time_chunk is None:
        # VMEM budget (per chunk): pre0 tc*bb*512*4B + h1_all tc*bb*128*4B
        # + 2x-buffered out tc*bb*128*4B + 2x-buffered bf16 x ~tc*bb*128*2B
        # ≈ tc*bb*4 KiB.  tc*bb = 2048 ≈ 8 MiB + ~1 MiB weights: comfortably inside
        # v7x's 64 MiB physical VMEM and the 48 MiB scoped limit set below.
        time_chunk = max(1, min(T, 2048 // bb))
    tc = time_chunk
    n_chunks = (T + tc - 1) // tc
    t_pad = n_chunks * tc

    # Zero-pad batch/time; lay out as (n_bb, t_pad*bb, 63) so each (batch-block,
    # time-chunk) grid cell is one contiguous time-major row slab.  Cast to bf16
    # (halves the x DMA).
    x_p = jnp.zeros((t_pad, b_pad, INPUT_SIZE), jnp.float32)
    x_p = x_p.at[:T, :B, :].set(jnp.transpose(x.astype(jnp.float32), (1, 0, 2)))
    x_p = x_p.reshape(t_pad, n_bb, bb, INPUT_SIZE).transpose(1, 0, 2, 3)
    x3d = x_p.reshape(n_bb, t_pad * bb, INPUT_SIZE).astype(jnp.bfloat16)

    # One-time weight prep (would be cached in a real deployment): bf16 matmul operands,
    # f32 biases, fc weight zero-padded 63 -> 128 output lanes.
    wih0_b = wih0.astype(jnp.bfloat16)
    whh0_b = whh0.astype(jnp.bfloat16)
    wih1_b = wih1.astype(jnp.bfloat16)
    whh1_b = whh1.astype(jnp.bfloat16)
    wfc_p = (jnp.zeros((H, FPAD), jnp.float32).at[:, :INPUT_SIZE].set(wfc)
             ).astype(jnp.bfloat16)
    bfc_p = jnp.zeros((1, FPAD), jnp.float32).at[:, :INPUT_SIZE].set(bfc)

    kernel = functools.partial(_lstm_fc_kernel, bb=bb, tc=tc, unroll=8)

    full = lambda shape: pl.BlockSpec(shape, lambda bi, ci: (0, 0))

    grid_spec = pltpu.PrefetchScalarGridSpec(
        num_scalar_prefetch=0,
        grid=(n_bb, n_chunks),
        in_specs=[
            pl.BlockSpec((pl.Squeezed(), tc * bb, INPUT_SIZE),
                         lambda bi, ci: (bi, ci, 0)),                  # x chunk
            full((INPUT_SIZE, H4)),                                    # wih0^T (bf16)
            full((H, H4)),                                             # whh0^T (bf16)
            full((1, H4)),                                             # b0
            full((H, H4)),                                             # wih1^T (bf16)
            full((H, H4)),                                             # whh1^T (bf16)
            full((1, H4)),                                             # b1
            full((H, FPAD)),                                           # wfc^T (bf16, padded)
            full((1, FPAD)),                                           # bfc (padded)
        ],
        out_specs=pl.BlockSpec((pl.Squeezed(), tc * bb, FPAD),
                               lambda bi, ci: (bi, ci, 0)),
        scratch_shapes=[
            pltpu.VMEM((bb, H), jnp.float32),           # h0
            pltpu.VMEM((bb, H), jnp.float32),           # c0
            pltpu.VMEM((bb, H), jnp.float32),           # h1
            pltpu.VMEM((bb, H), jnp.float32),           # c1
            pltpu.VMEM((tc * bb, H4), jnp.float32),     # hoisted layer-0 projection
            pltpu.VMEM((tc * bb, H), jnp.float32),      # per-step h1 for hoisted fc
        ],
    )

    out3d = pl.pallas_call(
        kernel,
        out_shape=jax.ShapeDtypeStruct((n_bb, t_pad * bb, FPAD), jnp.float32),
        grid_spec=grid_spec,
        compiler_params=pltpu.CompilerParams(
            # batch blocks are independent ("parallel"); time chunks carry h/c ("arbitrary")
            dimension_semantics=("parallel", "arbitrary"),
            vmem_limit_bytes=48 * 1024 * 1024),
    )(x3d, wih0_b, whh0_b, b0, wih1_b, whh1_b, b1, wfc_p, bfc_p)

    out = out3d.reshape(n_bb, t_pad, bb, FPAD).transpose(1, 0, 2, 3)
    out = out.reshape(t_pad, b_pad, FPAD)[:T, :B, :INPUT_SIZE]
    return jnp.transpose(out, (1, 0, 2))                               # (B, T, 63)


def init_params(key):
    """Deterministic parameter init mirroring nn.LSTM / nn.Linear shapes.

    PyTorch shapes (gate order i, f, g, o):
      weight_ih_l0 (512, 63), weight_hh_l0 (512, 128), bias_ih_l0/bias_hh_l0 (512,)
      weight_ih_l1 (512,128), weight_hh_l1 (512, 128), bias_ih_l1/bias_hh_l1 (512,)
      fc.weight (63, 128), fc.bias (63,)
    Stored transposed (in, 4H) / (H, out); the two LSTM biases are folded together.
    """
    H4 = 4 * HIDDEN_SIZE
    k = 1.0 / jnp.sqrt(jnp.float32(HIDDEN_SIZE))
    keys = jax.random.split(key, 10)
    u = lambda kk, shape: jax.random.uniform(kk, shape, jnp.float32, -k, k)

    wih0 = u(keys[0], (INPUT_SIZE, H4))
    whh0 = u(keys[1], (HIDDEN_SIZE, H4))
    b0 = u(keys[2], (1, H4)) + u(keys[3], (1, H4))        # bias_ih + bias_hh
    wih1 = u(keys[4], (HIDDEN_SIZE, H4))
    whh1 = u(keys[5], (HIDDEN_SIZE, H4))
    b1 = u(keys[6], (1, H4)) + u(keys[7], (1, H4))
    wfc = u(keys[8], (HIDDEN_SIZE, INPUT_SIZE))
    bfc = u(keys[9], (1, INPUT_SIZE))
    return (wih0, whh0, b0, wih1, whh1, b1, wfc, bfc)


def _reference_forward(x, params):
    """Pure-JAX f32 reference of the same LSTM+Linear (for sanity checking)."""
    wih0, whh0, b0, wih1, whh1, b1, wfc, bfc = params
    B, T, _ = x.shape
    H = HIDDEN_SIZE

    def cell(x_t, h, c, wih, whh, b):
        pre = x_t @ wih + h @ whh + b
        i = jax.nn.sigmoid(pre[:, 0 * H:1 * H])
        f = jax.nn.sigmoid(pre[:, 1 * H:2 * H])
        g = jnp.tanh(pre[:, 2 * H:3 * H])
        o = jax.nn.sigmoid(pre[:, 3 * H:4 * H])
        c_new = f * c + i * g
        h_new = o * jnp.tanh(c_new)
        return h_new, c_new

    def step(carry, x_t):
        h0, c0, h1, c1 = carry
        h0, c0 = cell(x_t, h0, c0, wih0, whh0, b0)
        h1, c1 = cell(h0, h1, c1, wih1, whh1, b1)
        y = h1 @ wfc + bfc
        return (h0, c0, h1, c1), y

    zeros = jnp.zeros((B, H), jnp.float32)
    _, ys = jax.lax.scan(step, (zeros, zeros, zeros, zeros),
                         jnp.transpose(x, (1, 0, 2)))
    return jnp.transpose(ys, (1, 0, 2))


if __name__ == "__main__":
    key = jax.random.PRNGKey(0)
    k_x, k_p = jax.random.split(key)

    B, T = 2, 8
    x = jax.random.normal(k_x, (B, T, INPUT_SIZE), jnp.float32)
    params = init_params(k_p)

    out = trajectory_model_forward(x, params)
    out = jax.block_until_ready(out)

    ref = _reference_forward(x, params)
    assert out.shape == (B, T, INPUT_SIZE)
    # bf16 matmul operands (f32 accumulation / gate math) -> relaxed tolerance vs f32 ref.
    assert jnp.allclose(out, ref, atol=2e-2, rtol=2e-2), "mismatch vs JAX reference"

    print("KERNEL_OK")
</pallas_src>

<mosaic_0001>
module attributes {stable_mosaic.version = 11 : i64} {
  func.func @_lstm_fc_kernel(%arg0: i32, %arg1: i32, %arg2: memref<1x64x63xbf16, #tpu.memory_space<vmem>>, %arg3: memref<63x512xbf16, #tpu.memory_space<vmem>>, %arg4: memref<128x512xbf16, #tpu.memory_space<vmem>>, %arg5: memref<1x512xf32, #tpu.memory_space<vmem>>, %arg6: memref<128x512xbf16, #tpu.memory_space<vmem>>, %arg7: memref<128x512xbf16, #tpu.memory_space<vmem>>, %arg8: memref<1x512xf32, #tpu.memory_space<vmem>>, %arg9: memref<128x128xbf16, #tpu.memory_space<vmem>>, %arg10: memref<1x128xf32, #tpu.memory_space<vmem>>, %arg11: memref<1x64x128xf32, #tpu.memory_space<vmem>>, %arg12: memref<8x128xf32, #tpu.memory_space<vmem>>, %arg13: memref<8x128xf32, #tpu.memory_space<vmem>>, %arg14: memref<8x128xf32, #tpu.memory_space<vmem>>, %arg15: memref<8x128xf32, #tpu.memory_space<vmem>>, %arg16: memref<64x512xf32, #tpu.memory_space<vmem>>, %arg17: memref<64x128xf32, #tpu.memory_space<vmem>>) attributes {dimension_semantics = [#tpu.dimension_semantics<parallel>, #tpu.dimension_semantics<arbitrary>], iteration_bounds = array<i64: 1, 1>, scalar_prefetch = 0 : i64, scratch_operands = 6 : i64, tpu.core_type = #tpu.core_type<tc>, window_params = [{transform_indices = @transform_0, window_bounds = array<i64: 1, 64, 63>}, {pipeline_mode = #tpu.pipeline_mode<synchronous>, transform_indices = @transform_1, window_bounds = array<i64: 63, 512>}, {pipeline_mode = #tpu.pipeline_mode<synchronous>, transform_indices = @transform_2, window_bounds = array<i64: 128, 512>}, {pipeline_mode = #tpu.pipeline_mode<synchronous>, transform_indices = @transform_3, window_bounds = array<i64: 1, 512>}, {pipeline_mode = #tpu.pipeline_mode<synchronous>, transform_indices = @transform_4, window_bounds = array<i64: 128, 512>}, {pipeline_mode = #tpu.pipeline_mode<synchronous>, transform_indices = @transform_5, window_bounds = array<i64: 128, 512>}, {pipeline_mode = #tpu.pipeline_mode<synchronous>, transform_indices = @transform_6, window_bounds = array<i64: 1, 512>}, {pipeline_mode = #tpu.pipeline_mode<synchronous>, transform_indices = @transform_7, window_bounds = array<i64: 128, 128>}, {pipeline_mode = #tpu.pipeline_mode<synchronous>, transform_indices = @transform_8, window_bounds = array<i64: 1, 128>}, {transform_indices = @transform_9, window_bounds = array<i64: 1, 64, 128>}]} {
    %c0_i32 = arith.constant 0 : i32
    %0 = arith.cmpi eq, %arg1, %c0_i32 : i32
    %1 = arith.extui %0 : i1 to i32
    %c0_i32_0 = arith.constant 0 : i32
    %2 = arith.cmpi ne, %1, %c0_i32_0 : i32
    scf.if %2 {
      %cst_348 = arith.constant 0.000000e+00 : f32
      %713 = vector.broadcast %cst_348 : f32 to vector<8x128xf32>
      %c0_349 = arith.constant 0 : index
      %c0_350 = arith.constant 0 : index
      %714 = vector.load %arg12[%c0_349, %c0_350] : memref<8x128xf32, #tpu.memory_space<vmem>>, vector<8x128xf32>
      tpu.vector_store %arg12[%c0_349, %c0_350], %713 {strides = array<i32>} : memref<8x128xf32, #tpu.memory_space<vmem>>, vector<8x128xf32>,
      %cst_351 = arith.constant 0.000000e+00 : f32
      %715 = vector.broadcast %cst_351 : f32 to vector<8x128xf32>
      %c0_352 = arith.constant 0 : index
      %c0_353 = arith.constant 0 : index
      %716 = vector.load %arg13[%c0_352, %c0_353] : memref<8x128xf32, #tpu.memory_space<vmem>>, vector<8x128xf32>
      tpu.vector_store %arg13[%c0_352, %c0_353], %715 {strides = array<i32>} : memref<8x128xf32, #tpu.memory_space<vmem>>, vector<8x128xf32>,
      %cst_354 = arith.constant 0.000000e+00 : f32
      %717 = vector.broadcast %cst_354 : f32 to vector<8x128xf32>
      %c0_355 = arith.constant 0 : index
      %c0_356 = arith.constant 0 : index
      %718 = vector.load %arg14[%c0_355, %c0_356] : memref<8x128xf32, #tpu.memory_space<vmem>>, vector<8x128xf32>
      tpu.vector_store %arg14[%c0_355, %c0_356], %717 {strides = array<i32>} : memref<8x128xf32, #tpu.memory_space<vmem>>, vector<8x128xf32>,
      %cst_357 = arith.constant 0.000000e+00 : f32
      %719 = vector.broadcast %cst_357 : f32 to vector<8x128xf32>
      %c0_358 = arith.constant 0 : index
      %c0_359 = arith.constant 0 : index
      %720 = vector.load %arg15[%c0_358, %c0_359] : memref<8x128xf32, #tpu.memory_space<vmem>>, vector<8x128xf32>
      tpu.vector_store %arg15[%c0_358, %c0_359], %719 {strides = array<i32>} : memref<8x128xf32, #tpu.memory_space<vmem>>, vector<8x128xf32>,
    } else {
    }
    %c0 = arith.constant 0 : index
    %c0_1 = arith.constant 0 : index
    %c0_2 = arith.constant 0 : index
    %3 = vector.load %arg2[%c0, %c0_1, %c0_2] : memref<1x64x63xbf16, #tpu.memory_space<vmem>>, vector<1x64x63xbf16>
    %4 = vector.shape_cast %3 : vector<1x64x63xbf16> to vector<64x63xbf16>
    %c0_3 = arith.constant 0 : index
    %c0_4 = arith.constant 0 : index
    %5 = vector.load %arg3[%c0_3, %c0_4] : memref<63x512xbf16, #tpu.memory_space<vmem>>, vector<63x512xbf16>
    %cst = arith.constant dense<0.000000e+00> : vector<64x512xf32>
    %6 = tpu.matmul %4, %5, %cst {dimension_numbers = #tpu.dot_dimension_numbers<[1], [0], [0], [1], [0, 0, 1, 1], [], []>} : vector<64x63xbf16>, vector<63x512xbf16>, vector<64x512xf32> -> vector<64x512xf32>
    %c0_5 = arith.constant 0 : index
    %c0_6 = arith.constant 0 : index
    %7 = vector.load %arg5[%c0_5, %c0_6] : memref<1x512xf32, #tpu.memory_space<vmem>>, vector<1x512xf32>
    %8 = vector.broadcast %7 : vector<1x512xf32> to vector<64x512xf32>
    %9 = arith.addf %6, %8 : vector<64x512xf32>
    %c0_7 = arith.constant 0 : index
    %c0_8 = arith.constant 0 : index
    %10 = vector.load %arg16[%c0_7, %c0_8] : memref<64x512xf32, #tpu.memory_space<vmem>>, vector<64x512xf32>
    tpu.vector_store %arg16[%c0_7, %c0_8], %9 {strides = array<i32>} : memref<64x512xf32, #tpu.memory_space<vmem>>, vector<64x512xf32>,
    %c0_9 = arith.constant 0 : index
    %c0_10 = arith.constant 0 : index
    %11 = vector.load %arg4[%c0_9, %c0_10] : memref<128x512xbf16, #tpu.memory_space<vmem>>, vector<128x512xbf16>
    %c0_11 = arith.constant 0 : index
    %c0_12 = arith.constant 0 : index
    %12 = vector.load %arg6[%c0_11, %c0_12] : memref<128x512xbf16, #tpu.memory_space<vmem>>, vector<128x512xbf16>
    %c0_13 = arith.constant 0 : index
    %c0_14 = arith.constant 0 : index
    %13 = vector.load %arg7[%c0_13, %c0_14] : memref<128x512xbf16, #tpu.memory_space<vmem>>, vector<128x512xbf16>
    %c0_15 = arith.constant 0 : index
    %c0_16 = arith.constant 0 : index
    %14 = vector.load %arg8[%c0_15, %c0_16] : memref<1x512xf32, #tpu.memory_space<vmem>>, vector<1x512xf32>
    %c0_i32_17 = arith.constant 0 : i32
    %c8_i32 = arith.constant 8 : i32
    %15 = arith.muli %c0_i32_17, %c8_i32 : i32
    %16 = tpu.assume_multiple %15, 8 : i32
    %c0_18 = arith.constant 0 : index
    %c0_19 = arith.constant 0 : index
    %17 = vector.load %arg14[%c0_18, %c0_19] : memref<8x128xf32, #tpu.memory_space<vmem>>, vector<8x128xf32>
    %18 = arith.truncf %17 : vector<8x128xf32> to vector<8x128xbf16>
    %cst_20 = arith.constant dense<0.000000e+00> : vector<8x512xf32>
    %19 = tpu.matmul %18, %13, %cst_20 {dimension_numbers = #tpu.dot_dimension_numbers<[1], [0], [0], [1], [0, 0, 1, 1], [], []>} : vector<8x128xbf16>, vector<128x512xbf16>, vector<8x512xf32> -> vector<8x512xf32>
    %20 = arith.index_cast %16 : i32 to index
    %c0_21 = arith.constant 0 : index
    %21 = vector.load %arg16[%20, %c0_21] : memref<64x512xf32, #tpu.memory_space<vmem>>, vector<8x512xf32>
    %c0_22 = arith.constant 0 : index
    %c0_23 = arith.constant 0 : index
    %22 = vector.load %arg12[%c0_22, %c0_23] : memref<8x128xf32, #tpu.memory_space<vmem>>, vector<8x128xf32>
    %23 = arith.truncf %22 : vector<8x128xf32> to vector<8x128xbf16>
    %cst_24 = arith.constant dense<0.000000e+00> : vector<8x512xf32>
    %24 = tpu.matmul %23, %11, %cst_24 {dimension_numbers = #tpu.dot_dimension_numbers<[1], [0], [0], [1], [0, 0, 1, 1], [], []>} : vector<8x128xbf16>, vector<128x512xbf16>, vector<8x512xf32> -> vector<8x512xf32>
    %25 = arith.addf %21, %24 : vector<8x512xf32>
    %c0_25 = arith.constant 0 : index
    %c0_26 = arith.constant 0 : index
    %26 = vector.load %arg13[%c0_25, %c0_26] : memref<8x128xf32, #tpu.memory_space<vmem>>, vector<8x128xf32>
    %27 = vector.extract_strided_slice %25 {offsets = [0, 0], sizes = [8, 128], strides = [1, 1]} : vector<8x512xf32> to vector<8x128xf32>
    %cst_27 = arith.constant 5.000000e-01 : f32
    %28 = vector.broadcast %cst_27 : f32 to vector<8x128xf32>
    %29 = arith.mulf %28, %27 : vector<8x128xf32>
    %30 = math.tanh %29 : vector<8x128xf32>
    %cst_28 = arith.constant 1.000000e+00 : f32
    %31 = vector.broadcast %cst_28 : f32 to vector<8x128xf32>
    %32 = arith.addf %30, %31 : vector<8x128xf32>
    %cst_29 = arith.constant 5.000000e-01 : f32
    %33 = vector.broadcast %cst_29 : f32 to vector<8x128xf32>
    %34 = arith.mulf %33, %32 : vector<8x128xf32>
    %35 = vector.extract_strided_slice %25 {offsets = [0, 128], sizes = [8, 128], strides = [1, 1]} : vector<8x512xf32> to vector<8x128xf32>
    %cst_30 = arith.constant 5.000000e-01 : f32
    %36 = vector.broadcast %cst_30 : f32 to vector<8x128xf32>
    %37 = arith.mulf %36, %35 : vector<8x128xf32>
    %38 = math.tanh %37 : vector<8x128xf32>
    %cst_31 = arith.constant 1.000000e+00 : f32
    %39 = vector.broadcast %cst_31 : f32 to vector<8x128xf32>
    %40 = arith.addf %38, %39 : vector<8x128xf32>
    %cst_32 = arith.constant 5.000000e-01 : f32
    %41 = vector.broadcast %cst_32 : f32 to vector<8x128xf32>
    %42 = arith.mulf %41, %40 : vector<8x128xf32>
    %43 = vector.extract_strided_slice %25 {offsets = [0, 256], sizes = [8, 128], strides = [1, 1]} : vector<8x512xf32> to vector<8x128xf32>
    %44 = math.tanh %43 : vector<8x128xf32>
    %45 = vector.extract_strided_slice %25 {offsets = [0, 384], sizes = [8, 128], strides = [1, 1]} : vector<8x512xf32> to vector<8x128xf32>
    %cst_33 = arith.constant 5.000000e-01 : f32
    %46 = vector.broadcast %cst_33 : f32 to vector<8x128xf32>
    %47 = arith.mulf %46, %45 : vector<8x128xf32>
    %48 = math.tanh %47 : vector<8x128xf32>
    %cst_34 = arith.constant 1.000000e+00 : f32
    %49 = vector.broadcast %cst_34 : f32 to vector<8x128xf32>
    %50 = arith.addf %48, %49 : vector<8x128xf32>
    %cst_35 = arith.constant 5.000000e-01 : f32
    %51 = vector.broadcast %cst_35 : f32 to vector<8x128xf32>
    %52 = arith.mulf %51, %50 : vector<8x128xf32>
    %53 = arith.mulf %42, %26 : vector<8x128xf32>
    %54 = arith.mulf %34, %44 : vector<8x128xf32>
    %55 = arith.addf %53, %54 : vector<8x128xf32>
    %56 = math.tanh %55 : vector<8x128xf32>
    %57 = arith.mulf %52, %56 : vector<8x128xf32>
    %c0_36 = arith.constant 0 : index
    %c0_37 = arith.constant 0 : index
    %58 = vector.load %arg12[%c0_36, %c0_37] : memref<8x128xf32, #tpu.memory_space<vmem>>, vector<8x128xf32>
    tpu.vector_store %arg12[%c0_36, %c0_37], %57 {strides = array<i32>} : memref<8x128xf32, #tpu.memory_space<vmem>>, vector<8x128xf32>,
    %c0_38 = arith.constant 0 : index
    %c0_39 = arith.constant 0 : index
    %59 = vector.load %arg13[%c0_38, %c0_39] : memref<8x128xf32, #tpu.memory_space<vmem>>, vector<8x128xf32>
    tpu.vector_store %arg13[%c0_38, %c0_39], %55 {strides = array<i32>} : memref<8x128xf32, #tpu.memory_space<vmem>>, vector<8x128xf32>,
    %60 = arith.truncf %57 : vector<8x128xf32> to vector<8x128xbf16>
    %cst_40 = arith.constant dense<0.000000e+00> : vector<8x512xf32>
    %61 = tpu.matmul %60, %12, %cst_40 {dimension_numbers = #tpu.dot_dimension_numbers<[1], [0], [0], [1], [0, 0, 1, 1], [], []>} : vector<8x128xbf16>, vector<128x512xbf16>, vector<8x512xf32> -> vector<8x512xf32>
    %62 = arith.addf %19, %61 : vector<8x512xf32>
    %63 = vector.broadcast %14 : vector<1x512xf32> to vector<8x512xf32>
    %64 = arith.addf %62, %63 : vector<8x512xf32>
    %c0_41 = arith.constant 0 : index
    %c0_42 = arith.constant 0 : index
    %65 = vector.load %arg15[%c0_41, %c0_42] : memref<8x128xf32, #tpu.memory_space<vmem>>, vector<8x128xf32>
    %66 = vector.extract_strided_slice %64 {offsets = [0, 0], sizes = [8, 128], strides = [1, 1]} : vector<8x512xf32> to vector<8x128xf32>
    %cst_43 = arith.constant 5.000000e-01 : f32
    %67 = vector.broadcast %cst_43 : f32 to vector<8x128xf32>
    %68 = arith.mulf %67, %66 : vector<8x128xf32>
    %69 = math.tanh %68 : vector<8x128xf32>
    %cst_44 = arith.constant 1.000000e+00 : f32
    %70 = vector.broadcast %cst_44 : f32 to vector<8x128xf32>
    %71 = arith.addf %69, %70 : vector<8x128xf32>
    %cst_45 = arith.constant 5.000000e-01 : f32
    %72 = vector.broadcast %cst_45 : f32 to vector<8x128xf32>
    %73 = arith.mulf %72, %71 : vector<8x128xf32>
    %74 = vector.extract_strided_slice %64 {offsets = [0, 128], sizes = [8, 128], strides = [1, 1]} : vector<8x512xf32> to vector<8x128xf32>
    %cst_46 = arith.constant 5.000000e-01 : f32
    %75 = vector.broadcast %cst_46 : f32 to vector<8x128xf32>
    %76 = arith.mulf %75, %74 : vector<8x128xf32>
    %77 = math.tanh %76 : vector<8x128xf32>
    %cst_47 = arith.constant 1.000000e+00 : f32
    %78 = vector.broadcast %cst_47 : f32 to vector<8x128xf32>
    %79 = arith.addf %77, %78 : vector<8x128xf32>
    %cst_48 = arith.constant 5.000000e-01 : f32
    %80 = vector.broadcast %cst_48 : f32 to vector<8x128xf32>
    %81 = arith.mulf %80, %79 : vector<8x128xf32>
    %82 = vector.extract_strided_slice %64 {offsets = [0, 256], sizes = [8, 128], strides = [1, 1]} : vector<8x512xf32> to vector<8x128xf32>
    %83 = math.tanh %82 : vector<8x128xf32>
    %84 = vector.extract_strided_slice %64 {offsets = [0, 384], sizes = [8, 128], strides = [1, 1]} : vector<8x512xf32> to vector<8x128xf32>
    %cst_49 = arith.constant 5.000000e-01 : f32
    %85 = vector.broadcast %cst_49 : f32 to vector<8x128xf32>
    %86 = arith.mulf %85, %84 : vector<8x128xf32>
    %87 = math.tanh %86 : vector<8x128xf32>
    %cst_50 = arith.constant 1.000000e+00 : f32
    %88 = vector.broadcast %cst_50 : f32 to vector<8x128xf32>
    %89 = arith.addf %87, %88 : vector<8x128xf32>
    %cst_51 = arith.constant 5.000000e-01 : f32
    %90 = vector.broadcast %cst_51 : f32 to vector<8x128xf32>
    %91 = arith.mulf %90, %89 : vector<8x128xf32>
    %92 = arith.mulf %81, %65 : vector<8x128xf32>
    %93 = arith.mulf %73, %83 : vector<8x128xf32>
    %94 = arith.addf %92, %93 : vector<8x128xf32>
    %95 = math.tanh %94 : vector<8x128xf32>
    %96 = arith.mulf %91, %95 : vector<8x128xf32>
    %c0_52 = arith.constant 0 : index
    %c0_53 = arith.constant 0 : index
    %97 = vector.load %arg14[%c0_52, %c0_53] : memref<8x128xf32, #tpu.memory_space<vmem>>, vector<8x128xf32>
    tpu.vector_store %arg14[%c0_52, %c0_53], %96 {strides = array<i32>} : memref<8x128xf32, #tpu.memory_space<vmem>>, vector<8x128xf32>,
    %c0_54 = arith.constant 0 : index
    %c0_55 = arith.constant 0 : index
    %98 = vector.load %arg15[%c0_54, %c0_55] : memref<8x128xf32, #tpu.memory_space<vmem>>, vector<8x128xf32>
    tpu.vector_store %arg15[%c0_54, %c0_55], %94 {strides = array<i32>} : memref<8x128xf32, #tpu.memory_space<vmem>>, vector<8x128xf32>,
    %99 = arith.index_cast %16 : i32 to index
    %c0_56 = arith.constant 0 : index
    %100 = vector.load %arg17[%99, %c0_56] : memref<64x128xf32, #tpu.memory_space<vmem>>, vector<8x128xf32>
    tpu.vector_store %arg17[%99, %c0_56], %96 {strides = array<i32>} : memref<64x128xf32, #tpu.memory_space<vmem>>, vector<8x128xf32>,
    %c1_i32 = arith.constant 1 : i32
    %c8_i32_57 = arith.constant 8 : i32
    %101 = arith.muli %c1_i32, %c8_i32_57 : i32
    %102 = tpu.assume_multiple %101, 8 : i32
    %c0_58 = arith.constant 0 : index
    %c0_59 = arith.constant 0 : index
    %103 = vector.load %arg14[%c0_58, %c0_59] : memref<8x128xf32, #tpu.memory_space<vmem>>, vector<8x128xf32>
    %104 = arith.truncf %103 : vector<8x128xf32> to vector<8x128xbf16>
    %cst_60 = arith.constant dense<0.000000e+00> : vector<8x512xf32>
    %105 = tpu.matmul %104, %13, %cst_60 {dimension_numbers = #tpu.dot_dimension_numbers<[1], [0], [0], [1], [0, 0, 1, 1], [], []>} : vector<8x128xbf16>, vector<128x512xbf16>, vector<8x512xf32> -> vector<8x512xf32>
    %106 = arith.index_cast %102 : i32 to index
    %c0_61 = arith.constant 0 : index
    %107 = vector.load %arg16[%106, %c0_61] : memref<64x512xf32, #tpu.memory_space<vmem>>, vector<8x512xf32>
    %c0_62 = arith.constant 0 : index
    %c0_63 = arith.constant 0 : index
    %108 = vector.load %arg12[%c0_62, %c0_63] : memref<8x128xf32, #tpu.memory_space<vmem>>, vector<8x128xf32>
    %109 = arith.truncf %108 : vector<8x128xf32> to vector<8x128xbf16>
    %cst_64 = arith.constant dense<0.000000e+00> : vector<8x512xf32>
    %110 = tpu.matmul %109, %11, %cst_64 {dimension_numbers = #tpu.dot_dimension_numbers<[1], [0], [0], [1], [0, 0, 1, 1], [], []>} : vector<8x128xbf16>, vector<128x512xbf16>, vector<8x512xf32> -> vector<8x512xf32>
    %111 = arith.addf %107, %110 : vector<8x512xf32>
    %c0_65 = arith.constant 0 : index
    %c0_66 = arith.constant 0 : index
    %112 = vector.load %arg13[%c0_65, %c0_66] : memref<8x128xf32, #tpu.memory_space<vmem>>, vector<8x128xf32>
    %113 = vector.extract_strided_slice %111 {offsets = [0, 0], sizes = [8, 128], strides = [1, 1]} : vector<8x512xf32> to vector<8x128xf32>
    %cst_67 = arith.constant 5.000000e-01 : f32
    %114 = vector.broadcast %cst_67 : f32 to vector<8x128xf32>
    %115 = arith.mulf %114, %113 : vector<8x128xf32>
    %116 = math.tanh %115 : vector<8x128xf32>
    %cst_68 = arith.constant 1.000000e+00 : f32
    %117 = vector.broadcast %cst_68 : f32 to vector<8x128xf32>
    %118 = arith.addf %116, %117 : vector<8x128xf32>
    %cst_69 = arith.constant 5.000000e-01 : f32
    %119 = vector.broadcast %cst_69 : f32 to vector<8x128xf32>
    %120 = arith.mulf %119, %118 : vector<8x128xf32>
    %121 = vector.extract_strided_slice %111 {offsets = [0, 128], sizes = [8, 128], strides = [1, 1]} : vector<8x512xf32> to vector<8x128xf32>
    %cst_70 = arith.constant 5.000000e-01 : f32
    %122 = vector.broadcast %cst_70 : f32 to vector<8x128xf32>
    %123 = arith.mulf %122, %121 : vector<8x128xf32>
    %124 = math.tanh %123 : vector<8x128xf32>
    %cst_71 = arith.constant 1.000000e+00 : f32
    %125 = vector.broadcast %cst_71 : f32 to vector<8x128xf32>
    %126 = arith.addf %124, %125 : vector<8x128xf32>
    %cst_72 = arith.constant 5.000000e-01 : f32
    %127 = vector.broadcast %cst_72 : f32 to vector<8x128xf32>
    %128 = arith.mulf %127, %126 : vector<8x128xf32>
    %129 = vector.extract_strided_slice %111 {offsets = [0, 256], sizes = [8, 128], strides = [1, 1]} : vector<8x512xf32> to vector<8x128xf32>
    %130 = math.tanh %129 : vector<8x128xf32>
    %131 = vector.extract_strided_slice %111 {offsets = [0, 384], sizes = [8, 128], strides = [1, 1]} : vector<8x512xf32> to vector<8x128xf32>
    %cst_73 = arith.constant 5.000000e-01 : f32
    %132 = vector.broadcast %cst_73 : f32 to vector<8x128xf32>
    %133 = arith.mulf %132, %131 : vector<8x128xf32>
    %134 = math.tanh %133 : vector<8x128xf32>
    %cst_74 = arith.constant 1.000000e+00 : f32
    %135 = vector.broadcast %cst_74 : f32 to vector<8x128xf32>
    %136 = arith.addf %134, %135 : vector<8x128xf32>
    %cst_75 = arith.constant 5.000000e-01 : f32
    %137 = vector.broadcast %cst_75 : f32 to vector<8x128xf32>
    %138 = arith.mulf %137, %136 : vector<8x128xf32>
    %139 = arith.mulf %128, %112 : vector<8x128xf32>
    %140 = arith.mulf %120, %130 : vector<8x128xf32>
    %141 = arith.addf %139, %140 : vector<8x128xf32>
    %142 = math.tanh %141 : vector<8x128xf32>
    %143 = arith.mulf %138, %142 : vector<8x128xf32>
    %c0_76 = arith.constant 0 : index
    %c0_77 = arith.constant 0 : index
    %144 = vector.load %arg12[%c0_76, %c0_77] : memref<8x128xf32, #tpu.memory_space<vmem>>, vector<8x128xf32>
    tpu.vector_store %arg12[%c0_76, %c0_77], %143 {strides = array<i32>} : memref<8x128xf32, #tpu.memory_space<vmem>>, vector<8x128xf32>,
    %c0_78 = arith.constant 0 : index
    %c0_79 = arith.constant 0 : index
    %145 = vector.load %arg13[%c0_78, %c0_79] : memref<8x128xf32, #tpu.memory_space<vmem>>, vector<8x128xf32>
    tpu.vector_store %arg13[%c0_78, %c0_79], %141 {strides = array<i32>} : memref<8x128xf32, #tpu.memory_space<vmem>>, vector<8x128xf32>,
    %146 = arith.truncf %143 : vector<8x128xf32> to vector<8x128xbf16>
    %cst_80 = arith.constant dense<0.000000e+00> : vector<8x512xf32>
    %147 = tpu.matmul %146, %12, %cst_80 {dimension_numbers = #tpu.dot_dimension_numbers<[1], [0], [0], [1], [0, 0, 1, 1], [], []>} : vector<8x128xbf16>, vector<128x512xbf16>, vector<8x512xf32> -> vector<8x512xf32>
    %148 = arith.addf %105, %147 : vector<8x512xf32>
    %149 = vector.broadcast %14 : vector<1x512xf32> to vector<8x512xf32>
    %150 = arith.addf %148, %149 : vector<8x512xf32>
    %c0_81 = arith.constant 0 : index
    %c0_82 = arith.constant 0 : index
    %151 = vector.load %arg15[%c0_81, %c0_82] : memref<8x128xf32, #tpu.memory_space<vmem>>, vector<8x128xf32>
    %152 = vector.extract_strided_slice %150 {offsets = [0, 0], sizes = [8, 128], strides = [1, 1]} : vector<8x512xf32> to vector<8x128xf32>
    %cst_83 = arith.constant 5.000000e-01 : f32
    %153 = vector.broadcast %cst_83 : f32 to vector<8x128xf32>
    %154 = arith.mulf %153, %152 : vector<8x128xf32>
    %155 = math.tanh %154 : vector<8x128xf32>
    %cst_84 = arith.constant 1.000000e+00 : f32
    %156 = vector.broadcast %cst_84 : f32 to vector<8x128xf32>
    %157 = arith.addf %155, %156 : vector<8x128xf32>
    %cst_85 = arith.constant 5.000000e-01 : f32
    %158 = vector.broadcast %cst_85 : f32 to vector<8x128xf32>
    %159 = arith.mulf %158, %157 : vector<8x128xf32>
    %160 = vector.extract_strided_slice %150 {offsets = [0, 128], sizes = [8, 128], strides = [1, 1]} : vector<8x512xf32> to vector<8x128xf32>
    %cst_86 = arith.constant 5.000000e-01 : f32
    %161 = vector.broadcast %cst_86 : f32 to vector<8x128xf32>
    %162 = arith.mulf %161, %160 : vector<8x128xf32>
    %163 = math.tanh %162 : vector<8x128xf32>
    %cst_87 = arith.constant 1.000000e+00 : f32
    %164 = vector.broadcast %cst_87 : f32 to vector<8x128xf32>
    %165 = arith.addf %163, %164 : vector<8x128xf32>
    %cst_88 = arith.constant 5.000000e-01 : f32
    %166 = vector.broadcast %cst_88 : f32 to vector<8x128xf32>
    %167 = arith.mulf %166, %165 : vector<8x128xf32>
    %168 = vector.extract_strided_slice %150 {offsets = [0, 256], sizes = [8, 128], strides = [1, 1]} : vector<8x512xf32> to vector<8x128xf32>
    %169 = math.tanh %168 : vector<8x128xf32>
    %170 = vector.extract_strided_slice %150 {offsets = [0, 384], sizes = [8, 128], strides = [1, 1]} : vector<8x512xf32> to vector<8x128xf32>
    %cst_89 = arith.constant 5.000000e-01 : f32
    %171 = vector.broadcast %cst_89 : f32 to vector<8x128xf32>
    %172 = arith.mulf %171, %170 : vector<8x128xf32>
    %173 = math.tanh %172 : vector<8x128xf32>
    %cst_90 = arith.constant 1.000000e+00 : f32
    %174 = vector.broadcast %cst_90 : f32 to vector<8x128xf32>
    %175 = arith.addf %173, %174 : vector<8x128xf32>
    %cst_91 = arith.constant 5.000000e-01 : f32
    %176 = vector.broadcast %cst_91 : f32 to vector<8x128xf32>
    %177 = arith.mulf %176, %175 : vector<8x128xf32>
    %178 = arith.mulf %167, %151 : vector<8x128xf32>
    %179 = arith.mulf %159, %169 : vector<8x128xf32>
    %180 = arith.addf %178, %179 : vector<8x128xf32>
    %181 = math.tanh %180 : vector<8x128xf32>
    %182 = arith.mulf %177, %181 : vector<8x128xf32>
    %c0_92 = arith.constant 0 : index
    %c0_93 = arith.constant 0 : index
    %183 = vector.load %arg14[%c0_92, %c0_93] : memref<8x128xf32, #tpu.memory_space<vmem>>, vector<8x128xf32>
    tpu.vector_store %arg14[%c0_92, %c0_93], %182 {strides = array<i32>} : memref<8x128xf32, #tpu.memory_space<vmem>>, vector<8x128xf32>,
    %c0_94 = arith.constant 0 : index
    %c0_95 = arith.constant 0 : index
    %184 = vector.load %arg15[%c0_94, %c0_95] : memref<8x128xf32, #tpu.memory_space<vmem>>, vector<8x128xf32>
    tpu.vector_store %arg15[%c0_94, %c0_95], %180 {strides = array<i32>} : memref<8x128xf32, #tpu.memory_space<vmem>>, vector<8x128xf32>,
    %185 = arith.index_cast %102 : i32 to index
    %c0_96 = arith.constant 0 : index
    %186 = vector.load %arg17[%185, %c0_96] : memref<64x128xf32, #tpu.memory_space<vmem>>, vector<8x128xf32>
    tpu.vector_store %arg17[%185, %c0_96], %182 {strides = array<i32>} : memref<64x128xf32, #tpu.memory_space<vmem>>, vector<8x128xf32>,
    %c2_i32 = arith.constant 2 : i32
    %c8_i32_97 = arith.constant 8 : i32
    %187 = arith.muli %c2_i32, %c8_i32_97 : i32
    %188 = tpu.assume_multiple %187, 8 : i32
    %c0_98 = arith.constant 0 : index
    %c0_99 = arith.constant 0 : index
    %189 = vector.load %arg14[%c0_98, %c0_99] : memref<8x128xf32, #tpu.memory_space<vmem>>, vector<8x128xf32>
    %190 = arith.truncf %189 : vector<8x128xf32> to vector<8x128xbf16>
    %cst_100 = arith.constant dense<0.000000e+00> : vector<8x512xf32>
    %191 = tpu.matmul %190, %13, %cst_100 {dimension_numbers = #tpu.dot_dimension_numbers<[1], [0], [0], [1], [0, 0, 1, 1], [], []>} : vector<8x128xbf16>, vector<128x512xbf16>, vector<8x512xf32> -> vector<8x512xf32>
    %192 = arith.index_cast %188 : i32 to index
    %c0_101 = arith.constant 0 : index
    %193 = vector.load %arg16[%192, %c0_101] : memref<64x512xf32, #tpu.memory_space<vmem>>, vector<8x512xf32>
    %c0_102 = arith.constant 0 : index
    %c0_103 = arith.constant 0 : index
    %194 = vector.load %arg12[%c0_102, %c0_103] : memref<8x128xf32, #tpu.memory_space<vmem>>, vector<8x128xf32>
    %195 = arith.truncf %194 : vector<8x128xf32> to vector<8x128xbf16>
    %cst_104 = arith.constant dense<0.000000e+00> : vector<8x512xf32>
    %196 = tpu.matmul %195, %11, %cst_104 {dimension_numbers = #tpu.dot_dimension_numbers<[1], [0], [0], [1], [0, 0, 1, 1], [], []>} : vector<8x128xbf16>, vector<128x512xbf16>, vector<8x512xf32> -> vector<8x512xf32>
    %197 = arith.addf %193, %196 : vector<8x512xf32>
    %c0_105 = arith.constant 0 : index
    %c0_106 = arith.constant 0 : index
    %198 = vector.load %arg13[%c0_105, %c0_106] : memref<8x128xf32, #tpu.memory_space<vmem>>, vector<8x128xf32>
    %199 = vector.extract_strided_slice %197 {offsets = [0, 0], sizes = [8, 128], strides = [1, 1]} : vector<8x512xf32> to vector<8x128xf32>
    %cst_107 = arith.constant 5.000000e-01 : f32
    %200 = vector.broadcast %cst_107 : f32 to vector<8x128xf32>
    %201 = arith.mulf %200, %199 : vector<8x128xf32>
    %202 = math.tanh %201 : vector<8x128xf32>
    %cst_108 = arith.constant 1.000000e+00 : f32
    %203 = vector.broadcast %cst_108 : f32 to vector<8x128xf32>
    %204 = arith.addf %202, %203 : vector<8x128xf32>
    %cst_109 = arith.constant 5.000000e-01 : f32
    %205 = vector.broadcast %cst_109 : f32 to vector<8x128xf32>
    %206 = arith.mulf %205, %204 : vector<8x128xf32>
    %207 = vector.extract_strided_slice %197 {offsets = [0, 128], sizes = [8, 128], strides = [1, 1]} : vector<8x512xf32> to vector<8x128xf32>
    %cst_110 = arith.constant 5.000000e-01 : f32
    %208 = vector.broadcast %cst_110 : f32 to vector<8x128xf32>
    %209 = arith.mulf %208, %207 : vector<8x128xf32>
    %210 = math.tanh %209 : vector<8x128xf32>
    %cst_111 = arith.constant 1.000000e+00 : f32
    %211 = vector.broadcast %cst_111 : f32 to vector<8x128xf32>
    %212 = arith.addf %210, %211 : vector<8x128xf32>
    %cst_112 = arith.constant 5.000000e-01 : f32
    %213 = vector.broadcast %cst_112 : f32 to vector<8x128xf32>
    %214 = arith.mulf %213, %212 : vector<8x128xf32>
    %215 = vector.extract_strided_slice %197 {offsets = [0, 256], sizes = [8, 128], strides = [1, 1]} : vector<8x512xf32> to vector<8x128xf32>
    %216 = math.tanh %215 : vector<8x128xf32>
    %217 = vector.extract_strided_slice %197 {offsets = [0, 384], sizes = [8, 128], strides = [1, 1]} : vector<8x512xf32> to vector<8x128xf32>
    %cst_113 = arith.constant 5.000000e-01 : f32
    %218 = vector.broadcast %cst_113 : f32 to vector<8x128xf32>
    %219 = arith.mulf %218, %217 : vector<8x128xf32>
    %220 = math.tanh %219 : vector<8x128xf32>
    %cst_114 = arith.constant 1.000000e+00 : f32
    %221 = vector.broadcast %cst_114 : f32 to vector<8x128xf32>
    %222 = arith.addf %220, %221 : vector<8x128xf32>
    %cst_115 = arith.constant 5.000000e-01 : f32
    %223 = vector.broadcast %cst_115 : f32 to vector<8x128xf32>
    %224 = arith.mulf %223, %222 : vector<8x128xf32>
    %225 = arith.mulf %214, %198 : vector<8x128xf32>
    %226 = arith.mulf %206, %216 : vector<8x128xf32>
    %227 = arith.addf %225, %226 : vector<8x128xf32>
    %228 = math.tanh %227 : vector<8x128xf32>
    %229 = arith.mulf %224, %228 : vector<8x128xf32>
    %c0_116 = arith.constant 0 : index
    %c0_117 = arith.constant 0 : index
    %230 = vector.load %arg12[%c0_116, %c0_117] : memref<8x128xf32, #tpu.memory_space<vmem>>, vector<8x128xf32>
    tpu.vector_store %arg12[%c0_116, %c0_117], %229 {strides = array<i32>} : memref<8x128xf32, #tpu.memory_space<vmem>>, vector<8x128xf32>,
    %c0_118 = arith.constant 0 : index
    %c0_119 = arith.constant 0 : index
    %231 = vector.load %arg13[%c0_118, %c0_119] : memref<8x128xf32, #tpu.memory_space<vmem>>, vector<8x128xf32>
    tpu.vector_store %arg13[%c0_118, %c0_119], %227 {strides = array<i32>} : memref<8x128xf32, #tpu.memory_space<vmem>>, vector<8x128xf32>,
    %232 = arith.truncf %229 : vector<8x128xf32> to vector<8x128xbf16>
    %cst_120 = arith.constant dense<0.000000e+00> : vector<8x512xf32>
    %233 = tpu.matmul %232, %12, %cst_120 {dimension_numbers = #tpu.dot_dimension_numbers<[1], [0], [0], [1], [0, 0, 1, 1], [], []>} : vector<8x128xbf16>, vector<128x512xbf16>, vector<8x512xf32> -> vector<8x512xf32>
    %234 = arith.addf %191, %233 : vector<8x512xf32>
    %235 = vector.broadcast %14 : vector<1x512xf32> to vector<8x512xf32>
    %236 = arith.addf %234, %235 : vector<8x512xf32>
    %c0_121 = arith.constant 0 : index
    %c0_122 = arith.constant 0 : index
    %237 = vector.load %arg15[%c0_121, %c0_122] : memref<8x128xf32, #tpu.memory_space<vmem>>, vector<8x128xf32>
    %238 = vector.extract_strided_slice %236 {offsets = [0, 0], sizes = [8, 128], strides = [1, 1]} : vector<8x512xf32> to vector<8x128xf32>
    %cst_123 = arith.constant 5.000000e-01 : f32
    %239 = vector.broadcast %cst_123 : f32 to vector<8x128xf32>
    %240 = arith.mulf %239, %238 : vector<8x128xf32>
    %241 = math.tanh %240 : vector<8x128xf32>
    %cst_124 = arith.constant 1.000000e+00 : f32
    %242 = vector.broadcast %cst_124 : f32 to vector<8x128xf32>
    %243 = arith.addf %241, %242 : vector<8x128xf32>
    %cst_125 = arith.constant 5.000000e-01 : f32
    %244 = vector.broadcast %cst_125 : f32 to vector<8x128xf32>
    %245 = arith.mulf %244, %243 : vector<8x128xf32>
    %246 = vector.extract_strided_slice %236 {offsets = [0, 128], sizes = [8, 128], strides = [1, 1]} : vector<8x512xf32> to vector<8x128xf32>
    %cst_126 = arith.constant 5.000000e-01 : f32
    %247 = vector.broadcast %cst_126 : f32 to vector<8x128xf32>
    %248 = arith.mulf %247, %246 : vector<8x128xf32>
    %249 = math.tanh %248 : vector<8x128xf32>
    %cst_127 = arith.constant 1.000000e+00 : f32
    %250 = vector.broadcast %cst_127 : f32 to vector<8x128xf32>
    %251 = arith.addf %249, %250 : vector<8x128xf32>
    %cst_128 = arith.constant 5.000000e-01 : f32
    %252 = vector.broadcast %cst_128 : f32 to vector<8x128xf32>
    %253 = arith.mulf %252, %251 : vector<8x128xf32>
    %254 = vector.extract_strided_slice %236 {offsets = [0, 256], sizes = [8, 128], strides = [1, 1]} : vector<8x512xf32> to vector<8x128xf32>
    %255 = math.tanh %254 : vector<8x128xf32>
    %256 = vector.extract_strided_slice %236 {offsets = [0, 384], sizes = [8, 128], strides = [1, 1]} : vector<8x512xf32> to vector<8x128xf32>
    %cst_129 = arith.constant 5.000000e-01 : f32
    %257 = vector.broadcast %cst_129 : f32 to vector<8x128xf32>
    %258 = arith.mulf %257, %256 : vector<8x128xf32>
    %259 = math.tanh %258 : vector<8x128xf32>
    %cst_130 = arith.constant 1.000000e+00 : f32
    %260 = vector.broadcast %cst_130 : f32 to vector<8x128xf32>
    %261 = arith.addf %259, %260 : vector<8x128xf32>
    %cst_131 = arith.constant 5.000000e-01 : f32
    %262 = vector.broadcast %cst_131 : f32 to vector<8x128xf32>
    %263 = arith.mulf %262, %261 : vector<8x128xf32>
    %264 = arith.mulf %253, %237 : vector<8x128xf32>
    %265 = arith.mulf %245, %255 : vector<8x128xf32>
    %266 = arith.addf %264, %265 : vector<8x128xf32>
    %267 = math.tanh %266 : vector<8x128xf32>
    %268 = arith.mulf %263, %267 : vector<8x128xf32>
    %c0_132 = arith.constant 0 : index
    %c0_133 = arith.constant 0 : index
    %269 = vector.load %arg14[%c0_132, %c0_133] : memref<8x128xf32, #tpu.memory_space<vmem>>, vector<8x128xf32>
    tpu.vector_store %arg14[%c0_132, %c0_133], %268 {strides = array<i32>} : memref<8x128xf32, #tpu.memory_space<vmem>>, vector<8x128xf32>,
    %c0_134 = arith.constant 0 : index
    %c0_135 = arith.constant 0 : index
    %270 = vector.load %arg15[%c0_134, %c0_135] : memref<8x128xf32, #tpu.memory_space<vmem>>, vector<8x128xf32>
    tpu.vector_store %arg15[%c0_134, %c0_135], %266 {strides = array<i32>} : memref<8x128xf32, #tpu.memory_space<vmem>>, vector<8x128xf32>,
    %271 = arith.index_cast %188 : i32 to index
    %c0_136 = arith.constant 0 : index
    %272 = vector.load %arg17[%271, %c0_136] : memref<64x128xf32, #tpu.memory_space<vmem>>, vector<8x128xf32>
    tpu.vector_store %arg17[%271, %c0_136], %268 {strides = array<i32>} : memref<64x128xf32, #tpu.memory_space<vmem>>, vector<8x128xf32>,
    %c3_i32 = arith.constant 3 : i32
    %c8_i32_137 = arith.constant 8 : i32
    %273 = arith.muli %c3_i32, %c8_i32_137 : i32
    %274 = tpu.assume_multiple %273, 8 : i32
    %c0_138 = arith.constant 0 : index
    %c0_139 = arith.constant 0 : index
    %275 = vector.load %arg14[%c0_138, %c0_139] : memref<8x128xf32, #tpu.memory_space<vmem>>, vector<8x128xf32>
    %276 = arith.truncf %275 : vector<8x128xf32> to vector<8x128xbf16>
    %cst_140 = arith.constant dense<0.000000e+00> : vector<8x512xf32>
    %277 = tpu.matmul %276, %13, %cst_140 {dimension_numbers = #tpu.dot_dimension_numbers<[1], [0], [0], [1], [0, 0, 1, 1], [], []>} : vector<8x128xbf16>, vector<128x512xbf16>, vector<8x512xf32> -> vector<8x512xf32>
    %278 = arith.index_cast %274 : i32 to index
    %c0_141 = arith.constant 0 : index
    %279 = vector.load %arg16[%278, %c0_141] : memref<64x512xf32, #tpu.memory_space<vmem>>, vector<8x512xf32>
    %c0_142 = arith.constant 0 : index
    %c0_143 = arith.constant 0 : index
    %280 = vector.load %arg12[%c0_142, %c0_143] : memref<8x128xf32, #tpu.memory_space<vmem>>, vector<8x128xf32>
    %281 = arith.truncf %280 : vector<8x128xf32> to vector<8x128xbf16>
    %cst_144 = arith.constant dense<0.000000e+00> : vector<8x512xf32>
    %282 = tpu.matmul %281, %11, %cst_144 {dimension_numbers = #tpu.dot_dimension_numbers<[1], [0], [0], [1], [0, 0, 1, 1], [], []>} : vector<8x128xbf16>, vector<128x512xbf16>, vector<8x512xf32> -> vector<8x512xf32>
    %283 = arith.addf %279, %282 : vector<8x512xf32>
    %c0_145 = arith.constant 0 : index
    %c0_146 = arith.constant 0 : index
    %284 = vector.load %arg13[%c0_145, %c0_146] : memref<8x128xf32, #tpu.memory_space<vmem>>, vector<8x128xf32>
    %285 = vector.extract_strided_slice %283 {offsets = [0, 0], sizes = [8, 128], strides = [1, 1]} : vector<8x512xf32> to vector<8x128xf32>
    %cst_147 = arith.constant 5.000000e-01 : f32
    %286 = vector.broadcast %cst_147 : f32 to vector<8x128xf32>
    %287 = arith.mulf %286, %285 : vector<8x128xf32>
    %288 = math.tanh %287 : vector<8x128xf32>
    %cst_148 = arith.constant 1.000000e+00 : f32
    %289 = vector.broadcast %cst_148 : f32 to vector<8x128xf32>
    %290 = arith.addf %288, %289 : vector<8x128xf32>
    %cst_149 = arith.constant 5.000000e-01 : f32
    %291 = vector.broadcast %cst_149 : f32 to vector<8x128xf32>
    %292 = arith.mulf %291, %290 : vector<8x128xf32>
    %293 = vector.extract_strided_slice %283 {offsets = [0, 128], sizes = [8, 128], strides = [1, 1]} : vector<8x512xf32> to vector<8x128xf32>
    %cst_150 = arith.constant 5.000000e-01 : f32
    %294 = vector.broadcast %cst_150 : f32 to vector<8x128xf32>
    %295 = arith.mulf %294, %293 : vector<8x128xf32>
    %296 = math.tanh %295 : vector<8x128xf32>
    %cst_151 = arith.constant 1.000000e+00 : f32
    %297 = vector.broadcast %cst_151 : f32 to vector<8x128xf32>
    %298 = arith.addf %296, %297 : vector<8x128xf32>
    %cst_152 = arith.constant 5.000000e-01 : f32
    %299 = vector.broadcast %cst_152 : f32 to vector<8x128xf32>
    %300 = arith.mulf %299, %298 : vector<8x128xf32>
    %301 = vector.extract_strided_slice %283 {offsets = [0, 256], sizes = [8, 128], strides = [1, 1]} : vector<8x512xf32> to vector<8x128xf32>
    %302 = math.tanh %301 : vector<8x128xf32>
    %303 = vector.extract_strided_slice %283 {offsets = [0, 384], sizes = [8, 128], strides = [1, 1]} : vector<8x512xf32> to vector<8x128xf32>
    %cst_153 = arith.constant 5.000000e-01 : f32
    %304 = vector.broadcast %cst_153 : f32 to vector<8x128xf32>
    %305 = arith.mulf %304, %303 : vector<8x128xf32>
    %306 = math.tanh %305 : vector<8x128xf32>
    %cst_154 = arith.constant 1.000000e+00 : f32
    %307 = vector.broadcast %cst_154 : f32 to vector<8x128xf32>
    %308 = arith.addf %306, %307 : vector<8x128xf32>
    %cst_155 = arith.constant 5.000000e-01 : f32
    %309 = vector.broadcast %cst_155 : f32 to vector<8x128xf32>
    %310 = arith.mulf %309, %308 : vector<8x128xf32>
    %311 = arith.mulf %300, %284 : vector<8x128xf32>
    %312 = arith.mulf %292, %302 : vector<8x128xf32>
    %313 = arith.addf %311, %312 : vector<8x128xf32>
    %314 = math.tanh %313 : vector<8x128xf32>
    %315 = arith.mulf %310, %314 : vector<8x128xf32>
    %c0_156 = arith.constant 0 : index
    %c0_157 = arith.constant 0 : index
    %316 = vector.load %arg12[%c0_156, %c0_157] : memref<8x128xf32, #tpu.memory_space<vmem>>, vector<8x128xf32>
    tpu.vector_store %arg12[%c0_156, %c0_157], %315 {strides = array<i32>} : memref<8x128xf32, #tpu.memory_space<vmem>>, vector<8x128xf32>,
    %c0_158 = arith.constant 0 : index
    %c0_159 = arith.constant 0 : index
    %317 = vector.load %arg13[%c0_158, %c0_159] : memref<8x128xf32, #tpu.memory_space<vmem>>, vector<8x128xf32>
    tpu.vector_store %arg13[%c0_158, %c0_159], %313 {strides = array<i32>} : memref<8x128xf32, #tpu.memory_space<vmem>>, vector<8x128xf32>,
    %318 = arith.truncf %315 : vector<8x128xf32> to vector<8x128xbf16>
    %cst_160 = arith.constant dense<0.000000e+00> : vector<8x512xf32>
    %319 = tpu.matmul %318, %12, %cst_160 {dimension_numbers = #tpu.dot_dimension_numbers<[1], [0], [0], [1], [0, 0, 1, 1], [], []>} : vector<8x128xbf16>, vector<128x512xbf16>, vector<8x512xf32> -> vector<8x512xf32>
    %320 = arith.addf %277, %319 : vector<8x512xf32>
    %321 = vector.broadcast %14 : vector<1x512xf32> to vector<8x512xf32>
    %322 = arith.addf %320, %321 : vector<8x512xf32>
    %c0_161 = arith.constant 0 : index
    %c0_162 = arith.constant 0 : index
    %323 = vector.load %arg15[%c0_161, %c0_162] : memref<8x128xf32, #tpu.memory_space<vmem>>, vector<8x128xf32>
    %324 = vector.extract_strided_slice %322 {offsets = [0, 0], sizes = [8, 128], strides = [1, 1]} : vector<8x512xf32> to vector<8x128xf32>
    %cst_163 = arith.constant 5.000000e-01 : f32
    %325 = vector.broadcast %cst_163 : f32 to vector<8x128xf32>
    %326 = arith.mulf %325, %324 : vector<8x128xf32>
    %327 = math.tanh %326 : vector<8x128xf32>
    %cst_164 = arith.constant 1.000000e+00 : f32
    %328 = vector.broadcast %cst_164 : f32 to vector<8x128xf32>
    %329 = arith.addf %327, %328 : vector<8x128xf32>
    %cst_165 = arith.constant 5.000000e-01 : f32
    %330 = vector.broadcast %cst_165 : f32 to vector<8x128xf32>
    %331 = arith.mulf %330, %329 : vector<8x128xf32>
    %332 = vector.extract_strided_slice %322 {offsets = [0, 128], sizes = [8, 128], strides = [1, 1]} : vector<8x512xf32> to vector<8x128xf32>
    %cst_166 = arith.constant 5.000000e-01 : f32
    %333 = vector.broadcast %cst_166 : f32 to vector<8x128xf32>
    %334 = arith.mulf %333, %332 : vector<8x128xf32>
    %335 = math.tanh %334 : vector<8x128xf32>
    %cst_167 = arith.constant 1.000000e+00 : f32
    %336 = vector.broadcast %cst_167 : f32 to vector<8x128xf32>
    %337 = arith.addf %335, %336 : vector<8x128xf32>
    %cst_168 = arith.constant 5.000000e-01 : f32
    %338 = vector.broadcast %cst_168 : f32 to vector<8x128xf32>
    %339 = arith.mulf %338, %337 : vector<8x128xf32>
    %340 = vector.extract_strided_slice %322 {offsets = [0, 256], sizes = [8, 128], strides = [1, 1]} : vector<8x512xf32> to vector<8x128xf32>
    %341 = math.tanh %340 : vector<8x128xf32>
    %342 = vector.extract_strided_slice %322 {offsets = [0, 384], sizes = [8, 128], strides = [1, 1]} : vector<8x512xf32> to vector<8x128xf32>
    %cst_169 = arith.constant 5.000000e-01 : f32
    %343 = vector.broadcast %cst_169 : f32 to vector<8x128xf32>
    %344 = arith.mulf %343, %342 : vector<8x128xf32>
    %345 = math.tanh %344 : vector<8x128xf32>
    %cst_170 = arith.constant 1.000000e+00 : f32
    %346 = vector.broadcast %cst_170 : f32 to vector<8x128xf32>
    %347 = arith.addf %345, %346 : vector<8x128xf32>
    %cst_171 = arith.constant 5.000000e-01 : f32
    %348 = vector.broadcast %cst_171 : f32 to vector<8x128xf32>
    %349 = arith.mulf %348, %347 : vector<8x128xf32>
    %350 = arith.mulf %339, %323 : vector<8x128xf32>
    %351 = arith.mulf %331, %341 : vector<8x128xf32>
    %352 = arith.addf %350, %351 : vector<8x128xf32>
    %353 = math.tanh %352 : vector<8x128xf32>
    %354 = arith.mulf %349, %353 : vector<8x128xf32>
    %c0_172 = arith.constant 0 : index
    %c0_173 = arith.constant 0 : index
    %355 = vector.load %arg14[%c0_172, %c0_173] : memref<8x128xf32, #tpu.memory_space<vmem>>, vector<8x128xf32>
    tpu.vector_store %arg14[%c0_172, %c0_173], %354 {strides = array<i32>} : memref<8x128xf32, #tpu.memory_space<vmem>>, vector<8x128xf32>,
    %c0_174 = arith.constant 0 : index
    %c0_175 = arith.constant 0 : index
    %356 = vector.load %arg15[%c0_174, %c0_175] : memref<8x128xf32, #tpu.memory_space<vmem>>, vector<8x128xf32>
    tpu.vector_store %arg15[%c0_174, %c0_175], %352 {strides = array<i32>} : memref<8x128xf32, #tpu.memory_space<vmem>>, vector<8x128xf32>,
    %357 = arith.index_cast %274 : i32 to index
    %c0_176 = arith.constant 0 : index
    %358 = vector.load %arg17[%357, %c0_176] : memref<64x128xf32, #tpu.memory_space<vmem>>, vector<8x128xf32>
    tpu.vector_store %arg17[%357, %c0_176], %354 {strides = array<i32>} : memref<64x128xf32, #tpu.memory_space<vmem>>, vector<8x128xf32>,
    %c4_i32 = arith.constant 4 : i32
    %c8_i32_177 = arith.constant 8 : i32
    %359 = arith.muli %c4_i32, %c8_i32_177 : i32
    %360 = tpu.assume_multiple %359, 8 : i32
    %c0_178 = arith.constant 0 : index
    %c0_179 = arith.constant 0 : index
    %361 = vector.load %arg14[%c0_178, %c0_179] : memref<8x128xf32, #tpu.memory_space<vmem>>, vector<8x128xf32>
    %362 = arith.truncf %361 : vector<8x128xf32> to vector<8x128xbf16>
    %cst_180 = arith.constant dense<0.000000e+00> : vector<8x512xf32>
    %363 = tpu.matmul %362, %13, %cst_180 {dimension_numbers = #tpu.dot_dimension_numbers<[1], [0], [0], [1], [0, 0, 1, 1], [], []>} : vector<8x128xbf16>, vector<128x512xbf16>, vector<8x512xf32> -> vector<8x512xf32>
    %364 = arith.index_cast %360 : i32 to index
    %c0_181 = arith.constant 0 : index
    %365 = vector.load %arg16[%364, %c0_181] : memref<64x512xf32, #tpu.memory_space<vmem>>, vector<8x512xf32>
    %c0_182 = arith.constant 0 : index
    %c0_183 = arith.constant 0 : index
    %366 = vector.load %arg12[%c0_182, %c0_183] : memref<8x128xf32, #tpu.memory_space<vmem>>, vector<8x128xf32>
    %367 = arith.truncf %366 : vector<8x128xf32> to vector<8x128xbf16>
    %cst_184 = arith.constant dense<0.000000e+00> : vector<8x512xf32>
    %368 = tpu.matmul %367, %11, %cst_184 {dimension_numbers = #tpu.dot_dimension_numbers<[1], [0], [0], [1], [0, 0, 1, 1], [], []>} : vector<8x128xbf16>, vector<128x512xbf16>, vector<8x512xf32> -> vector<8x512xf32>
    %369 = arith.addf %365, %368 : vector<8x512xf32>
    %c0_185 = arith.constant 0 : index
    %c0_186 = arith.constant 0 : index
    %370 = vector.load %arg13[%c0_185, %c0_186] : memref<8x128xf32, #tpu.memory_space<vmem>>, vector<8x128xf32>
    %371 = vector.extract_strided_slice %369 {offsets = [0, 0], sizes = [8, 128], strides = [1, 1]} : vector<8x512xf32> to vector<8x128xf32>
    %cst_187 = arith.constant 5.000000e-01 : f32
    %372 = vector.broadcast %cst_187 : f32 to vector<8x128xf32>
    %373 = arith.mulf %372, %371 : vector<8x128xf32>
    %374 = math.tanh %373 : vector<8x128xf32>
    %cst_188 = arith.constant 1.000000e+00 : f32
    %375 = vector.broadcast %cst_188 : f32 to vector<8x128xf32>
    %376 = arith.addf %374, %375 : vector<8x128xf32>
    %cst_189 = arith.constant 5.000000e-01 : f32
    %377 = vector.broadcast %cst_189 : f32 to vector<8x128xf32>
    %378 = arith.mulf %377, %376 : vector<8x128xf32>
    %379 = vector.extract_strided_slice %369 {offsets = [0, 128], sizes = [8, 128], strides = [1, 1]} : vector<8x512xf32> to vector<8x128xf32>
    %cst_190 = arith.constant 5.000000e-01 : f32
    %380 = vector.broadcast %cst_190 : f32 to vector<8x128xf32>
    %381 = arith.mulf %380, %379 : vector<8x128xf32>
    %382 = math.tanh %381 : vector<8x128xf32>
    %cst_191 = arith.constant 1.000000e+00 : f32
    %383 = vector.broadcast %cst_191 : f32 to vector<8x128xf32>
    %384 = arith.addf %382, %383 : vector<8x128xf32>
    %cst_192 = arith.constant 5.000000e-01 : f32
    %385 = vector.broadcast %cst_192 : f32 to vector<8x128xf32>
    %386 = arith.mulf %385, %384 : vector<8x128xf32>
    %387 = vector.extract_strided_slice %369 {offsets = [0, 256], sizes = [8, 128], strides = [1, 1]} : vector<8x512xf32> to vector<8x128xf32>
    %388 = math.tanh %387 : vector<8x128xf32>
    %389 = vector.extract_strided_slice %369 {offsets = [0, 384], sizes = [8, 128], strides = [1, 1]} : vector<8x512xf32> to vector<8x128xf32>
    %cst_193 = arith.constant 5.000000e-01 : f32
    %390 = vector.broadcast %cst_193 : f32 to vector<8x128xf32>
    %391 = arith.mulf %390, %389 : vector<8x128xf32>
    %392 = math.tanh %391 : vector<8x128xf32>
    %cst_194 = arith.constant 1.000000e+00 : f32
    %393 = vector.broadcast %cst_194 : f32 to vector<8x128xf32>
    %394 = arith.addf %392, %393 : vector<8x128xf32>
    %cst_195 = arith.constant 5.000000e-01 : f32
    %395 = vector.broadcast %cst_195 : f32 to vector<8x128xf32>
    %396 = arith.mulf %395, %394 : vector<8x128xf32>
    %397 = arith.mulf %386, %370 : vector<8x128xf32>
    %398 = arith.mulf %378, %388 : vector<8x128xf32>
    %399 = arith.addf %397, %398 : vector<8x128xf32>
    %400 = math.tanh %399 : vector<8x128xf32>
    %401 = arith.mulf %396, %400 : vector<8x128xf32>
    %c0_196 = arith.constant 0 : index
    %c0_197 = arith.constant 0 : index
    %402 = vector.load %arg12[%c0_196, %c0_197] : memref<8x128xf32, #tpu.memory_space<vmem>>, vector<8x128xf32>
    tpu.vector_store %arg12[%c0_196, %c0_197], %401 {strides = array<i32>} : memref<8x128xf32, #tpu.memory_space<vmem>>, vector<8x128xf32>,
    %c0_198 = arith.constant 0 : index
    %c0_199 = arith.constant 0 : index
    %403 = vector.load %arg13[%c0_198, %c0_199] : memref<8x128xf32, #tpu.memory_space<vmem>>, vector<8x128xf32>
    tpu.vector_store %arg13[%c0_198, %c0_199], %399 {strides = array<i32>} : memref<8x128xf32, #tpu.memory_space<vmem>>, vector<8x128xf32>,
    %404 = arith.truncf %401 : vector<8x128xf32> to vector<8x128xbf16>
    %cst_200 = arith.constant dense<0.000000e+00> : vector<8x512xf32>
    %405 = tpu.matmul %404, %12, %cst_200 {dimension_numbers = #tpu.dot_dimension_numbers<[1], [0], [0], [1], [0, 0, 1, 1], [], []>} : vector<8x128xbf16>, vector<128x512xbf16>, vector<8x512xf32> -> vector<8x512xf32>
    %406 = arith.addf %363, %405 : vector<8x512xf32>
    %407 = vector.broadcast %14 : vector<1x512xf32> to vector<8x512xf32>
    %408 = arith.addf %406, %407 : vector<8x512xf32>
    %c0_201 = arith.constant 0 : index
    %c0_202 = arith.constant 0 : index
    %409 = vector.load %arg15[%c0_201, %c0_202] : memref<8x128xf32, #tpu.memory_space<vmem>>, vector<8x128xf32>
    %410 = vector.extract_strided_slice %408 {offsets = [0, 0], sizes = [8, 128], strides = [1, 1]} : vector<8x512xf32> to vector<8x128xf32>
    %cst_203 = arith.constant 5.000000e-01 : f32
    %411 = vector.broadcast %cst_203 : f32 to vector<8x128xf32>
    %412 = arith.mulf %411, %410 : vector<8x128xf32>
    %413 = math.tanh %412 : vector<8x128xf32>
    %cst_204 = arith.constant 1.000000e+00 : f32
    %414 = vector.broadcast %cst_204 : f32 to vector<8x128xf32>
    %415 = arith.addf %413, %414 : vector<8x128xf32>
    %cst_205 = arith.constant 5.000000e-01 : f32
    %416 = vector.broadcast %cst_205 : f32 to vector<8x128xf32>
    %417 = arith.mulf %416, %415 : vector<8x128xf32>
    %418 = vector.extract_strided_slice %408 {offsets = [0, 128], sizes = [8, 128], strides = [1, 1]} : vector<8x512xf32> to vector<8x128xf32>
    %cst_206 = arith.constant 5.000000e-01 : f32
    %419 = vector.broadcast %cst_206 : f32 to vector<8x128xf32>
    %420 = arith.mulf %419, %418 : vector<8x128xf32>
    %421 = math.tanh %420 : vector<8x128xf32>
    %cst_207 = arith.constant 1.000000e+00 : f32
    %422 = vector.broadcast %cst_207 : f32 to vector<8x128xf32>
    %423 = arith.addf %421, %422 : vector<8x128xf32>
    %cst_208 = arith.constant 5.000000e-01 : f32
    %424 = vector.broadcast %cst_208 : f32 to vector<8x128xf32>
    %425 = arith.mulf %424, %423 : vector<8x128xf32>
    %426 = vector.extract_strided_slice %408 {offsets = [0, 256], sizes = [8, 128], strides = [1, 1]} : vector<8x512xf32> to vector<8x128xf32>
    %427 = math.tanh %426 : vector<8x128xf32>
    %428 = vector.extract_strided_slice %408 {offsets = [0, 384], sizes = [8, 128], strides = [1, 1]} : vector<8x512xf32> to vector<8x128xf32>
    %cst_209 = arith.constant 5.000000e-01 : f32
    %429 = vector.broadcast %cst_209 : f32 to vector<8x128xf32>
    %430 = arith.mulf %429, %428 : vector<8x128xf32>
    %431 = math.tanh %430 : vector<8x128xf32>
    %cst_210 = arith.constant 1.000000e+00 : f32
    %432 = vector.broadcast %cst_210 : f32 to vector<8x128xf32>
    %433 = arith.addf %431, %432 : vector<8x128xf32>
    %cst_211 = arith.constant 5.000000e-01 : f32
    %434 = vector.broadcast %cst_211 : f32 to vector<8x128xf32>
    %435 = arith.mulf %434, %433 : vector<8x128xf32>
    %436 = arith.mulf %425, %409 : vector<8x128xf32>
    %437 = arith.mulf %417, %427 : vector<8x128xf32>
    %438 = arith.addf %436, %437 : vector<8x128xf32>
    %439 = math.tanh %438 : vector<8x128xf32>
    %440 = arith.mulf %435, %439 : vector<8x128xf32>
    %c0_212 = arith.constant 0 : index
    %c0_213 = arith.constant 0 : index
    %441 = vector.load %arg14[%c0_212, %c0_213] : memref<8x128xf32, #tpu.memory_space<vmem>>, vector<8x128xf32>
    tpu.vector_store %arg14[%c0_212, %c0_213], %440 {strides = array<i32>} : memref<8x128xf32, #tpu.memory_space<vmem>>, vector<8x128xf32>,
    %c0_214 = arith.constant 0 : index
    %c0_215 = arith.constant 0 : index
    %442 = vector.load %arg15[%c0_214, %c0_215] : memref<8x128xf32, #tpu.memory_space<vmem>>, vector<8x128xf32>
    tpu.vector_store %arg15[%c0_214, %c0_215], %438 {strides = array<i32>} : memref<8x128xf32, #tpu.memory_space<vmem>>, vector<8x128xf32>,
    %443 = arith.index_cast %360 : i32 to index
    %c0_216 = arith.constant 0 : index
    %444 = vector.load %arg17[%443, %c0_216] : memref<64x128xf32, #tpu.memory_space<vmem>>, vector<8x128xf32>
    tpu.vector_store %arg17[%443, %c0_216], %440 {strides = array<i32>} : memref<64x128xf32, #tpu.memory_space<vmem>>, vector<8x128xf32>,
    %c5_i32 = arith.constant 5 : i32
    %c8_i32_217 = arith.constant 8 : i32
    %445 = arith.muli %c5_i32, %c8_i32_217 : i32
    %446 = tpu.assume_multiple %445, 8 : i32
    %c0_218 = arith.constant 0 : index
    %c0_219 = arith.constant 0 : index
    %447 = vector.load %arg14[%c0_218, %c0_219] : memref<8x128xf32, #tpu.memory_space<vmem>>, vector<8x128xf32>
    %448 = arith.truncf %447 : vector<8x128xf32> to vector<8x128xbf16>
    %cst_220 = arith.constant dense<0.000000e+00> : vector<8x512xf32>
    %449 = tpu.matmul %448, %13, %cst_220 {dimension_numbers = #tpu.dot_dimension_numbers<[1], [0], [0], [1], [0, 0, 1, 1], [], []>} : vector<8x128xbf16>, vector<128x512xbf16>, vector<8x512xf32> -> vector<8x512xf32>
    %450 = arith.index_cast %446 : i32 to index
    %c0_221 = arith.constant 0 : index
    %451 = vector.load %arg16[%450, %c0_221] : memref<64x512xf32, #tpu.memory_space<vmem>>, vector<8x512xf32>
    %c0_222 = arith.constant 0 : index
    %c0_223 = arith.constant 0 : index
    %452 = vector.load %arg12[%c0_222, %c0_223] : memref<8x128xf32, #tpu.memory_space<vmem>>, vector<8x128xf32>
    %453 = arith.truncf %452 : vector<8x128xf32> to vector<8x128xbf16>
    %cst_224 = arith.constant dense<0.000000e+00> : vector<8x512xf32>
    %454 = tpu.matmul %453, %11, %cst_224 {dimension_numbers = #tpu.dot_dimension_numbers<[1], [0], [0], [1], [0, 0, 1, 1], [], []>} : vector<8x128xbf16>, vector<128x512xbf16>, vector<8x512xf32> -> vector<8x512xf32>
    %455 = arith.addf %451, %454 : vector<8x512xf32>
    %c0_225 = arith.constant 0 : index
    %c0_226 = arith.constant 0 : index
    %456 = vector.load %arg13[%c0_225, %c0_226] : memref<8x128xf32, #tpu.memory_space<vmem>>, vector<8x128xf32>
    %457 = vector.extract_strided_slice %455 {offsets = [0, 0], sizes = [8, 128], strides = [1, 1]} : vector<8x512xf32> to vector<8x128xf32>
    %cst_227 = arith.constant 5.000000e-01 : f32
    %458 = vector.broadcast %cst_227 : f32 to vector<8x128xf32>
    %459 = arith.mulf %458, %457 : vector<8x128xf32>
    %460 = math.tanh %459 : vector<8x128xf32>
    %cst_228 = arith.constant 1.000000e+00 : f32
    %461 = vector.broadcast %cst_228 : f32 to vector<8x128xf32>
    %462 = arith.addf %460, %461 : vector<8x128xf32>
    %cst_229 = arith.constant 5.000000e-01 : f32
    %463 = vector.broadcast %cst_229 : f32 to vector<8x128xf32>
    %464 = arith.mulf %463, %462 : vector<8x128xf32>
    %465 = vector.extract_strided_slice %455 {offsets = [0, 128], sizes = [8, 128], strides = [1, 1]} : vector<8x512xf32> to vector<8x128xf32>
    %cst_230 = arith.constant 5.000000e-01 : f32
    %466 = vector.broadcast %cst_230 : f32 to vector<8x128xf32>
    %467 = arith.mulf %466, %465 : vector<8x128xf32>
    %468 = math.tanh %467 : vector<8x128xf32>
    %cst_231 = arith.constant 1.000000e+00 : f32
    %469 = vector.broadcast %cst_231 : f32 to vector<8x128xf32>
    %470 = arith.addf %468, %469 : vector<8x128xf32>
    %cst_232 = arith.constant 5.000000e-01 : f32
    %471 = vector.broadcast %cst_232 : f32 to vector<8x128xf32>
    %472 = arith.mulf %471, %470 : vector<8x128xf32>
    %473 = vector.extract_strided_slice %455 {offsets = [0, 256], sizes = [8, 128], strides = [1, 1]} : vector<8x512xf32> to vector<8x128xf32>
    %474 = math.tanh %473 : vector<8x128xf32>
    %475 = vector.extract_strided_slice %455 {offsets = [0, 384], sizes = [8, 128], strides = [1, 1]} : vector<8x512xf32> to vector<8x128xf32>
    %cst_233 = arith.constant 5.000000e-01 : f32
    %476 = vector.broadcast %cst_233 : f32 to vector<8x128xf32>
    %477 = arith.mulf %476, %475 : vector<8x128xf32>
    %478 = math.tanh %477 : vector<8x128xf32>
    %cst_234 = arith.constant 1.000000e+00 : f32
    %479 = vector.broadcast %cst_234 : f32 to vector<8x128xf32>
    %480 = arith.addf %478, %479 : vector<8x128xf32>
    %cst_235 = arith.constant 5.000000e-01 : f32
    %481 = vector.broadcast %cst_235 : f32 to vector<8x128xf32>
    %482 = arith.mulf %481, %480 : vector<8x128xf32>
    %483 = arith.mulf %472, %456 : vector<8x128xf32>
    %484 = arith.mulf %464, %474 : vector<8x128xf32>
    %485 = arith.addf %483, %484 : vector<8x128xf32>
    %486 = math.tanh %485 : vector<8x128xf32>
    %487 = arith.mulf %482, %486 : vector<8x128xf32>
    %c0_236 = arith.constant 0 : index
    %c0_237 = arith.constant 0 : index
    %488 = vector.load %arg12[%c0_236, %c0_237] : memref<8x128xf32, #tpu.memory_space<vmem>>, vector<8x128xf32>
    tpu.vector_store %arg12[%c0_236, %c0_237], %487 {strides = array<i32>} : memref<8x128xf32, #tpu.memory_space<vmem>>, vector<8x128xf32>,
    %c0_238 = arith.constant 0 : index
    %c0_239 = arith.constant 0 : index
    %489 = vector.load %arg13[%c0_238, %c0_239] : memref<8x128xf32, #tpu.memory_space<vmem>>, vector<8x128xf32>
    tpu.vector_store %arg13[%c0_238, %c0_239], %485 {strides = array<i32>} : memref<8x128xf32, #tpu.memory_space<vmem>>, vector<8x128xf32>,
    %490 = arith.truncf %487 : vector<8x128xf32> to vector<8x128xbf16>
    %cst_240 = arith.constant dense<0.000000e+00> : vector<8x512xf32>
    %491 = tpu.matmul %490, %12, %cst_240 {dimension_numbers = #tpu.dot_dimension_numbers<[1], [0], [0], [1], [0, 0, 1, 1], [], []>} : vector<8x128xbf16>, vector<128x512xbf16>, vector<8x512xf32> -> vector<8x512xf32>
    %492 = arith.addf %449, %491 : vector<8x512xf32>
    %493 = vector.broadcast %14 : vector<1x512xf32> to vector<8x512xf32>
    %494 = arith.addf %492, %493 : vector<8x512xf32>
    %c0_241 = arith.constant 0 : index
    %c0_242 = arith.constant 0 : index
    %495 = vector.load %arg15[%c0_241, %c0_242] : memref<8x128xf32, #tpu.memory_space<vmem>>, vector<8x128xf32>
    %496 = vector.extract_strided_slice %494 {offsets = [0, 0], sizes = [8, 128], strides = [1, 1]} : vector<8x512xf32> to vector<8x128xf32>
    %cst_243 = arith.constant 5.000000e-01 : f32
    %497 = vector.broadcast %cst_243 : f32 to vector<8x128xf32>
    %498 = arith.mulf %497, %496 : vector<8x128xf32>
    %499 = math.tanh %498 : vector<8x128xf32>
    %cst_244 = arith.constant 1.000000e+00 : f32
    %500 = vector.broadcast %cst_244 : f32 to vector<8x128xf32>
    %501 = arith.addf %499, %500 : vector<8x128xf32>
    %cst_245 = arith.constant 5.000000e-01 : f32
    %502 = vector.broadcast %cst_245 : f32 to vector<8x128xf32>
    %503 = arith.mulf %502, %501 : vector<8x128xf32>
    %504 = vector.extract_strided_slice %494 {offsets = [0, 128], sizes = [8, 128], strides = [1, 1]} : vector<8x512xf32> to vector<8x128xf32>
    %cst_246 = arith.constant 5.000000e-01 : f32
    %505 = vector.broadcast %cst_246 : f32 to vector<8x128xf32>
    %506 = arith.mulf %505, %504 : vector<8x128xf32>
    %507 = math.tanh %506 : vector<8x128xf32>
    %cst_247 = arith.constant 1.000000e+00 : f32
    %508 = vector.broadcast %cst_247 : f32 to vector<8x128xf32>
    %509 = arith.addf %507, %508 : vector<8x128xf32>
    %cst_248 = arith.constant 5.000000e-01 : f32
    %510 = vector.broadcast %cst_248 : f32 to vector<8x128xf32>
    %511 = arith.mulf %510, %509 : vector<8x128xf32>
    %512 = vector.extract_strided_slice %494 {offsets = [0, 256], sizes = [8, 128], strides = [1, 1]} : vector<8x512xf32> to vector<8x128xf32>
    %513 = math.tanh %512 : vector<8x128xf32>
    %514 = vector.extract_strided_slice %494 {offsets = [0, 384], sizes = [8, 128], strides = [1, 1]} : vector<8x512xf32> to vector<8x128xf32>
    %cst_249 = arith.constant 5.000000e-01 : f32
    %515 = vector.broadcast %cst_249 : f32 to vector<8x128xf32>
    %516 = arith.mulf %515, %514 : vector<8x128xf32>
    %517 = math.tanh %516 : vector<8x128xf32>
    %cst_250 = arith.constant 1.000000e+00 : f32
    %518 = vector.broadcast %cst_250 : f32 to vector<8x128xf32>
    %519 = arith.addf %517, %518 : vector<8x128xf32>
    %cst_251 = arith.constant 5.000000e-01 : f32
    %520 = vector.broadcast %cst_251 : f32 to vector<8x128xf32>
    %521 = arith.mulf %520, %519 : vector<8x128xf32>
    %522 = arith.mulf %511, %495 : vector<8x128xf32>
    %523 = arith.mulf %503, %513 : vector<8x128xf32>
    %524 = arith.addf %522, %523 : vector<8x128xf32>
    %525 = math.tanh %524 : vector<8x128xf32>
    %526 = arith.mulf %521, %525 : vector<8x128xf32>
    %c0_252 = arith.constant 0 : index
    %c0_253 = arith.constant 0 : index
    %527 = vector.load %arg14[%c0_252, %c0_253] : memref<8x128xf32, #tpu.memory_space<vmem>>, vector<8x128xf32>
    tpu.vector_store %arg14[%c0_252, %c0_253], %526 {strides = array<i32>} : memref<8x128xf32, #tpu.memory_space<vmem>>, vector<8x128xf32>,
    %c0_254 = arith.constant 0 : index
    %c0_255 = arith.constant 0 : index
    %528 = vector.load %arg15[%c0_254, %c0_255] : memref<8x128xf32, #tpu.memory_space<vmem>>, vector<8x128xf32>
    tpu.vector_store %arg15[%c0_254, %c0_255], %524 {strides = array<i32>} : memref<8x128xf32, #tpu.memory_space<vmem>>, vector<8x128xf32>,
    %529 = arith.index_cast %446 : i32 to index
    %c0_256 = arith.constant 0 : index
    %530 = vector.load %arg17[%529, %c0_256] : memref<64x128xf32, #tpu.memory_space<vmem>>, vector<8x128xf32>
    tpu.vector_store %arg17[%529, %c0_256], %526 {strides = array<i32>} : memref<64x128xf32, #tpu.memory_space<vmem>>, vector<8x128xf32>,
    %c6_i32 = arith.constant 6 : i32
    %c8_i32_257 = arith.constant 8 : i32
    %531 = arith.muli %c6_i32, %c8_i32_257 : i32
    %532 = tpu.assume_multiple %531, 8 : i32
    %c0_258 = arith.constant 0 : index
    %c0_259 = arith.constant 0 : index
    %533 = vector.load %arg14[%c0_258, %c0_259] : memref<8x128xf32, #tpu.memory_space<vmem>>, vector<8x128xf32>
    %534 = arith.truncf %533 : vector<8x128xf32> to vector<8x128xbf16>
    %cst_260 = arith.constant dense<0.000000e+00> : vector<8x512xf32>
    %535 = tpu.matmul %534, %13, %cst_260 {dimension_numbers = #tpu.dot_dimension_numbers<[1], [0], [0], [1], [0, 0, 1, 1], [], []>} : vector<8x128xbf16>, vector<128x512xbf16>, vector<8x512xf32> -> vector<8x512xf32>
    %536 = arith.index_cast %532 : i32 to index
    %c0_261 = arith.constant 0 : index
    %537 = vector.load %arg16[%536, %c0_261] : memref<64x512xf32, #tpu.memory_space<vmem>>, vector<8x512xf32>
    %c0_262 = arith.constant 0 : index
    %c0_263 = arith.constant 0 : index
    %538 = vector.load %arg12[%c0_262, %c0_263] : memref<8x128xf32, #tpu.memory_space<vmem>>, vector<8x128xf32>
    %539 = arith.truncf %538 : vector<8x128xf32> to vector<8x128xbf16>
    %cst_264 = arith.constant dense<0.000000e+00> : vector<8x512xf32>
    %540 = tpu.matmul %539, %11, %cst_264 {dimension_numbers = #tpu.dot_dimension_numbers<[1], [0], [0], [1], [0, 0, 1, 1], [], []>} : vector<8x128xbf16>, vector<128x512xbf16>, vector<8x512xf32> -> vector<8x512xf32>
    %541 = arith.addf %537, %540 : vector<8x512xf32>
    %c0_265 = arith.constant 0 : index
    %c0_266 = arith.constant 0 : index
    %542 = vector.load %arg13[%c0_265, %c0_266] : memref<8x128xf32, #tpu.memory_space<vmem>>, vector<8x128xf32>
    %543 = vector.extract_strided_slice %541 {offsets = [0, 0], sizes = [8, 128], strides = [1, 1]} : vector<8x512xf32> to vector<8x128xf32>
    %cst_267 = arith.constant 5.000000e-01 : f32
    %544 = vector.broadcast %cst_267 : f32 to vector<8x128xf32>
    %545 = arith.mulf %544, %543 : vector<8x128xf32>
    %546 = math.tanh %545 : vector<8x128xf32>
    %cst_268 = arith.constant 1.000000e+00 : f32
    %547 = vector.broadcast %cst_268 : f32 to vector<8x128xf32>
    %548 = arith.addf %546, %547 : vector<8x128xf32>
    %cst_269 = arith.constant 5.000000e-01 : f32
    %549 = vector.broadcast %cst_269 : f32 to vector<8x128xf32>
    %550 = arith.mulf %549, %548 : vector<8x128xf32>
    %551 = vector.extract_strided_slice %541 {offsets = [0, 128], sizes = [8, 128], strides = [1, 1]} : vector<8x512xf32> to vector<8x128xf32>
    %cst_270 = arith.constant 5.000000e-01 : f32
    %552 = vector.broadcast %cst_270 : f32 to vector<8x128xf32>
    %553 = arith.mulf %552, %551 : vector<8x128xf32>
    %554 = math.tanh %553 : vector<8x128xf32>
    %cst_271 = arith.constant 1.000000e+00 : f32
    %555 = vector.broadcast %cst_271 : f32 to vector<8x128xf32>
    %556 = arith.addf %554, %555 : vector<8x128xf32>
    %cst_272 = arith.constant 5.000000e-01 : f32
    %557 = vector.broadcast %cst_272 : f32 to vector<8x128xf32>
    %558 = arith.mulf %557, %556 : vector<8x128xf32>
    %559 = vector.extract_strided_slice %541 {offsets = [0, 256], sizes = [8, 128], strides = [1, 1]} : vector<8x512xf32> to vector<8x128xf32>
    %560 = math.tanh %559 : vector<8x128xf32>
    %561 = vector.extract_strided_slice %541 {offsets = [0, 384], sizes = [8, 128], strides = [1, 1]} : vector<8x512xf32> to vector<8x128xf32>
    %cst_273 = arith.constant 5.000000e-01 : f32
    %562 = vector.broadcast %cst_273 : f32 to vector<8x128xf32>
    %563 = arith.mulf %562, %561 : vector<8x128xf32>
    %564 = math.tanh %563 : vector<8x128xf32>
    %cst_274 = arith.constant 1.000000e+00 : f32
    %565 = vector.broadcast %cst_274 : f32 to vector<8x128xf32>
    %566 = arith.addf %564, %565 : vector<8x128xf32>
    %cst_275 = arith.constant 5.000000e-01 : f32
    %567 = vector.broadcast %cst_275 : f32 to vector<8x128xf32>
    %568 = arith.mulf %567, %566 : vector<8x128xf32>
    %569 = arith.mulf %558, %542 : vector<8x128xf32>
    %570 = arith.mulf %550, %560 : vector<8x128xf32>
    %571 = arith.addf %569, %570 : vector<8x128xf32>
    %572 = math.tanh %571 : vector<8x128xf32>
    %573 = arith.mulf %568, %572 : vector<8x128xf32>
    %c0_276 = arith.constant 0 : index
    %c0_277 = arith.constant 0 : index
    %574 = vector.load %arg12[%c0_276, %c0_277] : memref<8x128xf32, #tpu.memory_space<vmem>>, vector<8x128xf32>
    tpu.vector_store %arg12[%c0_276, %c0_277], %573 {strides = array<i32>} : memref<8x128xf32, #tpu.memory_space<vmem>>, vector<8x128xf32>,
    %c0_278 = arith.constant 0 : index
    %c0_279 = arith.constant 0 : index
    %575 = vector.load %arg13[%c0_278, %c0_279] : memref<8x128xf32, #tpu.memory_space<vmem>>, vector<8x128xf32>
    tpu.vector_store %arg13[%c0_278, %c0_279], %571 {strides = array<i32>} : memref<8x128xf32, #tpu.memory_space<vmem>>, vector<8x128xf32>,
    %576 = arith.truncf %573 : vector<8x128xf32> to vector<8x128xbf16>
    %cst_280 = arith.constant dense<0.000000e+00> : vector<8x512xf32>
    %577 = tpu.matmul %576, %12, %cst_280 {dimension_numbers = #tpu.dot_dimension_numbers<[1], [0], [0], [1], [0, 0, 1, 1], [], []>} : vector<8x128xbf16>, vector<128x512xbf16>, vector<8x512xf32> -> vector<8x512xf32>
    %578 = arith.addf %535, %577 : vector<8x512xf32>
    %579 = vector.broadcast %14 : vector<1x512xf32> to vector<8x512xf32>
    %580 = arith.addf %578, %579 : vector<8x512xf32>
    %c0_281 = arith.constant 0 : index
    %c0_282 = arith.constant 0 : index
    %581 = vector.load %arg15[%c0_281, %c0_282] : memref<8x128xf32, #tpu.memory_space<vmem>>, vector<8x128xf32>
    %582 = vector.extract_strided_slice %580 {offsets = [0, 0], sizes = [8, 128], strides = [1, 1]} : vector<8x512xf32> to vector<8x128xf32>
    %cst_283 = arith.constant 5.000000e-01 : f32
    %583 = vector.broadcast %cst_283 : f32 to vector<8x128xf32>
    %584 = arith.mulf %583, %582 : vector<8x128xf32>
    %585 = math.tanh %584 : vector<8x128xf32>
    %cst_284 = arith.constant 1.000000e+00 : f32
    %586 = vector.broadcast %cst_284 : f32 to vector<8x128xf32>
    %587 = arith.addf %585, %586 : vector<8x128xf32>
    %cst_285 = arith.constant 5.000000e-01 : f32
    %588 = vector.broadcast %cst_285 : f32 to vector<8x128xf32>
    %589 = arith.mulf %588, %587 : vector<8x128xf32>
    %590 = vector.extract_strided_slice %580 {offsets = [0, 128], sizes = [8, 128], strides = [1, 1]} : vector<8x512xf32> to vector<8x128xf32>
    %cst_286 = arith.constant 5.000000e-01 : f32
    %591 = vector.broadcast %cst_286 : f32 to vector<8x128xf32>
    %592 = arith.mulf %591, %590 : vector<8x128xf32>
    %593 = math.tanh %592 : vector<8x128xf32>
    %cst_287 = arith.constant 1.000000e+00 : f32
    %594 = vector.broadcast %cst_287 : f32 to vector<8x128xf32>
    %595 = arith.addf %593, %594 : vector<8x128xf32>
    %cst_288 = arith.constant 5.000000e-01 : f32
    %596 = vector.broadcast %cst_288 : f32 to vector<8x128xf32>
    %597 = arith.mulf %596, %595 : vector<8x128xf32>
    %598 = vector.extract_strided_slice %580 {offsets = [0, 256], sizes = [8, 128], strides = [1, 1]} : vector<8x512xf32> to vector<8x128xf32>
    %599 = math.tanh %598 : vector<8x128xf32>
    %600 = vector.extract_strided_slice %580 {offsets = [0, 384], sizes = [8, 128], strides = [1, 1]} : vector<8x512xf32> to vector<8x128xf32>
    %cst_289 = arith.constant 5.000000e-01 : f32
    %601 = vector.broadcast %cst_289 : f32 to vector<8x128xf32>
    %602 = arith.mulf %601, %600 : vector<8x128xf32>
    %603 = math.tanh %602 : vector<8x128xf32>
    %cst_290 = arith.constant 1.000000e+00 : f32
    %604 = vector.broadcast %cst_290 : f32 to vector<8x128xf32>
    %605 = arith.addf %603, %604 : vector<8x128xf32>
    %cst_291 = arith.constant 5.000000e-01 : f32
    %606 = vector.broadcast %cst_291 : f32 to vector<8x128xf32>
    %607 = arith.mulf %606, %605 : vector<8x128xf32>
    %608 = arith.mulf %597, %581 : vector<8x128xf32>
    %609 = arith.mulf %589, %599 : vector<8x128xf32>
    %610 = arith.addf %608, %609 : vector<8x128xf32>
    %611 = math.tanh %610 : vector<8x128xf32>
    %612 = arith.mulf %607, %611 : vector<8x128xf32>
    %c0_292 = arith.constant 0 : index
    %c0_293 = arith.constant 0 : index
    %613 = vector.load %arg14[%c0_292, %c0_293] : memref<8x128xf32, #tpu.memory_space<vmem>>, vector<8x128xf32>
    tpu.vector_store %arg14[%c0_292, %c0_293], %612 {strides = array<i32>} : memref<8x128xf32, #tpu.memory_space<vmem>>, vector<8x128xf32>,
    %c0_294 = arith.constant 0 : index
    %c0_295 = arith.constant 0 : index
    %614 = vector.load %arg15[%c0_294, %c0_295] : memref<8x128xf32, #tpu.memory_space<vmem>>, vector<8x128xf32>
    tpu.vector_store %arg15[%c0_294, %c0_295], %610 {strides = array<i32>} : memref<8x128xf32, #tpu.memory_space<vmem>>, vector<8x128xf32>,
    %615 = arith.index_cast %532 : i32 to index
    %c0_296 = arith.constant 0 : index
    %616 = vector.load %arg17[%615, %c0_296] : memref<64x128xf32, #tpu.memory_space<vmem>>, vector<8x128xf32>
    tpu.vector_store %arg17[%615, %c0_296], %612 {strides = array<i32>} : memref<64x128xf32, #tpu.memory_space<vmem>>, vector<8x128xf32>,
    %c7_i32 = arith.constant 7 : i32
    %c8_i32_297 = arith.constant 8 : i32
    %617 = arith.muli %c7_i32, %c8_i32_297 : i32
    %618 = tpu.assume_multiple %617, 8 : i32
    %c0_298 = arith.constant 0 : index
    %c0_299 = arith.constant 0 : index
    %619 = vector.load %arg14[%c0_298, %c0_299] : memref<8x128xf32, #tpu.memory_space<vmem>>, vector<8x128xf32>
    %620 = arith.truncf %619 : vector<8x128xf32> to vector<8x128xbf16>
    %cst_300 = arith.constant dense<0.000000e+00> : vector<8x512xf32>
    %621 = tpu.matmul %620, %13, %cst_300 {dimension_numbers = #tpu.dot_dimension_numbers<[1], [0], [0], [1], [0, 0, 1, 1], [], []>} : vector<8x128xbf16>, vector<128x512xbf16>, vector<8x512xf32> -> vector<8x512xf32>
    %622 = arith.index_cast %618 : i32 to index
    %c0_301 = arith.constant 0 : index
    %623 = vector.load %arg16[%622, %c0_301] : memref<64x512xf32, #tpu.memory_space<vmem>>, vector<8x512xf32>
    %c0_302 = arith.constant 0 : index
    %c0_303 = arith.constant 0 : index
    %624 = vector.load %arg12[%c0_302, %c0_303] : memref<8x128xf32, #tpu.memory_space<vmem>>, vector<8x128xf32>
    %625 = arith.truncf %624 : vector<8x128xf32> to vector<8x128xbf16>
    %cst_304 = arith.constant dense<0.000000e+00> : vector<8x512xf32>
    %626 = tpu.matmul %625, %11, %cst_304 {dimension_numbers = #tpu.dot_dimension_numbers<[1], [0], [0], [1], [0, 0, 1, 1], [], []>} : vector<8x128xbf16>, vector<128x512xbf16>, vector<8x512xf32> -> vector<8x512xf32>
    %627 = arith.addf %623, %626 : vector<8x512xf32>
    %c0_305 = arith.constant 0 : index
    %c0_306 = arith.constant 0 : index
    %628 = vector.load %arg13[%c0_305, %c0_306] : memref<8x128xf32, #tpu.memory_space<vmem>>, vector<8x128xf32>
    %629 = vector.extract_strided_slice %627 {offsets = [0, 0], sizes = [8, 128], strides = [1, 1]} : vector<8x512xf32> to vector<8x128xf32>
    %cst_307 = arith.constant 5.000000e-01 : f32
    %630 = vector.broadcast %cst_307 : f32 to vector<8x128xf32>
    %631 = arith.mulf %630, %629 : vector<8x128xf32>
    %632 = math.tanh %631 : vector<8x128xf32>
    %cst_308 = arith.constant 1.000000e+00 : f32
    %633 = vector.broadcast %cst_308 : f32 to vector<8x128xf32>
    %634 = arith.addf %632, %633 : vector<8x128xf32>
    %cst_309 = arith.constant 5.000000e-01 : f32
    %635 = vector.broadcast %cst_309 : f32 to vector<8x128xf32>
    %636 = arith.mulf %635, %634 : vector<8x128xf32>
    %637 = vector.extract_strided_slice %627 {offsets = [0, 128], sizes = [8, 128], strides = [1, 1]} : vector<8x512xf32> to vector<8x128xf32>
    %cst_310 = arith.constant 5.000000e-01 : f32
    %638 = vector.broadcast %cst_310 : f32 to vector<8x128xf32>
    %639 = arith.mulf %638, %637 : vector<8x128xf32>
    %640 = math.tanh %639 : vector<8x128xf32>
    %cst_311 = arith.constant 1.000000e+00 : f32
    %641 = vector.broadcast %cst_311 : f32 to vector<8x128xf32>
    %642 = arith.addf %640, %641 : vector<8x128xf32>
    %cst_312 = arith.constant 5.000000e-01 : f32
    %643 = vector.broadcast %cst_312 : f32 to vector<8x128xf32>
    %644 = arith.mulf %643, %642 : vector<8x128xf32>
    %645 = vector.extract_strided_slice %627 {offsets = [0, 256], sizes = [8, 128], strides = [1, 1]} : vector<8x512xf32> to vector<8x128xf32>
    %646 = math.tanh %645 : vector<8x128xf32>
    %647 = vector.extract_strided_slice %627 {offsets = [0, 384], sizes = [8, 128], strides = [1, 1]} : vector<8x512xf32> to vector<8x128xf32>
    %cst_313 = arith.constant 5.000000e-01 : f32
    %648 = vector.broadcast %cst_313 : f32 to vector<8x128xf32>
    %649 = arith.mulf %648, %647 : vector<8x128xf32>
    %650 = math.tanh %649 : vector<8x128xf32>
    %cst_314 = arith.constant 1.000000e+00 : f32
    %651 = vector.broadcast %cst_314 : f32 to vector<8x128xf32>
    %652 = arith.addf %650, %651 : vector<8x128xf32>
    %cst_315 = arith.constant 5.000000e-01 : f32
    %653 = vector.broadcast %cst_315 : f32 to vector<8x128xf32>
    %654 = arith.mulf %653, %652 : vector<8x128xf32>
    %655 = arith.mulf %644, %628 : vector<8x128xf32>
    %656 = arith.mulf %636, %646 : vector<8x128xf32>
    %657 = arith.addf %655, %656 : vector<8x128xf32>
    %658 = math.tanh %657 : vector<8x128xf32>
    %659 = arith.mulf %654, %658 : vector<8x128xf32>
    %c0_316 = arith.constant 0 : index
    %c0_317 = arith.constant 0 : index
    %660 = vector.load %arg12[%c0_316, %c0_317] : memref<8x128xf32, #tpu.memory_space<vmem>>, vector<8x128xf32>
    tpu.vector_store %arg12[%c0_316, %c0_317], %659 {strides = array<i32>} : memref<8x128xf32, #tpu.memory_space<vmem>>, vector<8x128xf32>,
    %c0_318 = arith.constant 0 : index
    %c0_319 = arith.constant 0 : index
    %661 = vector.load %arg13[%c0_318, %c0_319] : memref<8x128xf32, #tpu.memory_space<vmem>>, vector<8x128xf32>
    tpu.vector_store %arg13[%c0_318, %c0_319], %657 {strides = array<i32>} : memref<8x128xf32, #tpu.memory_space<vmem>>, vector<8x128xf32>,
    %662 = arith.truncf %659 : vector<8x128xf32> to vector<8x128xbf16>
    %cst_320 = arith.constant dense<0.000000e+00> : vector<8x512xf32>
    %663 = tpu.matmul %662, %12, %cst_320 {dimension_numbers = #tpu.dot_dimension_numbers<[1], [0], [0], [1], [0, 0, 1, 1], [], []>} : vector<8x128xbf16>, vector<128x512xbf16>, vector<8x512xf32> -> vector<8x512xf32>
    %664 = arith.addf %621, %663 : vector<8x512xf32>
    %665 = vector.broadcast %14 : vector<1x512xf32> to vector<8x512xf32>
    %666 = arith.addf %664, %665 : vector<8x512xf32>
    %c0_321 = arith.constant 0 : index
    %c0_322 = arith.constant 0 : index
    %667 = vector.load %arg15[%c0_321, %c0_322] : memref<8x128xf32, #tpu.memory_space<vmem>>, vector<8x128xf32>
    %668 = vector.extract_strided_slice %666 {offsets = [0, 0], sizes = [8, 128], strides = [1, 1]} : vector<8x512xf32> to vector<8x128xf32>
    %cst_323 = arith.constant 5.000000e-01 : f32
    %669 = vector.broadcast %cst_323 : f32 to vector<8x128xf32>
    %670 = arith.mulf %669, %668 : vector<8x128xf32>
    %671 = math.tanh %670 : vector<8x128xf32>
    %cst_324 = arith.constant 1.000000e+00 : f32
    %672 = vector.broadcast %cst_324 : f32 to vector<8x128xf32>
    %673 = arith.addf %671, %672 : vector<8x128xf32>
    %cst_325 = arith.constant 5.000000e-01 : f32
    %674 = vector.broadcast %cst_325 : f32 to vector<8x128xf32>
    %675 = arith.mulf %674, %673 : vector<8x128xf32>
    %676 = vector.extract_strided_slice %666 {offsets = [0, 128], sizes = [8, 128], strides = [1, 1]} : vector<8x512xf32> to vector<8x128xf32>
    %cst_326 = arith.constant 5.000000e-01 : f32
    %677 = vector.broadcast %cst_326 : f32 to vector<8x128xf32>
    %678 = arith.mulf %677, %676 : vector<8x128xf32>
    %679 = math.tanh %678 : vector<8x128xf32>
    %cst_327 = arith.constant 1.000000e+00 : f32
    %680 = vector.broadcast %cst_327 : f32 to vector<8x128xf32>
    %681 = arith.addf %679, %680 : vector<8x128xf32>
    %cst_328 = arith.constant 5.000000e-01 : f32
    %682 = vector.broadcast %cst_328 : f32 to vector<8x128xf32>
    %683 = arith.mulf %682, %681 : vector<8x128xf32>
    %684 = vector.extract_strided_slice %666 {offsets = [0, 256], sizes = [8, 128], strides = [1, 1]} : vector<8x512xf32> to vector<8x128xf32>
    %685 = math.tanh %684 : vector<8x128xf32>
    %686 = vector.extract_strided_slice %666 {offsets = [0, 384], sizes = [8, 128], strides = [1, 1]} : vector<8x512xf32> to vector<8x128xf32>
    %cst_329 = arith.constant 5.000000e-01 : f32
    %687 = vector.broadcast %cst_329 : f32 to vector<8x128xf32>
    %688 = arith.mulf %687, %686 : vector<8x128xf32>
    %689 = math.tanh %688 : vector<8x128xf32>
    %cst_330 = arith.constant 1.000000e+00 : f32
    %690 = vector.broadcast %cst_330 : f32 to vector<8x128xf32>
    %691 = arith.addf %689, %690 : vector<8x128xf32>
    %cst_331 = arith.constant 5.000000e-01 : f32
    %692 = vector.broadcast %cst_331 : f32 to vector<8x128xf32>
    %693 = arith.mulf %692, %691 : vector<8x128xf32>
    %694 = arith.mulf %683, %667 : vector<8x128xf32>
    %695 = arith.mulf %675, %685 : vector<8x128xf32>
    %696 = arith.addf %694, %695 : vector<8x128xf32>
    %697 = math.tanh %696 : vector<8x128xf32>
    %698 = arith.mulf %693, %697 : vector<8x128xf32>
    %c0_332 = arith.constant 0 : index
    %c0_333 = arith.constant 0 : index
    %699 = vector.load %arg14[%c0_332, %c0_333] : memref<8x128xf32, #tpu.memory_space<vmem>>, vector<8x128xf32>
    tpu.vector_store %arg14[%c0_332, %c0_333], %698 {strides = array<i32>} : memref<8x128xf32, #tpu.memory_space<vmem>>, vector<8x128xf32>,
    %c0_334 = arith.constant 0 : index
    %c0_335 = arith.constant 0 : index
    %700 = vector.load %arg15[%c0_334, %c0_335] : memref<8x128xf32, #tpu.memory_space<vmem>>, vector<8x128xf32>
    tpu.vector_store %arg15[%c0_334, %c0_335], %696 {strides = array<i32>} : memref<8x128xf32, #tpu.memory_space<vmem>>, vector<8x128xf32>,
    %701 = arith.index_cast %618 : i32 to index
    %c0_336 = arith.constant 0 : index
    %702 = vector.load %arg17[%701, %c0_336] : memref<64x128xf32, #tpu.memory_space<vmem>>, vector<8x128xf32>
    tpu.vector_store %arg17[%701, %c0_336], %698 {strides = array<i32>} : memref<64x128xf32, #tpu.memory_space<vmem>>, vector<8x128xf32>,
    %c8_i32_337 = arith.constant 8 : i32
    %c0_338 = arith.constant 0 : index
    %c0_339 = arith.constant 0 : index
    %703 = vector.load %arg17[%c0_338, %c0_339] : memref<64x128xf32, #tpu.memory_space<vmem>>, vector<64x128xf32>
    %704 = arith.truncf %703 : vector<64x128xf32> to vector<64x128xbf16>
    %c0_340 = arith.constant 0 : index
    %c0_341 = arith.constant 0 : index
    %705 = vector.load %arg9[%c0_340, %c0_341] : memref<128x128xbf16, #tpu.memory_space<vmem>>, vector<128x128xbf16>
    %cst_342 = arith.constant dense<0.000000e+00> : vector<64x128xf32>
    %706 = tpu.matmul %704, %705, %cst_342 {dimension_numbers = #tpu.dot_dimension_numbers<[1], [0], [0], [1], [0, 0, 1, 1], [], []>} : vector<64x128xbf16>, vector<128x128xbf16>, vector<64x128xf32> -> vector<64x128xf32>
    %c0_343 = arith.constant 0 : index
    %c0_344 = arith.constant 0 : index
    %707 = vector.load %arg10[%c0_343, %c0_344] : memref<1x128xf32, #tpu.memory_space<vmem>>, vector<1x128xf32>
    %708 = vector.broadcast %707 : vector<1x128xf32> to vector<64x128xf32>
    %709 = arith.addf %706, %708 : vector<64x128xf32>
    %c0_345 = arith.constant 0 : index
    %c0_346 = arith.constant 0 : index
    %c0_347 = arith.constant 0 : index
    %710 = vector.load %arg11[%c0_345, %c0_346, %c0_347] : memref<1x64x128xf32, #tpu.memory_space<vmem>>, vector<1x64x128xf32>
    %711 = vector.shape_cast %710 : vector<1x64x128xf32> to vector<64x128xf32>
    %712 = vector.shape_cast %709 : vector<64x128xf32> to vector<1x64x128xf32>
    tpu.vector_store %arg11[%c0_345, %c0_346, %c0_347], %712 {strides = array<i32>} : memref<1x64x128xf32, #tpu.memory_space<vmem>>, vector<1x64x128xf32>,
    return
  }
  func.func @transform_0(%arg0: i32, %arg1: i32) -> (i32, i32, i32) {
    %c0_i32 = arith.constant 0 : i32
    %c0_i32_0 = arith.constant 0 : i32
    return %arg0, %arg1, %c0_i32 : i32, i32, i32
  }
  func.func @transform_1(%arg0: i32, %arg1: i32) -> (i32, i32) {
    %c0_i32 = arith.constant 0 : i32
    %c0_i32_0 = arith.constant 0 : i32
    %c0_i32_1 = arith.constant 0 : i32
    return %c0_i32, %c0_i32_0 : i32, i32
  }
  func.func @transform_2(%arg0: i32, %arg1: i32) -> (i32, i32) {
    %c0_i32 = arith.constant 0 : i32
    %c0_i32_0 = arith.constant 0 : i32
    %c0_i32_1 = arith.constant 0 : i32
    return %c0_i32, %c0_i32_0 : i32, i32
  }
  func.func @transform_3(%arg0: i32, %arg1: i32) -> (i32, i32) {
    %c0_i32 = arith.constant 0 : i32
    %c0_i32_0 = arith.constant 0 : i32
    %c0_i32_1 = arith.constant 0 : i32
    return %c0_i32, %c0_i32_0 : i32, i32
  }
  func.func @transform_4(%arg0: i32, %arg1: i32) -> (i32, i32) {
    %c0_i32 = arith.constant 0 : i32
    %c0_i32_0 = arith.constant 0 : i32
    %c0_i32_1 = arith.constant 0 : i32
    return %c0_i32, %c0_i32_0 : i32, i32
  }
  func.func @transform_5(%arg0: i32, %arg1: i32) -> (i32, i32) {
    %c0_i32 = arith.constant 0 : i32
    %c0_i32_0 = arith.constant 0 : i32
    %c0_i32_1 = arith.constant 0 : i32
    return %c0_i32, %c0_i32_0 : i32, i32
  }
  func.func @transform_6(%arg0: i32, %arg1: i32) -> (i32, i32) {
    %c0_i32 = arith.constant 0 : i32
    %c0_i32_0 = arith.constant 0 : i32
    %c0_i32_1 = arith.constant 0 : i32
    return %c0_i32, %c0_i32_0 : i32, i32
  }
  func.func @transform_7(%arg0: i32, %arg1: i32) -> (i32, i32) {
    %c0_i32 = arith.constant 0 : i32
    %c0_i32_0 = arith.constant 0 : i32
    %c0_i32_1 = arith.constant 0 : i32
    return %c0_i32, %c0_i32_0 : i32, i32
  }
  func.func @transform_8(%arg0: i32, %arg1: i32) -> (i32, i32) {
    %c0_i32 = arith.constant 0 : i32
    %c0_i32_0 = arith.constant 0 : i32
    %c0_i32_1 = arith.constant 0 : i32
    return %c0_i32, %c0_i32_0 : i32, i32
  }
  func.func @transform_9(%arg0: i32, %arg1: i32) -> (i32, i32, i32) {
    %c0_i32 = arith.constant 0 : i32
    %c0_i32_0 = arith.constant 0 : i32
    return %arg0, %arg1, %c0_i32 : i32, i32, i32
  }
}

</mosaic_0001>

<bundles_post_ra>
// kernel: tpu_custom_call.1
= control target key start
LH: loop header
LB: loop body
LE: loop exit
PB: predicated region body
PF: predicated region fallthrough
CT: control target
= control target key end

     0   :  { %14 = vsyncpa [#allocation9], 0  ;;  %s6421_s0 = inlined_call_operand.hbm [shape: bf16[1,64,63], index: 0, kind: input, shape index: {}]   ;;  %s6422_s1 = inlined_call_operand.hbm [shape: bf16[63,512], index: 1, kind: input, shape index: {}]   ;;  %s6423_s2 = inlined_call_operand.hbm [shape: bf16[128,512], index: 2, kind: input, shape index: {}]   ;;  %s6424_s3 = inlined_call_operand.vmem [shape: f32[1,512], index: 3, kind: input, shape index: {}]   ;;  %s6425_s4 = inlined_call_operand.hbm [shape: bf16[128,512], index: 4, kind: input, shape index: {}]   ;;  %s6426_s5 = inlined_call_operand.hbm [shape: bf16[128,512], index: 5, kind: input, shape index: {}]   ;;  %s6427_s6 = inlined_call_operand.vmem [shape: f32[1,512], index: 6, kind: input, shape index: {}]   ;;  %s6428_s7 = inlined_call_operand.hbm [shape: bf16[128,128], index: 7, kind: input, shape index: {}]   ;;  %s6429_s8 = inlined_call_operand.vmem [shape: f32[1,128], index: 8, kind: input, shape index: {}]   ;;  %s6430_s9 = inlined_call_operand.hbm [shape: f32[1,64,128], index: 9, kind: output, shape index: {}]  }
   0x1   :  { %15 = vsyncpa [#allocation12], 0 }
   0x2   :  { %16 = vsyncpa [#allocation15], 0 }
   0x3   :  { %17 = vsyncpa [#allocation18], 0 }
   0x4   :  { %18 = vsyncpa [#allocation10], 0  ;;  %s4600_s30 = smov [#allocation11]  }
   0x5   :  { %s36_s10 = sshll.u32 %s4600_s30, 4  ;;  %s37_s10 = int_to_ptr.vmem [resolvable:$true] %s36_s10 }
   0x6   :  { %s4458_s11 = scalar_lea.vmem %s37_s10, 2048  ;;  %p4463_p1 = scmp.lt.s32.totalorder %s37_s10, %s37_s10 }
   0x7   :  { %p4459_p0 = scmp.ne.s32.totalorder %s37_s10, %s4458_s11  ;;  %p4464_p2 = scmp.lt.s32.totalorder %s4458_s11, %s4458_s11 }
   0x9   :  { %p4465_p3 = por %p4464_p2, %p4463_p1 }
   0xb   :  { %p4466_p4 = pnand %p4465_p3, %p4459_p0 }
   0xd   :  { %4469 = shalt.err (!%p4466_p4)
}
   0xe   :  { %s4601_s12 = smov 256   ;;  %s4602_s13 = smov 16  }
   0xf   :  { %42 = dma.hbm_to_vmem [thread:$0]  %s6422_s1, 2048, %s37_s10, [#allocation12], %s4601_s12, %s4601_s12, %s4602_s13  }
  0x10   :  { %s4603_s16 = smov [#allocation14]   ;;  %s4604_s18 = smov [#allocation8]  }
  0x11   :  { %s62_s17 = sshll.u32 %s4603_s16, 4  ;;  %s24_s19 = sshll.u32 %s4604_s18, 4  ;;  %s63_s17 = int_to_ptr.vmem [resolvable:$true] %s62_s17  ;;  %s25_s19 = int_to_ptr.vmem [resolvable:$true] %s24_s19 }
  0x12   :  { %s4478_s20 = scalar_lea.vmem %s63_s17, 4096  ;;  %p4483_p6 = scmp.lt.s32.totalorder %s63_s17, %s63_s17 }
  0x13   :  { %p4479_p5 = scmp.ne.s32.totalorder %s63_s17, %s4478_s20  ;;  %p4484_p7 = scmp.lt.s32.totalorder %s4478_s20, %s4478_s20 }
  0x15   :  { %p4485_p8 = por %p4484_p7, %p4483_p6 }
  0x17   :  { %p4486_p9 = pnand %p4485_p8, %p4479_p5 }
  0x19   :  { %4489 = shalt.err (!%p4486_p9)
}
  0x1a   :  { %68 = dma.hbm_to_vmem [thread:$0]  %s6425_s4, 4096, %s63_s17, [#allocation15], %s4601_s12, %s4601_s12, %s4602_s13  }
  0x1b   :  { %s4498_s1 = scalar_lea.vmem %s25_s19, 512  ;;  %p4503_p11 = scmp.lt.s32.totalorder %s25_s19, %s25_s19 }
  0x1c   :  { %p4499_p10 = scmp.ne.s32.totalorder %s25_s19, %s4498_s1  ;;  %p4504_p12 = scmp.lt.s32.totalorder %s4498_s1, %s4498_s1 }
  0x1e   :  { %p4505_p13 = por %p4504_p12, %p4503_p11 }
  0x20   :  { %p4506_p0 = pnand %p4505_p13, %p4499_p10 }
  0x22   :  { %4509 = shalt.err (!%p4506_p0)
}
  0x23   :  { %s4605_s23 = smov 64   ;;  %s4606_s24 = smov 4  }
  0x24   :  { %30 = dma.hbm_to_vmem [thread:$0]  %s6421_s0, 512, %s25_s19, [#allocation9], %s4605_s23, %s4605_s23, %s4606_s24  }
  0x25   :  { %s4607_s27 = smov [#allocation13]   ;;  %s4608_s4 = smov [#allocation16]  }
  0x26   :  { %s48_s28 = sshll.u32 %s4607_s27, 4  ;;  %s74_s29 = sshll.u32 %s4608_s4, 4  ;;  %s49_s28 = int_to_ptr.vmem [resolvable:$true] %s48_s28  ;;  %s75_s29 = int_to_ptr.vmem [resolvable:$true] %s74_s29 }
  0x27   :  { %s4518_s30 = scalar_lea.vmem %s49_s28, 4096  ;;  %p4523_p2 = scmp.lt.s32.totalorder %s49_s28, %s49_s28 }
  0x28   :  { %p4519_p1 = scmp.ne.s32.totalorder %s49_s28, %s4518_s30  ;;  %p4524_p3 = scmp.lt.s32.totalorder %s4518_s30, %s4518_s30 }
  0x2a   :  { %p4525_p4 = por %p4524_p3, %p4523_p2 }
  0x2c   :  { %p4526_p5 = pnand %p4525_p4, %p4519_p1 }
  0x2e   :  { %4529 = shalt.err (!%p4526_p5)
}
  0x2f   :  { %54 = dma.hbm_to_vmem [thread:$0]  %s6423_s2, 4096, %s49_s28, [#allocation12], %s4601_s12, %s4601_s12, %s4602_s13  }
  0x30   :  { %s4538_s0 = scalar_lea.vmem %s75_s29, 4096  ;;  %p4543_p7 = scmp.lt.s32.totalorder %s75_s29, %s75_s29 }
  0x31   :  { %p4539_p6 = scmp.ne.s32.totalorder %s75_s29, %s4538_s0  ;;  %p4544_p8 = scmp.lt.s32.totalorder %s4538_s0, %s4538_s0 }
  0x33   :  { %p4545_p9 = por %p4544_p8, %p4543_p7 }
  0x35   :  { %p4546_p10 = pnand %p4545_p9, %p4539_p6 }
  0x37   :  { %4549 = shalt.err (!%p4546_p10)
}
  0x38   :  { %80 = dma.hbm_to_vmem [thread:$0]  %s6426_s5, 4096, %s75_s29, [#allocation15], %s4601_s12, %s4601_s12, %s4602_s13  }
  0x39   :  { %s4609_s16 = smov [#allocation17]  }
  0x3a   :  { %s88_s17 = sshll.u32 %s4609_s16, 4  ;;  %s89_s17 = int_to_ptr.vmem [resolvable:$true] %s88_s17 }
  0x3b   :  { %s4558_s18 = scalar_lea.vmem %s89_s17, 1024  ;;  %p4563_p12 = scmp.lt.s32.totalorder %s89_s17, %s89_s17 }
  0x3c   :  { %p4559_p11 = scmp.ne.s32.totalorder %s89_s17, %s4558_s18  ;;  %p4564_p13 = scmp.lt.s32.totalorder %s4558_s18, %s4558_s18 }
  0x3e   :  { %p4565_p0 = por %p4564_p13, %p4563_p12 }
  0x40   :  { %p4566_p1 = pnand %p4565_p0, %p4559_p11 }
  0x42   :  { %4569 = shalt.err (!%p4566_p1)
}
  0x43   :  { %94 = dma.hbm_to_vmem [thread:$0]  %s6428_s7, 1024, %s89_s17, [#allocation18], %s4605_s23, %s4605_s23, %s4606_s24  }
  0x44   :  { %4590 = dma.done.wait [#allocation9], 512  }
  0x45   :  { %4591 = vsyncadd [#allocation9], 4294966784 }
  0x46   :  { %4592 = dma.done.wait [#allocation12], 6144  }
  0x47   :  { %4593 = vsyncadd [#allocation12], 4294961152 }
  0x48   :  { %4594 = dma.done.wait [#allocation15], 8192  }
  0x49   :  { %4595 = vsyncadd [#allocation15], 4294959104 }
  0x4a   :  { %4596 = dma.done.wait [#allocation18], 1024  }
  0x4b   :  { %4597 = vsyncadd [#allocation18], 4294966272  ;;  %v6433_v0 = vmov 0   ;;  %vm279_vm0 = vcmask 1046528   ;;  %vm280_vm1 = vcmask 1047552   ;;  %v4611_v1 = vmov 65535  }
  0x4c   :  { %327 = vmatprep.mubr.bf16.mxu1 %v6433_v0  ;;  %773 = vmatprep.mubr.bf16.mxu0 %v6433_v0  ;;  %v281_v2 = vsel %vm279_vm0, 4294967295, %v4611_v1  ;;  %v4704_v3 = vld [vmem:[#allocation13 + $0xe4] ss:$16 sps:$4 sm:$0xff]   ;;  %v4706_v4 = vld [vmem:[#allocation13 + $0xe0] ss:$16 sps:$4 sm:$0xff]   ;;  %vm266_vm2 = vcmask 515072  }
  0x4d   :  { %v282_v5 = vsel %vm280_vm1, %v281_v2, 0  ;;  %741 = vmatprep.subr.bf16.mxu0 %v4704_v3  ;;  %v3921_v6 = vld [vmem:[#allocation11 + $0x64] ss:$16 sps:$4 sm:$0xff]   ;;  %v3923_v7 = vld [vmem:[#allocation11 + $0x60] ss:$16 sps:$4 sm:$0xff]   ;;  %v3955_v37 = vld [vmem:[#allocation8 + $0x8] sm:$0xff]  }
  0x4e   :  { %742 = vmatpush1.bf16.msra.mxu0 %v4706_v4  ;;  %v4710_v8 = vld [vmem:[#allocation13 + $0xc4] ss:$16 sps:$4 sm:$0xff]   ;;  %v4712_v9 = vld [vmem:[#allocation13 + $0xc0] ss:$16 sps:$4 sm:$0xff]   ;;  %v287_v10 = vand.u32 %v3921_v6, %v282_v5  ;;  %v284_v11 = vand.u32 %v3923_v7, %v282_v5  ;;  %v3948_v23 = vld [vmem:[#allocation11 + $0x6c] ss:$16 sps:$4 sm:$0xff]  }
  0x4f   :  { %v3927_v12 = vld [vmem:[#allocation11 + $0x44] ss:$16 sps:$4 sm:$0xff]   ;;  %743 = vmatprep.subr.bf16.mxu0 %v4710_v8  ;;  %v3929_v13 = vld [vmem:[#allocation11 + $0x40] ss:$16 sps:$4 sm:$0xff]   ;;  %v3946_v25 = vld [vmem:[#allocation11 + $0x68] ss:$16 sps:$4 sm:$0xff]   ;;  %v293_v26 = vand.u32 %v3948_v23, %v282_v5 }
  0x50   :  { %303 = vmatprep.subr.bf16.mxu1 %v287_v10  ;;  %v4715_v14 = vld [vmem:[#allocation13 + $0xa4] ss:$16 sps:$4 sm:$0xff]   ;;  %v4718_v15 = vld [vmem:[#allocation13 + $0xa0] ss:$16 sps:$4 sm:$0xff]   ;;  %v290_v29 = vand.u32 %v3946_v25, %v282_v5  ;;  %v3958_v32 = vld [vmem:[#allocation11 + $0x4c] ss:$16 sps:$4 sm:$0xff]  }
  0x51   :  { %304 = vmatpush1.bf16.msra.mxu1 %v284_v11  ;;  %v3933_v16 = vld [vmem:[#allocation11 + $0x24] ss:$16 sps:$4 sm:$0xff]   ;;  %v3935_v18 = vld [vmem:[#allocation11 + $0x20] ss:$16 sps:$4 sm:$0xff]   ;;  %v3956_v34 = vld [vmem:[#allocation11 + $0x48] ss:$16 sps:$4 sm:$0xff]  }
  0x52   :  { %744 = vmatpush1.bf16.msra.mxu0 %v4712_v9  ;;  %305 = vmatprep.subr.bf16.mxu1 %v3927_v12  ;;  %v4721_v17 = vld [vmem:[#allocation13 + $0x84] ss:$16 sps:$4 sm:$0xff]   ;;  %v4724_v19 = vld [vmem:[#allocation13 + $0x80] ss:$16 sps:$4 sm:$0xff]   ;;  %v3965_v36 = vld [vmem:[#allocation11 + $0x2c] ss:$16 sps:$4 sm:$0xff]  }
  0x53   :  { %745 = vmatprep.subr.bf16.mxu0 %v4715_v14  ;;  %v3939_v20 = vld [vmem:[#allocation11 + $0x4] ss:$16 sps:$4 sm:$0xff]   ;;  %v3941_v22 = vld [vmem:[#allocation11] ss:$16 sps:$4 sm:$0xff]   ;;  %v3963_v39 = vld [vmem:[#allocation11 + $0x28] ss:$16 sps:$4 sm:$0xff]  }
  0x54   :  { %v4727_v21 = vld [vmem:[#allocation13 + $0x64] ss:$16 sps:$4 sm:$0xff]   ;;  %v4730_v24 = vld [vmem:[#allocation13 + $0x60] ss:$16 sps:$4 sm:$0xff]   ;;  %v3969_v40 = vld [vmem:[#allocation11 + $0xc] ss:$16 sps:$4 sm:$0xff]  }
  0x55   :  { %306 = vmatpush1.bf16.msra.mxu1 %v3929_v13  ;;  %v4733_v27 = vld [vmem:[#allocation13 + $0x44] ss:$16 sps:$4 sm:$0xff]   ;;  %v4736_v30 = vld [vmem:[#allocation13 + $0x40] ss:$16 sps:$4 sm:$0xff]   ;;  %v3967_v41 = vld [vmem:[#allocation11 + $0x8] ss:$16 sps:$4 sm:$0xff]  }
  0x56   :  { %746 = vmatpush1.bf16.msra.mxu0 %v4718_v15  ;;  %307 = vmatprep.subr.bf16.mxu1 %v3933_v16  ;;  %v3945_v28 = vld [vmem:[#allocation8] sm:$0xff]   ;;  %v4756_v42 = vld [vmem:[#allocation13 + $0xec] ss:$16 sps:$4 sm:$0xff]   ;;  %v6431_v43 = vmov 0.0|0.0   ;;  %v3962_v44 = vld [vmem:[#allocation8 + $0x10] sm:$0xff]  }
  0x57   :  { %747 = vmatprep.subr.bf16.mxu0 %v4721_v17  ;;  %v4739_v31 = vld [vmem:[#allocation13 + $0x24] ss:$16 sps:$4 sm:$0xff]   ;;  %v4742_v33 = vld [vmem:[#allocation13 + $0x20] ss:$16 sps:$4 sm:$0xff]   ;;  %v3966_v45 = vld [vmem:[#allocation8 + $0x18] sm:$0xff]  }
  0x58   :  { %v4745_v35 = vld [vmem:[#allocation13 + $0x4] ss:$16 sps:$4 sm:$0xff]   ;;  %v4750_v38 = vld [vmem:[#allocation13] ss:$16 sps:$4 sm:$0xff]   ;;  %v4765_v46 = vld [vmem:[#allocation13 + $0xe8] ss:$16 sps:$4 sm:$0xff]  }
  0x59   :  { %308 = vmatpush1.bf16.msra.mxu1 %v3935_v18  ;;  %v4767_v47 = vld [vmem:[#allocation13 + $0xcc] ss:$16 sps:$4 sm:$0xff]   ;;  %v4769_v48 = vld [vmem:[#allocation13 + $0xc8] ss:$16 sps:$4 sm:$0xff]   ;;  %v4820_v61 = vld [vmem:[#allocation14 + $0xe4] ss:$16 sps:$4 sm:$0xff]  }
  0x5a   :  { %748 = vmatpush1.bf16.msra.mxu0 %v4724_v19  ;;  %309 = vmatprep.subr.bf16.mxu1 %v3939_v20  ;;  %v4772_v49 = vld [vmem:[#allocation13 + $0xac] ss:$16 sps:$4 sm:$0xff]   ;;  %v4777_v50 = vld [vmem:[#allocation13 + $0xa8] ss:$16 sps:$4 sm:$0xff]   ;;  %v4824_v63 = vld [vmem:[#allocation14 + $0xe0] ss:$16 sps:$4 sm:$0xff]  }
  0x5b   :  { %749 = vmatprep.subr.bf16.mxu0 %v4727_v21  ;;  %v4779_v51 = vld [vmem:[#allocation13 + $0x8c] ss:$16 sps:$4 sm:$0xff]   ;;  %v4785_v52 = vld [vmem:[#allocation13 + $0x88] ss:$16 sps:$4 sm:$0xff]   ;;  %v4832_v2 = vld [vmem:[#allocation14 + $0xc4] ss:$16 sps:$4 sm:$0xff]  }
  0x5c   :  { %v4789_v53 = vld [vmem:[#allocation13 + $0x6c] ss:$16 sps:$4 sm:$0xff]   ;;  %v4792_v54 = vld [vmem:[#allocation13 + $0x68] ss:$16 sps:$4 sm:$0xff]   ;;  %6719 = vst [vmem:[#allocation25_spill] sm:$0xff] %v4832_v2 }
  0x5d   :  { %310 = vmatpush1.bf16.msra.mxu1 %v3941_v22  ;;  %v4795_v55 = vld [vmem:[#allocation13 + $0x4c] ss:$16 sps:$4 sm:$0xff]   ;;  %v4799_v56 = vld [vmem:[#allocation13 + $0x48] ss:$16 sps:$4 sm:$0xff]   ;;  %v4836_v6 = vld [vmem:[#allocation14 + $0xc0] ss:$16 sps:$4 sm:$0xff]  }
  0x5e   :  { %750 = vmatpush1.bf16.msra.mxu0 %v4730_v24  ;;  %376 = vmatprep.subr.bf16.mxu1 %v293_v26  ;;  %v4803_v57 = vld [vmem:[#allocation13 + $0x2c] ss:$16 sps:$4 sm:$0xff]   ;;  %v4806_v58 = vld [vmem:[#allocation13 + $0x28] ss:$16 sps:$4 sm:$0xff]   ;;  %6721 = vst [vmem:[#allocation27_spill] sm:$0xff] %v4836_v6 }
  0x5f   :  { %751 = vmatprep.subr.bf16.mxu0 %v4733_v27  ;;  %v4809_v59 = vld [vmem:[#allocation13 + $0xc] ss:$16 sps:$4 sm:$0xff]   ;;  %v4813_v60 = vld [vmem:[#allocation13 + $0x8] ss:$16 sps:$4 sm:$0xff]   ;;  %v4844_v10 = vld [vmem:[#allocation14 + $0xa4] ss:$16 sps:$4 sm:$0xff]  }
  0x60   :  { %3753 = vmatmul.mubr.msk.bf16.vlgmr.msra.gmra.mxu1 %vm266_vm2, %v3945_v28  ;;  %v4822_v62 = vld [vmem:[#allocation14 + $0xec] ss:$16 sps:$4 sm:$0xff]   ;;  %v4826_v1 = vld [vmem:[#allocation14 + $0xe8] ss:$16 sps:$4 sm:$0xff]   ;;  %6723 = vst [vmem:[#allocation29_spill] sm:$0xff] %v4844_v10 }
  0x61   :  { %377 = vmatpush1.bf16.msra.mxu1 %v290_v29  ;;  %337 = vmatprep.mubr.bf16.mxu1 %v6433_v0  ;;  %v4834_v5 = vld [vmem:[#allocation14 + $0xcc] ss:$16 sps:$4 sm:$0xff]   ;;  %v4838_v7 = vld [vmem:[#allocation14 + $0xc8] ss:$16 sps:$4 sm:$0xff]   ;;  %v4848_v12 = vld [vmem:[#allocation14 + $0xa0] ss:$16 sps:$4 sm:$0xff]  }
  0x62   :  { %752 = vmatpush1.bf16.msra.mxu0 %v4736_v30  ;;  %378 = vmatprep.subr.bf16.mxu1 %v3958_v32  ;;  %6720 = vst [vmem:[#allocation26_spill] sm:$0xff] %v4834_v5  ;;  %6722 = vst [vmem:[#allocation28_spill] sm:$0xff] %v4838_v7  ;;  %v4846_v11 = vld [vmem:[#allocation14 + $0xac] ss:$16 sps:$4 sm:$0xff]   ;;  %v4850_v13 = vld [vmem:[#allocation14 + $0xa8] ss:$16 sps:$4 sm:$0xff]  }
  0x63   :  { %753 = vmatprep.subr.bf16.mxu0 %v4739_v31  ;;  %6724 = vst [vmem:[#allocation30_spill] sm:$0xff] %v4846_v11  ;;  %6725 = vst [vmem:[#allocation31_spill] sm:$0xff] %v4848_v12  ;;  %v4856_v16 = vld [vmem:[#allocation14 + $0x84] ss:$16 sps:$4 sm:$0xff]   ;;  %v4858_v18 = vld [vmem:[#allocation14 + $0x8c] ss:$16 sps:$4 sm:$0xff]  }
  0x64   :  { %6726 = vst [vmem:[#allocation32_spill] sm:$0xff] %v4850_v13  ;;  %6727 = vst [vmem:[#allocation33_spill] sm:$0xff] %v4856_v16  ;;  %v4860_v20 = vld [vmem:[#allocation14 + $0x80] ss:$16 sps:$4 sm:$0xff]   ;;  %v4862_v22 = vld [vmem:[#allocation14 + $0x88] ss:$16 sps:$4 sm:$0xff]  }
  0x65   :  { %379 = vmatpush1.bf16.msra.mxu1 %v3956_v34  ;;  %6728 = vst [vmem:[#allocation34_spill] sm:$0xff] %v4858_v18  ;;  %6729 = vst [vmem:[#allocation35_spill] sm:$0xff] %v4860_v20  ;;  %v4868_v23 = vld [vmem:[#allocation14 + $0x64] ss:$16 sps:$4 sm:$0xff]   ;;  %v4870_v25 = vld [vmem:[#allocation14 + $0x6c] ss:$16 sps:$4 sm:$0xff]  }
  0x66   :  { %754 = vmatpush1.bf16.msra.mxu0 %v4742_v33  ;;  %380 = vmatprep.subr.bf16.mxu1 %v3965_v36  ;;  %6730 = vst [vmem:[#allocation36_spill] sm:$0xff] %v4862_v22  ;;  %6731 = vst [vmem:[#allocation37_spill] sm:$0xff] %v4868_v23  ;;  %v4872_v26 = vld [vmem:[#allocation14 + $0x60] ss:$16 sps:$4 sm:$0xff]   ;;  %v4880_v29 = vld [vmem:[#allocation14 + $0x44] ss:$16 sps:$4 sm:$0xff]  }
  0x67   :  { %755 = vmatprep.subr.bf16.mxu0 %v4745_v35  ;;  %6732 = vst [vmem:[#allocation38_spill] sm:$0xff] %v4870_v25  ;;  %6733 = vst [vmem:[#allocation39_spill] sm:$0xff] %v4872_v26  ;;  %v4882_v32 = vld [vmem:[#allocation14 + $0x4c] ss:$16 sps:$4 sm:$0xff]   ;;  %v4884_v34 = vld [vmem:[#allocation14 + $0x40] ss:$16 sps:$4 sm:$0xff]  }
  0x68   :  { %3754 = vmatmul.mubr.msk.bf16.gmra.mxu1 %vm266_vm2, %v3955_v37  ;;  %6735 = vst [vmem:[#allocation41_spill] sm:$0xff] %v4880_v29  ;;  %6736 = vst [vmem:[#allocation42_spill] sm:$0xff] %v4882_v32  ;;  %v4886_v36 = vld [vmem:[#allocation14 + $0x48] ss:$16 sps:$4 sm:$0xff]  }
  0x69   :  { %347 = vmatprep.mubr.bf16.mxu1 %v6433_v0  ;;  %381 = vmatpush1.bf16.msra.mxu1 %v3963_v39  ;;  %6737 = vst [vmem:[#allocation43_spill] sm:$0xff] %v4884_v34  ;;  %6738 = vst [vmem:[#allocation44_spill] sm:$0xff] %v4886_v36  ;;  %v4894_v39 = vld [vmem:[#allocation14 + $0x2c] ss:$16 sps:$4 sm:$0xff]  }
  0x6a   :  { %756 = vmatpush1.bf16.msra.mxu0 %v4750_v38  ;;  %382 = vmatprep.subr.bf16.mxu1 %v3969_v40  ;;  %6740 = vst [vmem:[#allocation46_spill] sm:$0xff] %v4894_v39  ;;  %v4896_v40 = vld [vmem:[#allocation14 + $0x20] ss:$16 sps:$4 sm:$0xff]  }
  0x6b   :  { %1009 = vmatprep.subr.bf16.mxu0 %v4820_v61  ;;  %6741 = vst [vmem:[#allocation47_spill] sm:$0xff] %v4896_v40 }
  0x6d   :  { %774 = vmatmul.mubr.bf16.vlgmr.msra.gmra.mxu0 %v6431_v43  ;;  %383 = vmatpush1.bf16.msra.mxu1 %v3967_v41  ;;  %v4898_v41 = vld [vmem:[#allocation14 + $0x28] ss:$16 sps:$4 sm:$0xff]  }
  0x6e   :  { %1041 = vmatprep.mubr.bf16.mxu0 %v6433_v0  ;;  %782 = vmatprep.subr.bf16.mxu1 %v4756_v42  ;;  %6742 = vst [vmem:[#allocation48_spill] sm:$0xff] %v4898_v41 }
  0x6f   :  { %1010 = vmatpush1.bf16.msra.mxu0 %v4824_v63 }
  0x70   :  { %3755 = vmatmul.mubr.msk.bf16.gmra.mxu1 %vm266_vm2, %v3962_v44  ;;  %1011 = vmatprep.subr.bf16.mxu0 %v4832_v2 }
  0x71   :  { %357 = vmatprep.mubr.bf16.mxu1 %v6433_v0 }
  0x73   :  { %1012 = vmatpush1.bf16.msra.mxu0 %v4836_v6 }
  0x74   :  { %1013 = vmatprep.subr.bf16.mxu0 %v4844_v10 }
  0x77   :  { %1014 = vmatpush1.bf16.msra.mxu0 %v4848_v12 }
  0x78   :  { %3756 = vmatmul.mubr.msk.bf16.gmra.mxu1 %vm266_vm2, %v3966_v45  ;;  %1015 = vmatprep.subr.bf16.mxu0 %v4856_v16 }
  0x79   :  { %400 = vmatprep.mubr.bf16.mxu1 %v6433_v0 }
  0x7b   :  { %1016 = vmatpush1.bf16.msra.mxu0 %v4860_v20 }
  0x7c   :  { %1017 = vmatprep.subr.bf16.mxu0 %v4868_v23 }
  0x7f   :  { %1018 = vmatpush1.bf16.msra.mxu0 %v4872_v26 }
  0x80   :  { %3757 = vmatmul.mubr.msk.bf16.vlgmr.msra.gmra.mxu1 %vm266_vm2, %v3945_v28  ;;  %v4874_v28 = vld [vmem:[#allocation14 + $0x68] ss:$16 sps:$4 sm:$0xff]   ;;  %1019 = vmatprep.subr.bf16.mxu0 %v4880_v29 }
  0x81   :  { %783 = vmatpush1.bf16.msra.mxu1 %v4765_v46  ;;  %410 = vmatprep.mubr.bf16.mxu1 %v6433_v0  ;;  %6734 = vst [vmem:[#allocation40_spill] sm:$0xff] %v4874_v28 }
  0x82   :  { %784 = vmatprep.subr.bf16.mxu1 %v4767_v47 }
  0x83   :  { %1020 = vmatpush1.bf16.msra.mxu0 %v4884_v34 }
  0x85   :  { %785 = vmatpush1.bf16.msra.mxu1 %v4769_v48 }
  0x86   :  { %786 = vmatprep.subr.bf16.mxu1 %v4772_v49 }
  0x88   :  { %3758 = vmatmul.mubr.msk.bf16.gmra.mxu1 %vm266_vm2, %v3955_v37  ;;  %v4892_v37 = vld [vmem:[#allocation14 + $0x24] ss:$16 sps:$4 sm:$0xff]  }
  0x89   :  { %787 = vmatpush1.bf16.msra.mxu1 %v4777_v50  ;;  %420 = vmatprep.mubr.bf16.mxu1 %v6433_v0  ;;  %6739 = vst [vmem:[#allocation45_spill] sm:$0xff] %v4892_v37 }
  0x8a   :  { %788 = vmatprep.subr.bf16.mxu1 %v4779_v51  ;;  %1021 = vmatprep.subr.bf16.mxu0 %v4892_v37 }
  0x8b   :  { %1022 = vmatpush1.bf16.msra.mxu0 %v4896_v40  ;;  %v4918_v40 = vld [vmem:[#allocation16 + $0xec] ss:$16 sps:$4 sm:$0xff]  }
  0x8c   :  { %6748 = vst [vmem:[#allocation54_spill] sm:$0xff] %v4918_v40 }
  0x8d   :  { %789 = vmatpush1.bf16.msra.mxu1 %v4785_v52 }
  0x8e   :  { %790 = vmatprep.subr.bf16.mxu1 %v4789_v53 }
  0x90   :  { %3759 = vmatmul.mubr.msk.bf16.gmra.mxu1 %vm266_vm2, %v3962_v44  ;;  %v4904_v44 = vld [vmem:[#allocation14 + $0x4] ss:$16 sps:$4 sm:$0xff]  }
  0x91   :  { %791 = vmatpush1.bf16.msra.mxu1 %v4792_v54  ;;  %430 = vmatprep.mubr.bf16.mxu1 %v6433_v0  ;;  %6743 = vst [vmem:[#allocation49_spill] sm:$0xff] %v4904_v44 }
  0x92   :  { %792 = vmatprep.subr.bf16.mxu1 %v4795_v55  ;;  %1023 = vmatprep.subr.bf16.mxu0 %v4904_v44 }
  0x95   :  { %793 = vmatpush1.bf16.msra.mxu1 %v4799_v56 }
  0x96   :  { %794 = vmatprep.subr.bf16.mxu1 %v4803_v57 }
  0x98   :  { %3760 = vmatmul.mubr.msk.bf16.gmra.mxu1 %vm266_vm2, %v3966_v45  ;;  %v4906_v45 = vld [vmem:[#allocation14 + $0xc] ss:$16 sps:$4 sm:$0xff]  }
  0x99   :  { %795 = vmatpush1.bf16.msra.mxu1 %v4806_v58  ;;  %814 = vmatprep.mubr.bf16.mxu1 %v6433_v0  ;;  %6744 = vst [vmem:[#allocation50_spill] sm:$0xff] %v4906_v45 }
  0x9a   :  { %796 = vmatprep.subr.bf16.mxu1 %v4809_v59 }
  0x9d   :  { %797 = vmatpush1.bf16.msra.mxu1 %v4813_v60 }
  0x9e   :  { %1050 = vmatprep.subr.bf16.mxu1 %v4822_v62 }
  0xa0   :  { %815 = vmatmul.mubr.bf16.vlgmr.msra.gmra.mxu1 %v6431_v43  ;;  %v4908_v43 = vld [vmem:[#allocation14] ss:$16 sps:$4 sm:$0xff]  }
  0xa1   :  { %1082 = vmatprep.mubr.bf16.mxu1 %v6433_v0  ;;  %1051 = vmatpush1.bf16.msra.mxu1 %v4826_v1  ;;  %6745 = vst [vmem:[#allocation51_spill] sm:$0xff] %v4908_v43  ;;  %v4910_v0 = vld [vmem:[#allocation14 + $0x8] ss:$16 sps:$4 sm:$0xff]  }
  0xa2   :  { %1052 = vmatprep.subr.bf16.mxu1 %v4834_v5  ;;  %6746 = vst [vmem:[#allocation52_spill] sm:$0xff] %v4910_v0  ;;  %1024 = vmatpush1.bf16.msra.mxu0 %v4908_v43 }
  0xa5   :  { %1053 = vmatpush1.bf16.msra.mxu1 %v4838_v7 }
  0xa6   :  { %1054 = vmatprep.subr.bf16.mxu1 %v4846_v11 }
  0xa9   :  { %1055 = vmatpush1.bf16.msra.mxu1 %v4850_v13 }
  0xaa   :  { %1056 = vmatprep.subr.bf16.mxu1 %v4858_v18 }
  0xad   :  { %1057 = vmatpush1.bf16.msra.mxu1 %v4862_v22 }
  0xae   :  { %1058 = vmatprep.subr.bf16.mxu1 %v4870_v25 }
  0xb1   :  { %1059 = vmatpush1.bf16.msra.mxu1 %v4874_v28 }
  0xb2   :  { %1060 = vmatprep.subr.bf16.mxu1 %v4882_v32 }
  0xb5   :  { %1061 = vmatpush1.bf16.msra.mxu1 %v4886_v36 }
  0xb6   :  { %1062 = vmatprep.subr.bf16.mxu1 %v4894_v39  ;;  %v4916_v39 = vld [vmem:[#allocation16 + $0xe4] ss:$16 sps:$4 sm:$0xff]  }
  0xb7   :  { %6747 = vst [vmem:[#allocation53_spill] sm:$0xff] %v4916_v39  ;;  %1251 = vmatprep.subr.bf16.mxu0 %v4916_v39 }
  0xb9   :  { %1063 = vmatpush1.bf16.msra.mxu1 %v4898_v41  ;;  %v150_v41 = vlaneseq }
  0xba   :  { %1064 = vmatprep.subr.bf16.mxu1 %v4906_v45  ;;  %v148_v45 = vld [vmem:[%s6424_s3] sm:$0xf] }
  0xbb   :  { %v4922_v37 = vshrl.u32 %v150_v41, 7 }
  0xbd   :  { %1065 = vmatpush1.bf16.msra.mxu1 %v4910_v0  ;;  %6749 = vst [vmem:[#allocation55_spill] sm:$0xff] %v4922_v37  ;;  %v6471_v36 = vsub.s32 0, %v4922_v37  ;;  %v6480_v32 = vsub.s32 1, %v4922_v37 }
  0xbe   :  { %1292 = vmatprep.subr.bf16.mxu1 %v4918_v40 }
  0xbf   :  { %v153_v0 = vrot.slane %v148_v45, %v6471_v36  ;;  %v4937_v29 = vrot.slane %v148_v45, %v6480_v32 }
  0xc1   :  { %6752 = vst [vmem:[#allocation58_spill] sm:$0xff] %v4937_v29 }
 0x120   :  { %v329_v43 = vpop.f32.mrf.mxu1 }
 0x122   :  { %v331_v44 = vpop.f32.mrf.mxu1 }
 0x124   :  { %v333_v34 = vpop.f32.mrf.mxu1 }
 0x125   :  { %v4931_v39 = vadd.f32 %v333_v34, %v153_v0 }
 0x126   :  { %v4933_v40 = vpop.f32.mrf.mxu1 }
 0x127   :  { %6750 = vst [vmem:[#allocation56_spill] sm:$0xff] %v4931_v39  ;;  %6751 = vst [vmem:[#allocation57_spill] sm:$0xff] %v4933_v40 }
 0x128   :  { %v339_v41 = vpop.f32.mrf.mxu1 }
 0x129   :  { %v4939_v28 = vadd.f32 %v339_v41, %v153_v0 }
 0x12a   :  { %v341_v26 = vpop.f32.mrf.mxu1 }
 0x12b   :  { %6753 = vst [vmem:[#allocation59_spill] sm:$0xff] %v4939_v28  ;;  %v4942_v25 = vadd.f32 %v341_v26, %v4937_v29 }
 0x12c   :  { %v343_v23 = vpop.f32.mrf.mxu1 }
 0x12d   :  { %6754 = vst [vmem:[#allocation60_spill] sm:$0xff] %v4942_v25  ;;  %v775_v36 = vpop.f32.mrf.mxu0  ;;  %v4944_v22 = vadd.f32 %v343_v23, %v153_v0 }
 0x12e   :  { %v4946_v20 = vpop.f32.mrf.mxu1 }
 0x12f   :  { %6755 = vst [vmem:[#allocation61_spill] sm:$0xff] %v4944_v22  ;;  %6756 = vst [vmem:[#allocation62_spill] sm:$0xff] %v4946_v20  ;;  %v777_v34 = vpop.f32.mrf.mxu0 }
 0x130   :  { %v349_v39 = vpop.f32.mrf.mxu1 }
 0x131   :  { %v779_v40 = vpop.f32.mrf.mxu0  ;;  %v4948_v18 = vadd.f32 %v349_v39, %v153_v0 }
 0x132   :  { %v351_v16 = vpop.f32.mrf.mxu1 }
 0x133   :  { %6757 = vst [vmem:[#allocation63_spill] sm:$0xff] %v4948_v18  ;;  %v780_v32 = vpop.f32.mrf.mxu0  ;;  %v4951_v41 = vadd.f32 %v351_v16, %v4937_v29  ;;  %v6491_v16 = vsub.s32 2, %v4922_v37 }
 0x134   :  { %v353_v28 = vpop.f32.mrf.mxu1 }
 0x135   :  { %6758 = vst [vmem:[#allocation64_spill] sm:$0xff] %v4951_v41  ;;  %v4953_v13 = vadd.f32 %v353_v28, %v153_v0  ;;  %v6494_v28 = vsub.s32 3, %v4922_v37 }
 0x136   :  { %v4955_v26 = vpop.f32.mrf.mxu1 }
 0x137   :  { %6759 = vst [vmem:[#allocation65_spill] sm:$0xff] %v4953_v13  ;;  %6760 = vst [vmem:[#allocation66_spill] sm:$0xff] %v4955_v26  ;;  %v161_v26 = vrot.slane %v148_v45, %v6491_v16  ;;  %v332_v16 = vadd.f32 %v331_v44, %v4937_v29 }
 0x138   :  { %v359_v25 = vpop.f32.mrf.mxu1 }
 0x139   :  { %v4957_v23 = vadd.f32 %v359_v25, %v153_v0 }
 0x13a   :  { %v361_v22 = vpop.f32.mrf.mxu1 }
 0x13b   :  { %6761 = vst [vmem:[#allocation67_spill] sm:$0xff] %v4957_v23  ;;  %v4960_v20 = vadd.f32 %v361_v22, %v4937_v29  ;;  %v165_v23 = vrot.slane %v148_v45, %v6494_v28  ;;  %v824_v28 = vadd.f32 %v777_v34, %v332_v16 }
 0x13c   :  { %v363_v40 = vpop.f32.mrf.mxu1 }
 0x13d   :  { %6762 = vst [vmem:[#allocation68_spill] sm:$0xff] %v4960_v20  ;;  %v4962_v39 = vadd.f32 %v363_v40, %v153_v0 }
 0x13e   :  { %v4964_v18 = vpop.f32.mrf.mxu1 }
 0x13f   :  { %6763 = vst [vmem:[#allocation69_spill] sm:$0xff] %v4962_v39  ;;  %6764 = vst [vmem:[#allocation70_spill] sm:$0xff] %v4964_v18 }
 0x140   :  { %v402_v32 = vpop.f32.mrf.mxu1 }
 0x142   :  { %v404_v13 = vpop.f32.mrf.mxu1 }
 0x144   :  { %v406_v25 = vpop.f32.mrf.mxu1 }
 0x145   :  { %v4972_v22 = vadd.f32 %v406_v25, %v161_v26  ;;  %v330_v25 = vadd.f32 %v329_v43, %v153_v0 }
 0x146   :  { %v408_v20 = vpop.f32.mrf.mxu1 }
 0x147   :  { %6765 = vst [vmem:[#allocation71_spill] sm:$0xff] %v4972_v22  ;;  %v4974_v40 = vadd.f32 %v408_v20, %v165_v23 }
 0x148   :  { %v412_v39 = vpop.f32.mrf.mxu1 }
 0x149   :  { %6766 = vst [vmem:[#allocation72_spill] sm:$0xff] %v4974_v40  ;;  %v4976_v18 = vadd.f32 %v412_v39, %v161_v26  ;;  %v823_v40 = vadd.f32 %v775_v36, %v330_v25 }
 0x14a   :  { %v414_v41 = vpop.f32.mrf.mxu1 }
 0x14b   :  { %6767 = vst [vmem:[#allocation73_spill] sm:$0xff] %v4976_v18  ;;  %v4978_v12 = vadd.f32 %v414_v41, %v165_v23  ;;  %v832_v41 = vmul.f32 0.5, %v824_v28 }
 0x14c   :  { %v416_v11 = vpop.f32.mrf.mxu1 }
 0x14d   :  { %6768 = vst [vmem:[#allocation74_spill] sm:$0xff] %v4978_v12  ;;  %v4980_v10 = vadd.f32 %v416_v11, %v161_v26  ;;  %4098 = vtanh.f32 %v832_v41 }
 0x14e   :  { %v418_v7 = vpop.f32.mrf.mxu1 }
 0x14f   :  { %6769 = vst [vmem:[#allocation75_spill] sm:$0xff] %v4980_v10  ;;  %v4983_v6 = vadd.f32 %v418_v7, %v165_v23  ;;  %v828_v10 = vmul.f32 0.5, %v823_v40 }
 0x150   :  { %v422_v45 = vpop.f32.mrf.mxu1 }
 0x151   :  { %6770 = vst [vmem:[#allocation76_spill] sm:$0xff] %v4983_v6  ;;  %v4985_v22 = vadd.f32 %v422_v45, %v161_v26  ;;  %4100 = vtanh.f32 %v828_v10  ;;  %v403_v45 = vadd.f32 %v402_v32, %v161_v26  ;;  %v5070_v6 = vld [vmem:[#allocation16 + $0x48] ss:$16 sps:$4 sm:$0xff]  }
 0x152   :  { %v424_v20 = vpop.f32.mrf.mxu1 }
 0x153   :  { %6771 = vst [vmem:[#allocation77_spill] sm:$0xff] %v4985_v22  ;;  %v4987_v39 = vadd.f32 %v424_v20, %v165_v23  ;;  %v405_v20 = vadd.f32 %v404_v13, %v165_v23  ;;  %v5068_v22 = vld [vmem:[#allocation16 + $0x40] ss:$16 sps:$4 sm:$0xff]  }
 0x154   :  { %v426_v18 = vpop.f32.mrf.mxu1  ;;  %6787 = vst [vmem:[#allocation92_spill] sm:$0xff] %v5068_v22 }
 0x155   :  { %6772 = vst [vmem:[#allocation78_spill] sm:$0xff] %v4987_v39  ;;  %v4989_v12 = vadd.f32 %v426_v18, %v161_v26  ;;  %v5064_v39 = vld [vmem:[#allocation16 + $0x4c] ss:$16 sps:$4 sm:$0xff]  }
 0x156   :  { %v428_v11 = vpop.f32.mrf.mxu1  ;;  %6786 = vst [vmem:[#allocation91_spill] sm:$0xff] %v5064_v39 }
 0x157   :  { %6773 = vst [vmem:[#allocation79_spill] sm:$0xff] %v4989_v12  ;;  %v4991_v37 = vadd.f32 %v428_v11, %v165_v23 }
 0x158   :  { %v432_v44 = vpop.f32.mrf.mxu1 }
 0x159   :  { %6774 = vst [vmem:[#allocation80_spill] sm:$0xff] %v4991_v37  ;;  %v4993_v7 = vadd.f32 %v432_v44, %v161_v26 }
 0x15a   :  { %v434_v0 = vpop.f32.mrf.mxu1  ;;  %v4099_v44 = vpop.eup %4098 }
 0x15b   :  { %6775 = vst [vmem:[#allocation81_spill] sm:$0xff] %v4993_v7  ;;  %v4995_v43 = vadd.f32 %v434_v0, %v165_v23  ;;  %v834_v10 = vadd.f32 1.0, %v4099_v44  ;;  %v6779_v44 = vmov 0  }
 0x15c   :  { %v436_v34 = vpop.f32.mrf.mxu1 }
 0x15d   :  { %6776 = vst [vmem:[#allocation82_spill] sm:$0xff] %v4995_v43  ;;  %v4997_v36 = vadd.f32 %v436_v34, %v161_v26  ;;  %v835_v12 = vmul.f32 0.5, %v834_v10  ;;  %v5032_v10 = vld [vmem:[#allocation16 + $0xa0] ss:$16 sps:$4 sm:$0xff]  }
 0x15e   :  { %v438_v16 = vpop.f32.mrf.mxu1  ;;  %v4101_v37 = vpop.eup %4100 }
 0x15f   :  { %6777 = vst [vmem:[#allocation83_spill] sm:$0xff] %v4997_v36  ;;  %v4999_v28 = vadd.f32 %v438_v16, %v165_v23  ;;  %v830_v43 = vadd.f32 1.0, %v4101_v37  ;;  %v841_v26 = vmul.f32 0.0, %v835_v12  ;;  %v5018_v12 = vld [vmem:[#allocation16 + $0xc0] ss:$16 sps:$4 sm:$0xff]  }
 0x160   :  { %v816_v18 = vpop.f32.mrf.mxu1 }
 0x161   :  { %6778 = vst [vmem:[#allocation84_spill] sm:$0xff] %v4999_v28  ;;  %v825_v25 = vadd.f32 %v816_v18, %v403_v45  ;;  %v831_v34 = vmul.f32 0.5, %v830_v43  ;;  %v5012_v43 = vld [vmem:[#allocation16 + $0xcc] ss:$16 sps:$4 sm:$0xff]   ;;  %v5062_v28 = vld [vmem:[#allocation16 + $0x44] ss:$16 sps:$4 sm:$0xff]  }
 0x162   :  { %v818_v40 = vpop.f32.mrf.mxu1  ;;  %6785 = vst [vmem:[#allocation90_spill] sm:$0xff] %v5062_v28 }
 0x163   :  { %4102 = vtanh.f32 %v825_v25  ;;  %v826_v41 = vadd.f32 %v818_v40, %v405_v20  ;;  %v5006_v40 = vld [vmem:[#allocation16 + $0xe8] ss:$16 sps:$4 sm:$0xff]   ;;  %v5010_v20 = vld [vmem:[#allocation16 + $0xc4] ss:$16 sps:$4 sm:$0xff]  }
 0x164   :  { %v820_v11 = vpop.f32.mrf.mxu1 }
 0x165   :  { %v837_v0 = vmul.f32 0.5, %v826_v41  ;;  %v5024_v11 = vld [vmem:[#allocation16 + $0xa4] ss:$16 sps:$4 sm:$0xff]   ;;  %v5026_v41 = vld [vmem:[#allocation16 + $0xac] ss:$16 sps:$4 sm:$0xff]  }
 0x166   :  { %v821_v7 = vpop.f32.mrf.mxu1 }
 0x167   :  { %4104 = vtanh.f32 %v837_v0  ;;  %v5004_v7 = vld [vmem:[#allocation16 + $0xe0] ss:$16 sps:$4 sm:$0xff]   ;;  %v5034_v0 = vld [vmem:[#allocation16 + $0xa8] ss:$16 sps:$4 sm:$0xff]  }
 0x170   :  { %v4103_v36 = vpop.eup %4102 }
 0x171   :  { %v842_v32 = vmul.f32 %v4103_v36, %v831_v34  ;;  %v5020_v36 = vld [vmem:[#allocation16 + $0xc8] ss:$16 sps:$4 sm:$0xff]   ;;  %v5038_v34 = vld [vmem:[#allocation16 + $0x84] ss:$16 sps:$4 sm:$0xff]  }
 0x173   :  { %v5001_v16 = vadd.f32 %v842_v32, %v841_v26  ;;  %v5040_v26 = vld [vmem:[#allocation16 + $0x8c] ss:$16 sps:$4 sm:$0xff]   ;;  %v5044_v32 = vld [vmem:[#allocation16 + $0x80] ss:$16 sps:$4 sm:$0xff]  }
 0x174   :  { %v4105_v13 = vpop.eup %4104 }
 0x175   :  { %4106 = vtanh.f32 %v5001_v16  ;;  %v839_v23 = vadd.f32 1.0, %v4105_v13  ;;  %v5046_v13 = vld [vmem:[#allocation16 + $0x88] ss:$16 sps:$4 sm:$0xff]  }
 0x176   :  { %6780 = vst [vmem:[#allocation85_spill] sm:$0xff] %v5046_v13 }
 0x177   :  { %v840_v45 = vmul.f32 0.5, %v839_v23  ;;  %v5050_v23 = vld [vmem:[#allocation16 + $0x64] ss:$16 sps:$4 sm:$0xff]  }
 0x178   :  { %6781 = vst [vmem:[#allocation86_spill] sm:$0xff] %v5050_v23 }
 0x182   :  { %v4107_v18 = vpop.eup %4106 }
 0x183   :  { %v845_v25 = vmul.f32 %v4107_v18, %v840_v45  ;;  %v5052_v45 = vld [vmem:[#allocation16 + $0x6c] ss:$16 sps:$4 sm:$0xff]   ;;  %v5056_v18 = vld [vmem:[#allocation16 + $0x60] ss:$16 sps:$4 sm:$0xff]  }
 0x184   :  { %6782 = vst [vmem:[#allocation87_spill] sm:$0xff] %v5052_v45  ;;  %6783 = vst [vmem:[#allocation88_spill] sm:$0xff] %v5056_v18 }
 0x185   :  { %v5008_v37 = vpack.c.bf16 %v845_v25, %v845_v25  ;;  %v5058_v25 = vld [vmem:[#allocation16 + $0x68] ss:$16 sps:$4 sm:$0xff]  }
 0x186   :  { %6784 = vst [vmem:[#allocation89_spill] sm:$0xff] %v5058_v25 }
 0x187   :  { %1042 = vmatmul.mubr.bf16.vlgmr.msra.gmra.mxu0 %v5008_v37  ;;  %1083 = vmatmul.mubr.bf16.vlgmr.msra.gmra.mxu1 %v5008_v37 }
 0x188   :  { %1252 = vmatpush1.bf16.msra.mxu0 %v5004_v7  ;;  %1293 = vmatpush1.bf16.msra.mxu1 %v5006_v40 }
 0x189   :  { %1253 = vmatprep.subr.bf16.mxu0 %v5010_v20  ;;  %1294 = vmatprep.subr.bf16.mxu1 %v5012_v43 }
 0x18a   :  { %1283 = vmatprep.mubr.bf16.mxu0 %v6779_v44  ;;  %1324 = vmatprep.mubr.bf16.mxu1 %v6779_v44 }
 0x18c   :  { %1254 = vmatpush1.bf16.msra.mxu0 %v5018_v12  ;;  %1295 = vmatpush1.bf16.msra.mxu1 %v5020_v36 }
 0x18d   :  { %1255 = vmatprep.subr.bf16.mxu0 %v5024_v11  ;;  %1296 = vmatprep.subr.bf16.mxu1 %v5026_v41 }
 0x190   :  { %1256 = vmatpush1.bf16.msra.mxu0 %v5032_v10  ;;  %1297 = vmatpush1.bf16.msra.mxu1 %v5034_v0 }
 0x191   :  { %1257 = vmatprep.subr.bf16.mxu0 %v5038_v34  ;;  %1298 = vmatprep.subr.bf16.mxu1 %v5040_v26 }
 0x194   :  { %1258 = vmatpush1.bf16.msra.mxu0 %v5044_v32  ;;  %1299 = vmatpush1.bf16.msra.mxu1 %v5046_v13  ;;  %v5074_v13 = vld [vmem:[#allocation16 + $0x24] ss:$16 sps:$4 sm:$0xff]  }
 0x195   :  { %1259 = vmatprep.subr.bf16.mxu0 %v5050_v23  ;;  %1300 = vmatprep.subr.bf16.mxu1 %v5052_v45  ;;  %v5076_v23 = vld [vmem:[#allocation16 + $0x2c] ss:$16 sps:$4 sm:$0xff]   ;;  %v5080_v45 = vld [vmem:[#allocation16 + $0x20] ss:$16 sps:$4 sm:$0xff]  }
 0x196   :  { %6788 = vst [vmem:[#allocation93_spill] sm:$0xff] %v5076_v23 }
 0x198   :  { %1260 = vmatpush1.bf16.msra.mxu0 %v5056_v18  ;;  %1301 = vmatpush1.bf16.msra.mxu1 %v5058_v25  ;;  %v5082_v18 = vld [vmem:[#allocation16 + $0x28] ss:$16 sps:$4 sm:$0xff]   ;;  %v5086_v25 = vld [vmem:[#allocation16 + $0x4] ss:$16 sps:$4 sm:$0xff]  }
 0x199   :  { %1261 = vmatprep.subr.bf16.mxu0 %v5062_v28  ;;  %1302 = vmatprep.subr.bf16.mxu1 %v5064_v39  ;;  %v5088_v28 = vld [vmem:[#allocation16 + $0xc] ss:$16 sps:$4 sm:$0xff]   ;;  %v5092_v39 = vld [vmem:[#allocation16] ss:$16 sps:$4 sm:$0xff]  }
 0x19c   :  { %1262 = vmatpush1.bf16.msra.mxu0 %v5068_v22  ;;  %1303 = vmatpush1.bf16.msra.mxu1 %v5070_v6  ;;  %v5094_v22 = vld [vmem:[#allocation16 + $0x8] ss:$16 sps:$4 sm:$0xff]  }
 0x19d   :  { %1263 = vmatprep.subr.bf16.mxu0 %v5074_v13  ;;  %1304 = vmatprep.subr.bf16.mxu1 %v5076_v23  ;;  %v6789_v23 = vmov 0.0|0.0  }
 0x1a0   :  { %1264 = vmatpush1.bf16.msra.mxu0 %v5080_v45  ;;  %1305 = vmatpush1.bf16.msra.mxu1 %v5082_v18 }
 0x1a1   :  { %1265 = vmatprep.subr.bf16.mxu0 %v5086_v25  ;;  %1306 = vmatprep.subr.bf16.mxu1 %v5088_v28 }
 0x1a4   :  { %1266 = vmatpush1.bf16.msra.mxu0 %v5092_v39  ;;  %1307 = vmatpush1.bf16.msra.mxu1 %v5094_v22 }
 0x1a5   :  { %1391 = vmatprep.subr.bf16.mxu0 %v4704_v3  ;;  %1432 = vmatprep.subr.bf16.mxu1 %v4756_v42  ;;  %v6790_v3 = vld [vmem:[#allocation27_spill] sm:$0xff] }
 0x1a6   :  { %v6806_v42 = vld [vmem:[#allocation43_spill] sm:$0xff] }
 0x1a7   :  { %1284 = vmatmul.mubr.bf16.vlgmr.msra.gmra.mxu0 %v6789_v23  ;;  %1325 = vmatmul.mubr.bf16.vlgmr.msra.gmra.mxu1 %v6789_v23  ;;  %v6812_v23 = vld [vmem:[#allocation49_spill] sm:$0xff] }
 0x1a8   :  { %1392 = vmatpush1.bf16.msra.mxu0 %v4706_v4  ;;  %1433 = vmatpush1.bf16.msra.mxu1 %v4765_v46  ;;  %v6791_v4 = vld [vmem:[#allocation28_spill] sm:$0xff] }
 0x1a9   :  { %1393 = vmatprep.subr.bf16.mxu0 %v4710_v8  ;;  %1434 = vmatprep.subr.bf16.mxu1 %v4767_v47  ;;  %v6792_v8 = vld [vmem:[#allocation29_spill] sm:$0xff]  ;;  %v6807_v46 = vld [vmem:[#allocation44_spill] sm:$0xff] }
 0x1aa   :  { %1423 = vmatprep.mubr.bf16.mxu0 %v6779_v44  ;;  %1464 = vmatprep.mubr.bf16.mxu1 %v6779_v44  ;;  %v6808_v47 = vld [vmem:[#allocation45_spill] sm:$0xff] }
 0x1ac   :  { %1394 = vmatpush1.bf16.msra.mxu0 %v4712_v9  ;;  %1435 = vmatpush1.bf16.msra.mxu1 %v4769_v48  ;;  %v6793_v9 = vld [vmem:[#allocation30_spill] sm:$0xff] }
 0x1ad   :  { %1395 = vmatprep.subr.bf16.mxu0 %v4715_v14  ;;  %1436 = vmatprep.subr.bf16.mxu1 %v4772_v49  ;;  %v6794_v14 = vld [vmem:[#allocation31_spill] sm:$0xff]  ;;  %v6809_v48 = vld [vmem:[#allocation46_spill] sm:$0xff] }
 0x1ae   :  { %v6810_v49 = vld [vmem:[#allocation47_spill] sm:$0xff] }
 0x1b0   :  { %1396 = vmatpush1.bf16.msra.mxu0 %v4718_v15  ;;  %1437 = vmatpush1.bf16.msra.mxu1 %v4777_v50  ;;  %v6795_v15 = vld [vmem:[#allocation32_spill] sm:$0xff] }
 0x1b1   :  { %1397 = vmatprep.subr.bf16.mxu0 %v4721_v17  ;;  %1438 = vmatprep.subr.bf16.mxu1 %v4779_v51  ;;  %v6796_v17 = vld [vmem:[#allocation33_spill] sm:$0xff] }
 0x1b4   :  { %1398 = vmatpush1.bf16.msra.mxu0 %v4724_v19  ;;  %1439 = vmatpush1.bf16.msra.mxu1 %v4785_v52  ;;  %v6797_v19 = vld [vmem:[#allocation34_spill] sm:$0xff] }
 0x1b5   :  { %1399 = vmatprep.subr.bf16.mxu0 %v4727_v21  ;;  %1440 = vmatprep.subr.bf16.mxu1 %v4789_v53  ;;  %v6798_v21 = vld [vmem:[#allocation35_spill] sm:$0xff] }
 0x1b8   :  { %1400 = vmatpush1.bf16.msra.mxu0 %v4730_v24  ;;  %1441 = vmatpush1.bf16.msra.mxu1 %v4792_v54  ;;  %v6799_v24 = vld [vmem:[#allocation36_spill] sm:$0xff] }
 0x1b9   :  { %1401 = vmatprep.subr.bf16.mxu0 %v4733_v27  ;;  %1442 = vmatprep.subr.bf16.mxu1 %v4795_v55  ;;  %v6800_v27 = vld [vmem:[#allocation37_spill] sm:$0xff] }
 0x1bc   :  { %1402 = vmatpush1.bf16.msra.mxu0 %v4736_v30  ;;  %1443 = vmatpush1.bf16.msra.mxu1 %v4799_v56  ;;  %v6801_v30 = vld [vmem:[#allocation38_spill] sm:$0xff] }
 0x1bd   :  { %1403 = vmatprep.subr.bf16.mxu0 %v4739_v31  ;;  %1444 = vmatprep.subr.bf16.mxu1 %v4803_v57  ;;  %v6802_v31 = vld [vmem:[#allocation39_spill] sm:$0xff] }
 0x1c0   :  { %1404 = vmatpush1.bf16.msra.mxu0 %v4742_v33  ;;  %1445 = vmatpush1.bf16.msra.mxu1 %v4806_v58  ;;  %v6803_v33 = vld [vmem:[#allocation40_spill] sm:$0xff] }
 0x1c1   :  { %1405 = vmatprep.subr.bf16.mxu0 %v4745_v35  ;;  %1446 = vmatprep.subr.bf16.mxu1 %v4809_v59  ;;  %v6804_v35 = vld [vmem:[#allocation41_spill] sm:$0xff] }
 0x1c4   :  { %1406 = vmatpush1.bf16.msra.mxu0 %v4750_v38  ;;  %1447 = vmatpush1.bf16.msra.mxu1 %v4813_v60  ;;  %v6805_v38 = vld [vmem:[#allocation42_spill] sm:$0xff] }
 0x1c5   :  { %1499 = vmatprep.subr.bf16.mxu0 %v4820_v61  ;;  %1540 = vmatprep.subr.bf16.mxu1 %v4822_v62 }
 0x1c7   :  { %1424 = vmatmul.mubr.bf16.vlgmr.msra.gmra.mxu0 %v5008_v37  ;;  %1465 = vmatmul.mubr.bf16.vlgmr.msra.gmra.mxu1 %v5008_v37  ;;  %v6811_v37 = vld [vmem:[#allocation48_spill] sm:$0xff] }
 0x1c8   :  { %1500 = vmatpush1.bf16.msra.mxu0 %v4824_v63  ;;  %1541 = vmatpush1.bf16.msra.mxu1 %v4826_v1 }
 0x1c9   :  { %1501 = vmatprep.subr.bf16.mxu0 %v4832_v2  ;;  %1542 = vmatprep.subr.bf16.mxu1 %v4834_v5 }
 0x1ca   :  { %1531 = vmatprep.mubr.bf16.mxu0 %v6779_v44  ;;  %1572 = vmatprep.mubr.bf16.mxu1 %v6779_v44 }
 0x1cc   :  { %1502 = vmatpush1.bf16.msra.mxu0 %v6790_v3  ;;  %1543 = vmatpush1.bf16.msra.mxu1 %v6791_v4 }
 0x1cd   :  { %1503 = vmatprep.subr.bf16.mxu0 %v6792_v8  ;;  %1544 = vmatprep.subr.bf16.mxu1 %v6793_v9 }
 0x1d0   :  { %1504 = vmatpush1.bf16.msra.mxu0 %v6794_v14  ;;  %1545 = vmatpush1.bf16.msra.mxu1 %v6795_v15 }
 0x1d1   :  { %1505 = vmatprep.subr.bf16.mxu0 %v6796_v17  ;;  %1546 = vmatprep.subr.bf16.mxu1 %v6797_v19 }
 0x1d4   :  { %1506 = vmatpush1.bf16.msra.mxu0 %v6798_v21  ;;  %1547 = vmatpush1.bf16.msra.mxu1 %v6799_v24 }
 0x1d5   :  { %1507 = vmatprep.subr.bf16.mxu0 %v6800_v27  ;;  %1548 = vmatprep.subr.bf16.mxu1 %v6801_v30 }
 0x1d8   :  { %1508 = vmatpush1.bf16.msra.mxu0 %v6802_v31  ;;  %1549 = vmatpush1.bf16.msra.mxu1 %v6803_v33  ;;  %v6813_v31 = vld [vmem:[#allocation50_spill] sm:$0xff]  ;;  %v6814_v33 = vld [vmem:[#allocation51_spill] sm:$0xff] }
 0x1d9   :  { %1509 = vmatprep.subr.bf16.mxu0 %v6804_v35  ;;  %1550 = vmatprep.subr.bf16.mxu1 %v6805_v38  ;;  %v6815_v35 = vld [vmem:[#allocation52_spill] sm:$0xff]  ;;  %v6816_v38 = vld [vmem:[#allocation53_spill] sm:$0xff] }
 0x1dc   :  { %1510 = vmatpush1.bf16.msra.mxu0 %v6806_v42  ;;  %1551 = vmatpush1.bf16.msra.mxu1 %v6807_v46  ;;  %v6817_v42 = vld [vmem:[#allocation54_spill] sm:$0xff] }
 0x1dd   :  { %1511 = vmatprep.subr.bf16.mxu0 %v6808_v47  ;;  %1552 = vmatprep.subr.bf16.mxu1 %v6809_v48 }
 0x1e0   :  { %1512 = vmatpush1.bf16.msra.mxu0 %v6810_v49  ;;  %1553 = vmatpush1.bf16.msra.mxu1 %v6811_v37 }
 0x1e1   :  { %1513 = vmatprep.subr.bf16.mxu0 %v6812_v23  ;;  %1554 = vmatprep.subr.bf16.mxu1 %v6813_v31  ;;  %v5177_v31 = vld [vmem:[%s6427_s6] sm:$0xf] }
 0x1e4   :  { %1514 = vmatpush1.bf16.msra.mxu0 %v6814_v33  ;;  %1555 = vmatpush1.bf16.msra.mxu1 %v6815_v35  ;;  %v6818_v33 = vld [vmem:[#allocation55_spill] sm:$0xff] }
 0x1e5   :  { %1581 = vmatprep.subr.bf16.mxu0 %v6816_v38  ;;  %1622 = vmatprep.subr.bf16.mxu1 %v6817_v42  ;;  %v6819_v23 = vsub.s32 0, %v6818_v33  ;;  %v6821_v17 = vsub.s32 1, %v6818_v33  ;;  %v6823_v15 = vsub.s32 2, %v6818_v33 }
 0x1e7   :  { %v5182_v35 = vrot.slane %v5177_v31, %v6819_v23  ;;  %v5193_v14 = vrot.slane %v5177_v31, %v6823_v15 }
 0x1e9   :  { %6820 = vst [vmem:[#allocation55_spill] sm:$0xff] %v5182_v35  ;;  %6824 = vst [vmem:[#allocation95_spill] sm:$0xff] %v5193_v14 }
 0x247   :  { %v1043_v46 = vpop.f32.mrf.mxu0  ;;  %v1084_v47 = vpop.f32.mrf.mxu1 }
 0x249   :  { %v1045_v30 = vpop.f32.mrf.mxu0  ;;  %v1086_v48 = vpop.f32.mrf.mxu1 }
 0x24b   :  { %v1047_v27 = vpop.f32.mrf.mxu0  ;;  %v1088_v49 = vpop.f32.mrf.mxu1 }
 0x24c   :  { %v5187_v27 = vrot.slane %v5177_v31, %v6821_v17 }
 0x24d   :  { %v1048_v24 = vpop.f32.mrf.mxu0  ;;  %v1089_v37 = vpop.f32.mrf.mxu1 }
 0x24e   :  { %6822 = vst [vmem:[#allocation94_spill] sm:$0xff] %v5187_v27 }
 0x267   :  { %v1285_v38 = vpop.f32.mrf.mxu0  ;;  %v1326_v42 = vpop.f32.mrf.mxu1 }
 0x268   :  { %v1286_v21 = vadd.f32 %v1285_v38, %v1043_v46  ;;  %v1327_v19 = vadd.f32 %v1326_v42, %v1084_v47 }
 0x269   :  { %v1287_v24 = vpop.f32.mrf.mxu0  ;;  %v1328_v49 = vpop.f32.mrf.mxu1 }
 0x26a   :  { %v1354_v37 = vadd.f32 %v5182_v35, %v1286_v21  ;;  %v1288_v23 = vadd.f32 %v1287_v24, %v1045_v30  ;;  %v1329_v9 = vadd.f32 %v1328_v49, %v1086_v48  ;;  %v1356_v17 = vadd.f32 %v5193_v14, %v1327_v19  ;;  %v6826_v19 = vld [vmem:[#allocation56_spill] sm:$0xff] }
 0x26b   :  { %v1289_v8 = vpop.f32.mrf.mxu0  ;;  %v1330_v4 = vpop.f32.mrf.mxu1 }
 0x26c   :  { %v1359_v38 = vmul.f32 0.5, %v1354_v37  ;;  %v1355_v42 = vadd.f32 %v5187_v27, %v1288_v23  ;;  %v6825_v23 = vld [vmem:[#allocation57_spill] sm:$0xff] }
 0x26d   :  { %v1290_v46 = vpop.f32.mrf.mxu0  ;;  %v1331_v47 = vpop.f32.mrf.mxu1 }
 0x26e   :  { %4108 = vtanh.f32 %v1359_v38  ;;  %v1363_v3 = vmul.f32 0.5, %v1355_v42  ;;  %v336_v38 = vadd.f32 %v6825_v23, %v4937_v29 }
 0x270   :  { %4110 = vtanh.f32 %v1363_v3 }
 0x271   :  { %4112 = vtanh.f32 %v1356_v17 }
 0x27b   :  { %v4109_v21 = vpop.eup %4108 }
 0x27c   :  { %v1361_v35 = vadd.f32 1.0, %v4109_v21 }
 0x27d   :  { %v4111_v5 = vpop.eup %4110 }
 0x27e   :  { %v1362_v15 = vmul.f32 0.5, %v1361_v35  ;;  %v1365_v2 = vadd.f32 1.0, %v4111_v5  ;;  %v4113_v30 = vpop.eup %4112  ;;  %v6827_v5 = vld [vmem:[#allocation71_spill] sm:$0xff] }
 0x280   :  { %v1366_v48 = vmul.f32 0.5, %v1365_v2  ;;  %v1373_v8 = vmul.f32 %v4113_v30, %v1362_v15 }
 0x282   :  { %v1372_v4 = vmul.f32 0.0, %v1366_v48 }
 0x284   :  { %v5197_v24 = vadd.f32 %v1373_v8, %v1372_v4  ;;  %v6828_v8 = vld [vmem:[#allocation72_spill] sm:$0xff] }
 0x287   :  { %v1425_v49 = vpop.f32.mrf.mxu0  ;;  %v1466_v37 = vpop.f32.mrf.mxu1 }
 0x288   :  { %v1473_v42 = vadd.f32 %v1425_v49, %v6826_v19  ;;  %v1475_v2 = vadd.f32 %v1466_v37, %v6827_v5 }
 0x289   :  { %v1427_v3 = vpop.f32.mrf.mxu0  ;;  %v1468_v46 = vpop.f32.mrf.mxu1 }
 0x28a   :  { %v1478_v47 = vmul.f32 0.5, %v1473_v42  ;;  %v1474_v17 = vadd.f32 %v1427_v3, %v336_v38  ;;  %v1476_v4 = vadd.f32 %v1468_v46, %v6828_v8  ;;  %v6829_v46 = vsub.s32 3, %v6818_v33  ;;  %v6835_v8 = vld [vmem:[#allocation90_spill] sm:$0xff] }
 0x28b   :  { %v1429_v21 = vpop.f32.mrf.mxu0  ;;  %v1470_v35 = vpop.f32.mrf.mxu1 }
 0x28c   :  { %4114 = vtanh.f32 %v1478_v47  ;;  %v1482_v15 = vmul.f32 0.5, %v1474_v17  ;;  %v1487_v14 = vmul.f32 0.5, %v1476_v4  ;;  %v5211_v35 = vrot.slane %v5177_v31, %v6829_v46  ;;  %v6832_v31 = vld [vmem:[#allocation87_spill] sm:$0xff] }
 0x28d   :  { %v1430_v30 = vpop.f32.mrf.mxu0  ;;  %v1471_v48 = vpop.f32.mrf.mxu1  ;;  %v6836_v4 = vld [vmem:[#allocation91_spill] sm:$0xff] }
 0x28e   :  { %4116 = vtanh.f32 %v1482_v15  ;;  %v6833_v30 = vld [vmem:[#allocation88_spill] sm:$0xff]  ;;  %v6834_v48 = vld [vmem:[#allocation89_spill] sm:$0xff] }
 0x28f   :  { %4118 = vtanh.f32 %v1475_v2  ;;  %v5261_v46 = vld [vmem:[#allocation13 + $0xe0] ss:$16 sps:$4 sm:$0xff]  }
 0x290   :  { %4120 = vtanh.f32 %v1487_v14  ;;  %v1357_v14 = vadd.f32 %v5211_v35, %v1329_v9  ;;  %v6831_v9 = vld [vmem:[#allocation86_spill] sm:$0xff] }
 0x292   :  { %v1368_v15 = vmul.f32 0.5, %v1357_v14  ;;  %v5270_v14 = vld [vmem:[#allocation13 + $0xcc] ss:$16 sps:$4 sm:$0xff]  }
 0x299   :  { %v4115_v23 = vpop.eup %4114 }
 0x29a   :  { %v1480_v29 = vadd.f32 1.0, %v4115_v23 }
 0x29b   :  { %v4117_v49 = vpop.eup %4116 }
 0x29c   :  { %v1481_v19 = vmul.f32 0.5, %v1480_v29  ;;  %v1484_v27 = vadd.f32 1.0, %v4117_v49  ;;  %v4119_v38 = vpop.eup %4118  ;;  %v6837_v49 = vld [vmem:[#allocation92_spill] sm:$0xff] }
 0x29d   :  { %v4121_v17 = vpop.eup %4120 }
 0x29e   :  { %v1485_v42 = vmul.f32 0.5, %v1484_v27  ;;  %v1492_v3 = vmul.f32 %v4119_v38, %v1481_v19  ;;  %v1489_v21 = vadd.f32 1.0, %v4121_v17  ;;  %v6838_v19 = vld [vmem:[#allocation93_spill] sm:$0xff] }
 0x29f   :  { %v5255_v17 = vld [vmem:[#allocation13 + $0xe4] ss:$16 sps:$4 sm:$0xff]  }
 0x2a0   :  { %v1491_v47 = vmul.f32 %v1485_v42, %v5001_v16  ;;  %v1490_v5 = vmul.f32 0.5, %v1489_v21  ;;  %v6830_v16 = vld [vmem:[#allocation85_spill] sm:$0xff]  ;;  %v5258_v21 = vld [vmem:[#allocation13 + $0xec] ss:$16 sps:$4 sm:$0xff]  }
 0x2a2   :  { %v5205_v37 = vadd.f32 %v1492_v3, %v1491_v47 }
 0x2a4   :  { %4122 = vtanh.f32 %v5205_v37 }
 0x2a5   :  { %4124 = vtanh.f32 %v1368_v15  ;;  %v5278_v15 = vld [vmem:[#allocation13 + $0xc8] ss:$16 sps:$4 sm:$0xff]  }
 0x2a6   :  { %4126 = vtanh.f32 %v5197_v24  ;;  %6841 = vst [vmem:[#allocation71_spill] sm:$0xff] %v5278_v15 }
 0x2b1   :  { %v4123_v29 = vpop.eup %4122 }
 0x2b2   :  { %v1495_v2 = vmul.f32 %v4123_v29, %v1490_v5  ;;  %v4125_v33 = vpop.eup %4124  ;;  %v5264_v5 = vld [vmem:[#allocation13 + $0xe8] ss:$16 sps:$4 sm:$0xff]   ;;  %v5267_v29 = vld [vmem:[#allocation13 + $0xc4] ss:$16 sps:$4 sm:$0xff]  }
 0x2b3   :  { %v1370_v23 = vadd.f32 1.0, %v4125_v33  ;;  %v4127_v38 = vpop.eup %4126  ;;  %v5281_v33 = vld [vmem:[#allocation13 + $0xa4] ss:$16 sps:$4 sm:$0xff]  }
 0x2b4   :  { %v5214_v27 = vpack.c.bf16 %v1495_v2, %v1495_v2  ;;  %v5275_v2 = vld [vmem:[#allocation13 + $0xc0] ss:$16 sps:$4 sm:$0xff]   ;;  %6842 = vst [vmem:[#allocation72_spill] sm:$0xff] %v5281_v33 }
 0x2b5   :  { %v1371_v42 = vmul.f32 0.5, %v1370_v23  ;;  %6840 = vst [vmem:[#allocation56_spill] sm:$0xff] %v5275_v2  ;;  %v5284_v23 = vld [vmem:[#allocation13 + $0xac] ss:$16 sps:$4 sm:$0xff]  }
 0x2b6   :  { %1532 = vmatmul.mubr.bf16.vlgmr.msra.gmra.mxu0 %v5214_v27  ;;  %1573 = vmatmul.mubr.bf16.vlgmr.msra.gmra.mxu1 %v5214_v27  ;;  %6843 = vst [vmem:[#allocation85_spill] sm:$0xff] %v5284_v23 }
 0x2b7   :  { %1582 = vmatpush1.bf16.msra.mxu0 %v5004_v7  ;;  %1623 = vmatpush1.bf16.msra.mxu1 %v5006_v40  ;;  %v5249_v3 = vmul.f32 %v4127_v38, %v1371_v42  ;;  %v5287_v38 = vld [vmem:[#allocation13 + $0xa0] ss:$16 sps:$4 sm:$0xff]   ;;  %v5291_v42 = vld [vmem:[#allocation13 + $0x84] ss:$16 sps:$4 sm:$0xff]  }
 0x2b8   :  { %1583 = vmatprep.subr.bf16.mxu0 %v5010_v20  ;;  %1624 = vmatprep.subr.bf16.mxu1 %v5012_v43  ;;  %6844 = vst [vmem:[#allocation86_spill] sm:$0xff] %v5287_v38  ;;  %6845 = vst [vmem:[#allocation87_spill] sm:$0xff] %v5291_v42 }
 0x2b9   :  { %1613 = vmatprep.mubr.bf16.mxu0 %v6779_v44  ;;  %1654 = vmatprep.mubr.bf16.mxu1 %v6779_v44  ;;  %6839 = vst [vmem:[#allocation57_spill] sm:$0xff] %v5249_v3  ;;  %v1381_v47 = vpack.c.bf16 %v5249_v3, %v5249_v3  ;;  %v5299_v3 = vld [vmem:[#allocation13 + $0x64] ss:$16 sps:$4 sm:$0xff]  }
 0x2ba   :  { %6847 = vst [vmem:[#allocation89_spill] sm:$0xff] %v5299_v3 }
 0x2bb   :  { %1584 = vmatpush1.bf16.msra.mxu0 %v5018_v12  ;;  %1625 = vmatpush1.bf16.msra.mxu1 %v5020_v36 }
 0x2bc   :  { %1585 = vmatprep.subr.bf16.mxu0 %v5024_v11  ;;  %1626 = vmatprep.subr.bf16.mxu1 %v5026_v41 }
 0x2bf   :  { %1586 = vmatpush1.bf16.msra.mxu0 %v5032_v10  ;;  %1627 = vmatpush1.bf16.msra.mxu1 %v5034_v0 }
 0x2c0   :  { %1587 = vmatprep.subr.bf16.mxu0 %v5038_v34  ;;  %1628 = vmatprep.subr.bf16.mxu1 %v5040_v26 }
 0x2c3   :  { %1588 = vmatpush1.bf16.msra.mxu0 %v5044_v32  ;;  %1629 = vmatpush1.bf16.msra.mxu1 %v6830_v16 }
 0x2c4   :  { %1589 = vmatprep.subr.bf16.mxu0 %v6831_v9  ;;  %1630 = vmatprep.subr.bf16.mxu1 %v6832_v31 }
 0x2c7   :  { %1590 = vmatpush1.bf16.msra.mxu0 %v6833_v30  ;;  %1631 = vmatpush1.bf16.msra.mxu1 %v6834_v48 }
 0x2c8   :  { %1591 = vmatprep.subr.bf16.mxu0 %v6835_v8  ;;  %1632 = vmatprep.subr.bf16.mxu1 %v6836_v4 }
 0x2cb   :  { %1592 = vmatpush1.bf16.msra.mxu0 %v6837_v49  ;;  %1633 = vmatpush1.bf16.msra.mxu1 %v5070_v6 }
 0x2cc   :  { %1593 = vmatprep.subr.bf16.mxu0 %v5074_v13  ;;  %1634 = vmatprep.subr.bf16.mxu1 %v6838_v19 }
 0x2cf   :  { %1594 = vmatpush1.bf16.msra.mxu0 %v5080_v45  ;;  %1635 = vmatpush1.bf16.msra.mxu1 %v5082_v18 }
 0x2d0   :  { %1595 = vmatprep.subr.bf16.mxu0 %v5086_v25  ;;  %1636 = vmatprep.subr.bf16.mxu1 %v5088_v28 }
 0x2d3   :  { %1596 = vmatpush1.bf16.msra.mxu0 %v5092_v39  ;;  %1637 = vmatpush1.bf16.msra.mxu1 %v5094_v22 }
 0x2d4   :  { %1701 = vmatprep.subr.bf16.mxu0 %v5255_v17  ;;  %1742 = vmatprep.subr.bf16.mxu1 %v5258_v21 }
 0x2d6   :  { %1614 = vmatmul.mubr.bf16.vlgmr.msra.gmra.mxu0 %v1381_v47  ;;  %1655 = vmatmul.mubr.bf16.vlgmr.msra.gmra.mxu1 %v1381_v47  ;;  %v5295_v47 = vld [vmem:[#allocation13 + $0x80] ss:$16 sps:$4 sm:$0xff]  }
 0x2d7   :  { %1702 = vmatpush1.bf16.msra.mxu0 %v5261_v46  ;;  %1743 = vmatpush1.bf16.msra.mxu1 %v5264_v5  ;;  %6846 = vst [vmem:[#allocation88_spill] sm:$0xff] %v5295_v47 }
 0x2d8   :  { %1703 = vmatprep.subr.bf16.mxu0 %v5267_v29  ;;  %1744 = vmatprep.subr.bf16.mxu1 %v5270_v14 }
 0x2d9   :  { %1733 = vmatprep.mubr.bf16.mxu0 %v6779_v44  ;;  %1774 = vmatprep.mubr.bf16.mxu1 %v6779_v44 }
 0x2db   :  { %1704 = vmatpush1.bf16.msra.mxu0 %v5275_v2  ;;  %1745 = vmatpush1.bf16.msra.mxu1 %v5278_v15 }
 0x2dc   :  { %1705 = vmatprep.subr.bf16.mxu0 %v5281_v33  ;;  %1746 = vmatprep.subr.bf16.mxu1 %v5284_v23  ;;  %v6886_v33 = vld [vmem:[#allocation94_spill] sm:$0xff] }
 0x2df   :  { %1706 = vmatpush1.bf16.msra.mxu0 %v5287_v38  ;;  %1747 = vmatpush1.bf16.msra.mxu1 %v4777_v50  ;;  %v5303_v38 = vld [vmem:[#allocation13 + $0x60] ss:$16 sps:$4 sm:$0xff]   ;;  %v5307_v50 = vld [vmem:[#allocation13 + $0x44] ss:$16 sps:$4 sm:$0xff]  }
 0x2e0   :  { %1707 = vmatprep.subr.bf16.mxu0 %v5291_v42  ;;  %1748 = vmatprep.subr.bf16.mxu1 %v4779_v51  ;;  %6848 = vst [vmem:[#allocation90_spill] sm:$0xff] %v5303_v38  ;;  %6849 = vst [vmem:[#allocation91_spill] sm:$0xff] %v5307_v50  ;;  %v5311_v51 = vld [vmem:[#allocation13 + $0x40] ss:$16 sps:$4 sm:$0xff]  }
 0x2e1   :  { %6850 = vst [vmem:[#allocation92_spill] sm:$0xff] %v5311_v51 }
 0x2e3   :  { %1708 = vmatpush1.bf16.msra.mxu0 %v5295_v47  ;;  %1749 = vmatpush1.bf16.msra.mxu1 %v4785_v52  ;;  %v5315_v52 = vld [vmem:[#allocation13 + $0x24] ss:$16 sps:$4 sm:$0xff]  }
 0x2e4   :  { %1709 = vmatprep.subr.bf16.mxu0 %v5299_v3  ;;  %1750 = vmatprep.subr.bf16.mxu1 %v4789_v53  ;;  %6851 = vst [vmem:[#allocation93_spill] sm:$0xff] %v5315_v52  ;;  %v5319_v53 = vld [vmem:[#allocation13 + $0x20] ss:$16 sps:$4 sm:$0xff]  }
 0x2e5   :  { %6852 = vst [vmem:[#allocation96_spill] sm:$0xff] %v5319_v53  ;;  %v6885_v3 = vld [vmem:[#allocation55_spill] sm:$0xff] }
 0x2e7   :  { %1710 = vmatpush1.bf16.msra.mxu0 %v5303_v38  ;;  %1751 = vmatpush1.bf16.msra.mxu1 %v4792_v54  ;;  %v5323_v54 = vld [vmem:[#allocation13 + $0x4] ss:$16 sps:$4 sm:$0xff]  }
 0x2e8   :  { %1711 = vmatprep.subr.bf16.mxu0 %v5307_v50  ;;  %1752 = vmatprep.subr.bf16.mxu1 %v4795_v55  ;;  %6853 = vst [vmem:[#allocation97_spill] sm:$0xff] %v5323_v54  ;;  %v5327_v55 = vld [vmem:[#allocation13] ss:$16 sps:$4 sm:$0xff]  }
 0x2e9   :  { %6854 = vst [vmem:[#allocation98_spill] sm:$0xff] %v5327_v55 }
 0x2eb   :  { %1712 = vmatpush1.bf16.msra.mxu0 %v5311_v51  ;;  %1753 = vmatpush1.bf16.msra.mxu1 %v4799_v56  ;;  %v6855_v56 = vld [vmem:[#allocation25_spill] sm:$0xff] }
 0x2ec   :  { %1713 = vmatprep.subr.bf16.mxu0 %v5315_v52  ;;  %1754 = vmatprep.subr.bf16.mxu1 %v4803_v57  ;;  %v6856_v57 = vld [vmem:[#allocation26_spill] sm:$0xff] }
 0x2ef   :  { %1714 = vmatpush1.bf16.msra.mxu0 %v5319_v53  ;;  %1755 = vmatpush1.bf16.msra.mxu1 %v4806_v58  ;;  %v6857_v58 = vld [vmem:[#allocation27_spill] sm:$0xff] }
 0x2f0   :  { %1715 = vmatprep.subr.bf16.mxu0 %v5323_v54  ;;  %1756 = vmatprep.subr.bf16.mxu1 %v4809_v59  ;;  %v6858_v59 = vld [vmem:[#allocation28_spill] sm:$0xff] }
 0x2f3   :  { %1716 = vmatpush1.bf16.msra.mxu0 %v5327_v55  ;;  %1757 = vmatpush1.bf16.msra.mxu1 %v4813_v60  ;;  %v6859_v60 = vld [vmem:[#allocation29_spill] sm:$0xff] }
 0x2f4   :  { %1809 = vmatprep.subr.bf16.mxu0 %v4820_v61  ;;  %1850 = vmatprep.subr.bf16.mxu1 %v4822_v62  ;;  %v6860_v61 = vld [vmem:[#allocation30_spill] sm:$0xff]  ;;  %v6861_v62 = vld [vmem:[#allocation31_spill] sm:$0xff]  ;;  %v6867_v55 = vld [vmem:[#allocation37_spill] sm:$0xff] }
 0x2f6   :  { %1734 = vmatmul.mubr.bf16.vlgmr.msra.gmra.mxu0 %v5214_v27  ;;  %1775 = vmatmul.mubr.bf16.vlgmr.msra.gmra.mxu1 %v5214_v27  ;;  %v6864_v27 = vld [vmem:[#allocation34_spill] sm:$0xff] }
 0x2f7   :  { %1810 = vmatpush1.bf16.msra.mxu0 %v4824_v63  ;;  %1851 = vmatpush1.bf16.msra.mxu1 %v4826_v1  ;;  %v6862_v63 = vld [vmem:[#allocation32_spill] sm:$0xff]  ;;  %v6863_v1 = vld [vmem:[#allocation33_spill] sm:$0xff] }
 0x2f8   :  { %1811 = vmatprep.subr.bf16.mxu0 %v6855_v56  ;;  %1852 = vmatprep.subr.bf16.mxu1 %v6856_v57  ;;  %v6865_v56 = vld [vmem:[#allocation35_spill] sm:$0xff]  ;;  %v6866_v57 = vld [vmem:[#allocation36_spill] sm:$0xff] }
 0x2f9   :  { %1841 = vmatprep.mubr.bf16.mxu0 %v6779_v44  ;;  %1882 = vmatprep.mubr.bf16.mxu1 %v6779_v44 }
 0x2fb   :  { %1812 = vmatpush1.bf16.msra.mxu0 %v6857_v58  ;;  %1853 = vmatpush1.bf16.msra.mxu1 %v6858_v59  ;;  %v6868_v58 = vld [vmem:[#allocation38_spill] sm:$0xff]  ;;  %v6869_v59 = vld [vmem:[#allocation39_spill] sm:$0xff] }
 0x2fc   :  { %1813 = vmatprep.subr.bf16.mxu0 %v6859_v60  ;;  %1854 = vmatprep.subr.bf16.mxu1 %v6860_v61  ;;  %v6870_v60 = vld [vmem:[#allocation40_spill] sm:$0xff]  ;;  %v6871_v61 = vld [vmem:[#allocation41_spill] sm:$0xff] }
 0x2ff   :  { %1814 = vmatpush1.bf16.msra.mxu0 %v6861_v62  ;;  %1855 = vmatpush1.bf16.msra.mxu1 %v6862_v63  ;;  %v6872_v62 = vld [vmem:[#allocation42_spill] sm:$0xff]  ;;  %v6873_v63 = vld [vmem:[#allocation43_spill] sm:$0xff] }
 0x300   :  { %1815 = vmatprep.subr.bf16.mxu0 %v6863_v1  ;;  %1856 = vmatprep.subr.bf16.mxu1 %v6864_v27  ;;  %v6874_v1 = vld [vmem:[#allocation44_spill] sm:$0xff]  ;;  %v6875_v27 = vld [vmem:[#allocation45_spill] sm:$0xff] }
 0x303   :  { %1816 = vmatpush1.bf16.msra.mxu0 %v6865_v56  ;;  %1857 = vmatpush1.bf16.msra.mxu1 %v6866_v57  ;;  %v6876_v56 = vld [vmem:[#allocation46_spill] sm:$0xff]  ;;  %v6877_v57 = vld [vmem:[#allocation47_spill] sm:$0xff] }
 0x304   :  { %1817 = vmatprep.subr.bf16.mxu0 %v6867_v55  ;;  %1858 = vmatprep.subr.bf16.mxu1 %v6868_v58  ;;  %v6878_v55 = vld [vmem:[#allocation48_spill] sm:$0xff]  ;;  %v6879_v58 = vld [vmem:[#allocation49_spill] sm:$0xff] }
 0x307   :  { %1818 = vmatpush1.bf16.msra.mxu0 %v6869_v59  ;;  %1859 = vmatpush1.bf16.msra.mxu1 %v6870_v60  ;;  %v6880_v59 = vld [vmem:[#allocation50_spill] sm:$0xff]  ;;  %v6881_v60 = vld [vmem:[#allocation51_spill] sm:$0xff] }
 0x308   :  { %1819 = vmatprep.subr.bf16.mxu0 %v6871_v61  ;;  %1860 = vmatprep.subr.bf16.mxu1 %v6872_v62  ;;  %v6882_v61 = vld [vmem:[#allocation52_spill] sm:$0xff]  ;;  %v6883_v62 = vld [vmem:[#allocation53_spill] sm:$0xff] }
 0x30b   :  { %1820 = vmatpush1.bf16.msra.mxu0 %v6873_v63  ;;  %1861 = vmatpush1.bf16.msra.mxu1 %v6874_v1  ;;  %v6884_v63 = vld [vmem:[#allocation54_spill] sm:$0xff] }
 0x30c   :  { %1821 = vmatprep.subr.bf16.mxu0 %v6875_v27  ;;  %1862 = vmatprep.subr.bf16.mxu1 %v6876_v56 }
 0x30f   :  { %1822 = vmatpush1.bf16.msra.mxu0 %v6877_v57  ;;  %1863 = vmatpush1.bf16.msra.mxu1 %v6878_v55 }
 0x310   :  { %1823 = vmatprep.subr.bf16.mxu0 %v6879_v58  ;;  %1864 = vmatprep.subr.bf16.mxu1 %v6880_v59 }
 0x313   :  { %1824 = vmatpush1.bf16.msra.mxu0 %v6881_v60  ;;  %1865 = vmatpush1.bf16.msra.mxu1 %v6882_v61 }
 0x314   :  { %1891 = vmatprep.subr.bf16.mxu0 %v6883_v62  ;;  %1932 = vmatprep.subr.bf16.mxu1 %v6884_v63 }
 0x376   :  { %v1533_v1 = vpop.f32.mrf.mxu0  ;;  %v1574_v27 = vpop.f32.mrf.mxu1 }
 0x378   :  { %v1535_v54 = vpop.f32.mrf.mxu0  ;;  %v1576_v56 = vpop.f32.mrf.mxu1 }
 0x37a   :  { %v1537_v53 = vpop.f32.mrf.mxu0  ;;  %v1578_v57 = vpop.f32.mrf.mxu1 }
 0x37c   :  { %v1538_v52 = vpop.f32.mrf.mxu0  ;;  %v1579_v55 = vpop.f32.mrf.mxu1 }
 0x37d   :  { %v6887_v52 = vld [vmem:[#allocation95_spill] sm:$0xff] }
 0x396   :  { %v1615_v51 = vpop.f32.mrf.mxu0  ;;  %v1656_v58 = vpop.f32.mrf.mxu1 }
 0x397   :  { %v1616_v50 = vadd.f32 %v1615_v51, %v1533_v1  ;;  %v1657_v59 = vadd.f32 %v1656_v58, %v1574_v27 }
 0x398   :  { %v1617_v38 = vpop.f32.mrf.mxu0  ;;  %v1658_v60 = vpop.f32.mrf.mxu1 }
 0x399   :  { %v1663_v61 = vadd.f32 %v1616_v50, %v6885_v3  ;;  %v1618_v47 = vadd.f32 %v1617_v38, %v1535_v54  ;;  %v1659_v62 = vadd.f32 %v1658_v60, %v1576_v56  ;;  %v1665_v57 = vadd.f32 %v1657_v59, %v6887_v52 }
 0x39a   :  { %v1619_v42 = vpop.f32.mrf.mxu0  ;;  %v1660_v63 = vpop.f32.mrf.mxu1 }
 0x39b   :  { %v1668_v23 = vmul.f32 0.5, %v1663_v61  ;;  %v1664_v15 = vadd.f32 %v1618_v47, %v6886_v33 }
 0x39c   :  { %v1620_v2 = vpop.f32.mrf.mxu0  ;;  %v1661_v53 = vpop.f32.mrf.mxu1 }
 0x39d   :  { %4128 = vtanh.f32 %v1668_v23  ;;  %v1672_v55 = vmul.f32 0.5, %v1664_v15  ;;  %v6888_v23 = vld [vmem:[#allocation59_spill] sm:$0xff]  ;;  %v6889_v53 = vld [vmem:[#allocation60_spill] sm:$0xff] }
 0x39f   :  { %4130 = vtanh.f32 %v1672_v55 }
 0x3a0   :  { %4132 = vtanh.f32 %v1665_v57 }
 0x3aa   :  { %v4129_v51 = vpop.eup %4128 }
 0x3ab   :  { %v1670_v1 = vadd.f32 1.0, %v4129_v51 }
 0x3ac   :  { %v4131_v27 = vpop.eup %4130 }
 0x3ad   :  { %v1671_v58 = vmul.f32 0.5, %v1670_v1  ;;  %v1674_v50 = vadd.f32 1.0, %v4131_v27  ;;  %v4133_v38 = vpop.eup %4132  ;;  %v6890_v1 = vld [vmem:[#allocation73_spill] sm:$0xff] }
 0x3af   :  { %v1675_v54 = vmul.f32 0.5, %v1674_v50  ;;  %v1682_v42 = vmul.f32 %v4133_v38, %v1671_v58 }
 0x3b1   :  { %v1681_v56 = vmul.f32 %v1675_v54, %v5197_v24  ;;  %v6891_v24 = vld [vmem:[#allocation74_spill] sm:$0xff] }
 0x3b3   :  { %v5373_v60 = vadd.f32 %v1682_v42, %v1681_v56 }
 0x3b6   :  { %v1735_v2 = vpop.f32.mrf.mxu0  ;;  %v1776_v47 = vpop.f32.mrf.mxu1 }
 0x3b7   :  { %v1783_v61 = vadd.f32 %v1735_v2, %v6888_v23  ;;  %v1785_v27 = vadd.f32 %v1776_v47, %v6890_v1 }
 0x3b8   :  { %v1737_v59 = vpop.f32.mrf.mxu0  ;;  %v1778_v15 = vpop.f32.mrf.mxu1 }
 0x3b9   :  { %v1788_v63 = vmul.f32 0.5, %v1783_v61  ;;  %v1784_v57 = vadd.f32 %v1737_v59, %v6889_v53  ;;  %v1786_v54 = vadd.f32 %v1778_v15, %v6891_v24  ;;  %v5484_v24 = vld [vmem:[#allocation14 + $0xec] ss:$16 sps:$4 sm:$0xff]  }
 0x3ba   :  { %v1739_v55 = vpop.f32.mrf.mxu0  ;;  %v1780_v51 = vpop.f32.mrf.mxu1 }
 0x3bb   :  { %4134 = vtanh.f32 %v1788_v63  ;;  %v1792_v50 = vmul.f32 0.5, %v1784_v57  ;;  %v1797_v42 = vmul.f32 0.5, %v1786_v54  ;;  %v5489_v54 = vld [vmem:[#allocation14 + $0xe0] ss:$16 sps:$4 sm:$0xff]  }
 0x3bc   :  { %v1740_v58 = vpop.f32.mrf.mxu0  ;;  %v1781_v38 = vpop.f32.mrf.mxu1 }
 0x3bd   :  { %4136 = vtanh.f32 %v1792_v50 }
 0x3be   :  { %4138 = vtanh.f32 %v1785_v27  ;;  %v1666_v27 = vadd.f32 %v1659_v62, %v5211_v35  ;;  %v5478_v62 = vld [vmem:[#allocation13 + $0x8] ss:$16 sps:$4 sm:$0xff]  }
 0x3bf   :  { %4140 = vtanh.f32 %v1797_v42  ;;  %v5492_v42 = vld [vmem:[#allocation14 + $0xe8] ss:$16 sps:$4 sm:$0xff]  }
 0x3c0   :  { %v1677_v38 = vmul.f32 0.5, %v1666_v27  ;;  %v5533_v27 = vld [vmem:[#allocation14 + $0x64] ss:$16 sps:$4 sm:$0xff]  }
 0x3c1   :  { %6920 = vst [vmem:[#allocation38_spill] sm:$0xff] %v5533_v27 }
 0x3c8   :  { %v4135_v56 = vpop.eup %4134 }
 0x3c9   :  { %v1790_v2 = vadd.f32 1.0, %v4135_v56  ;;  %v5495_v56 = vld [vmem:[#allocation14 + $0xc4] ss:$16 sps:$4 sm:$0xff]  }
 0x3ca   :  { %v4137_v23 = vpop.eup %4136  ;;  %6908 = vst [vmem:[#allocation26_spill] sm:$0xff] %v5495_v56 }
 0x3cb   :  { %v1791_v52 = vmul.f32 0.5, %v1790_v2  ;;  %v1794_v61 = vadd.f32 1.0, %v4137_v23  ;;  %v4139_v59 = vpop.eup %4138  ;;  %v5498_v2 = vld [vmem:[#allocation14 + $0xcc] ss:$16 sps:$4 sm:$0xff]   ;;  %v5503_v23 = vld [vmem:[#allocation14 + $0xc0] ss:$16 sps:$4 sm:$0xff]  }
 0x3cc   :  { %v4141_v57 = vpop.eup %4140  ;;  %6909 = vst [vmem:[#allocation27_spill] sm:$0xff] %v5498_v2  ;;  %6910 = vst [vmem:[#allocation28_spill] sm:$0xff] %v5503_v23 }
 0x3cd   :  { %v1795_v53 = vmul.f32 0.5, %v1794_v61  ;;  %v1802_v55 = vmul.f32 %v4139_v59, %v1791_v52  ;;  %v1799_v51 = vadd.f32 1.0, %v4141_v57  ;;  %v5481_v52 = vld [vmem:[#allocation14 + $0xe4] ss:$16 sps:$4 sm:$0xff]   ;;  %v5506_v61 = vld [vmem:[#allocation14 + $0xc8] ss:$16 sps:$4 sm:$0xff]  }
 0x3ce   :  { %6911 = vst [vmem:[#allocation29_spill] sm:$0xff] %v5506_v61  ;;  %v5509_v59 = vld [vmem:[#allocation14 + $0xa4] ss:$16 sps:$4 sm:$0xff]  }
 0x3cf   :  { %v1801_v63 = vmul.f32 %v1795_v53, %v5205_v37  ;;  %v1800_v1 = vmul.f32 0.5, %v1799_v51  ;;  %v5458_v37 = vld [vmem:[#allocation13 + $0x4c] ss:$16 sps:$4 sm:$0xff]   ;;  %6912 = vst [vmem:[#allocation30_spill] sm:$0xff] %v5509_v59  ;;  %v5521_v57 = vld [vmem:[#allocation14 + $0x84] ss:$16 sps:$4 sm:$0xff]  }
 0x3d0   :  { %v5512_v53 = vld [vmem:[#allocation14 + $0xac] ss:$16 sps:$4 sm:$0xff]   ;;  %6916 = vst [vmem:[#allocation34_spill] sm:$0xff] %v5521_v57 }
 0x3d1   :  { %v5380_v47 = vadd.f32 %v1802_v55, %v1801_v63  ;;  %6913 = vst [vmem:[#allocation31_spill] sm:$0xff] %v5512_v53  ;;  %v5515_v55 = vld [vmem:[#allocation14 + $0xa0] ss:$16 sps:$4 sm:$0xff]   ;;  %v5518_v63 = vld [vmem:[#allocation14 + $0xa8] ss:$16 sps:$4 sm:$0xff]  }
 0x3d2   :  { %6914 = vst [vmem:[#allocation32_spill] sm:$0xff] %v5515_v55  ;;  %6915 = vst [vmem:[#allocation33_spill] sm:$0xff] %v5518_v63  ;;  %v5524_v51 = vld [vmem:[#allocation14 + $0x8c] ss:$16 sps:$4 sm:$0xff]  }
 0x3d3   :  { %4142 = vtanh.f32 %v5380_v47  ;;  %6917 = vst [vmem:[#allocation35_spill] sm:$0xff] %v5524_v51 }
 0x3d4   :  { %4144 = vtanh.f32 %v1677_v38  ;;  %v5542_v38 = vld [vmem:[#allocation14 + $0x68] ss:$16 sps:$4 sm:$0xff]  }
 0x3d5   :  { %4146 = vtanh.f32 %v5373_v60  ;;  %6923 = vst [vmem:[#allocation41_spill] sm:$0xff] %v5542_v38 }
 0x3e0   :  { %v4143_v15 = vpop.eup %4142 }
 0x3e1   :  { %v1805_v50 = vmul.f32 %v4143_v15, %v1800_v1  ;;  %v5527_v1 = vld [vmem:[#allocation14 + $0x80] ss:$16 sps:$4 sm:$0xff]   ;;  %v5530_v15 = vld [vmem:[#allocation14 + $0x88] ss:$16 sps:$4 sm:$0xff]  }
 0x3e2   :  { %6918 = vst [vmem:[#allocation36_spill] sm:$0xff] %v5527_v1  ;;  %6919 = vst [vmem:[#allocation37_spill] sm:$0xff] %v5530_v15 }
 0x3e3   :  { %v5384_v58 = vpack.c.bf16 %v1805_v50, %v1805_v50  ;;  %v5536_v50 = vld [vmem:[#allocation14 + $0x6c] ss:$16 sps:$4 sm:$0xff]  }
 0x3e4   :  { %6921 = vst [vmem:[#allocation39_spill] sm:$0xff] %v5536_v50 }
 0x3e5   :  { %1842 = vmatmul.mubr.bf16.vlgmr.msra.gmra.mxu0 %v5384_v58  ;;  %1883 = vmatmul.mubr.bf16.vlgmr.msra.gmra.mxu1 %v5384_v58 }
 0x3e6   :  { %1892 = vmatpush1.bf16.msra.mxu0 %v5004_v7  ;;  %1933 = vmatpush1.bf16.msra.mxu1 %v5006_v40  ;;  %v4145_v7 = vpop.eup %4144 }
 0x3e7   :  { %1893 = vmatprep.subr.bf16.mxu0 %v5010_v20  ;;  %1934 = vmatprep.subr.bf16.mxu1 %v5012_v43  ;;  %v1679_v40 = vadd.f32 1.0, %v4145_v7  ;;  %v4147_v20 = vpop.eup %4146  ;;  %v5545_v7 = vld [vmem:[#allocation14 + $0x44] ss:$16 sps:$4 sm:$0xff]  }
 0x3e8   :  { %1923 = vmatprep.mubr.bf16.mxu0 %v6779_v44  ;;  %1964 = vmatprep.mubr.bf16.mxu1 %v6779_v44  ;;  %6924 = vst [vmem:[#allocation42_spill] sm:$0xff] %v5545_v7 }
 0x3e9   :  { %v1680_v43 = vmul.f32 0.5, %v1679_v40  ;;  %v5548_v40 = vld [vmem:[#allocation14 + $0x4c] ss:$16 sps:$4 sm:$0xff]  }
 0x3ea   :  { %1894 = vmatpush1.bf16.msra.mxu0 %v5018_v12  ;;  %1935 = vmatpush1.bf16.msra.mxu1 %v5020_v36  ;;  %v6896_v36 = vld [vmem:[#allocation85_spill] sm:$0xff]  ;;  %6925 = vst [vmem:[#allocation43_spill] sm:$0xff] %v5548_v40 }
 0x3eb   :  { %1895 = vmatprep.subr.bf16.mxu0 %v5024_v11  ;;  %1936 = vmatprep.subr.bf16.mxu1 %v5026_v41  ;;  %v5419_v12 = vmul.f32 %v4147_v20, %v1680_v43  ;;  %v6897_v11 = vld [vmem:[#allocation86_spill] sm:$0xff]  ;;  %v5551_v20 = vld [vmem:[#allocation14 + $0x40] ss:$16 sps:$4 sm:$0xff]  }
 0x3ec   :  { %v5438_v41 = vld [vmem:[#allocation13 + $0xa8] ss:$16 sps:$4 sm:$0xff]   ;;  %6926 = vst [vmem:[#allocation44_spill] sm:$0xff] %v5551_v20 }
 0x3ed   :  { %6892 = vst [vmem:[#allocation25_spill] sm:$0xff] %v5419_v12  ;;  %v5554_v43 = vld [vmem:[#allocation14 + $0x48] ss:$16 sps:$4 sm:$0xff]  }
 0x3ee   :  { %1896 = vmatpush1.bf16.msra.mxu0 %v5032_v10  ;;  %1937 = vmatpush1.bf16.msra.mxu1 %v5034_v0  ;;  %v6898_v10 = vld [vmem:[#allocation87_spill] sm:$0xff]  ;;  %v5442_v0 = vld [vmem:[#allocation13 + $0x8c] ss:$16 sps:$4 sm:$0xff]   ;;  %6927 = vst [vmem:[#allocation45_spill] sm:$0xff] %v5554_v43 }
 0x3ef   :  { %1897 = vmatprep.subr.bf16.mxu0 %v5038_v34  ;;  %1938 = vmatprep.subr.bf16.mxu1 %v5040_v26  ;;  %v6899_v34 = vld [vmem:[#allocation88_spill] sm:$0xff] }
 0x3f0   :  { %v5446_v26 = vld [vmem:[#allocation13 + $0x88] ss:$16 sps:$4 sm:$0xff]  }
 0x3f2   :  { %1898 = vmatpush1.bf16.msra.mxu0 %v5044_v32  ;;  %1939 = vmatpush1.bf16.msra.mxu1 %v6830_v16  ;;  %v6900_v32 = vld [vmem:[#allocation89_spill] sm:$0xff]  ;;  %v6903_v16 = vld [vmem:[#allocation92_spill] sm:$0xff] }
 0x3f3   :  { %1899 = vmatprep.subr.bf16.mxu0 %v6831_v9  ;;  %1940 = vmatprep.subr.bf16.mxu1 %v6832_v31  ;;  %v5462_v9 = vld [vmem:[#allocation13 + $0x48] ss:$16 sps:$4 sm:$0xff]   ;;  %v6904_v31 = vld [vmem:[#allocation93_spill] sm:$0xff] }
 0x3f6   :  { %1900 = vmatpush1.bf16.msra.mxu0 %v6833_v30  ;;  %1941 = vmatpush1.bf16.msra.mxu1 %v6834_v48  ;;  %v5466_v30 = vld [vmem:[#allocation13 + $0x2c] ss:$16 sps:$4 sm:$0xff]  }
 0x3f7   :  { %1901 = vmatprep.subr.bf16.mxu0 %v6835_v8  ;;  %1942 = vmatprep.subr.bf16.mxu1 %v6836_v4  ;;  %v6905_v48 = vld [vmem:[#allocation96_spill] sm:$0xff]  ;;  %v6906_v4 = vld [vmem:[#allocation97_spill] sm:$0xff] }
 0x3f8   :  { %v5470_v8 = vld [vmem:[#allocation13 + $0x28] ss:$16 sps:$4 sm:$0xff]  }
 0x3fa   :  { %1902 = vmatpush1.bf16.msra.mxu0 %v6837_v49  ;;  %1943 = vmatpush1.bf16.msra.mxu1 %v5070_v6  ;;  %v1691_v6 = vpack.c.bf16 %v5419_v12, %v5419_v12  ;;  %v5474_v49 = vld [vmem:[#allocation13 + $0xc] ss:$16 sps:$4 sm:$0xff]  }
 0x3fb   :  { %1903 = vmatprep.subr.bf16.mxu0 %v5074_v13  ;;  %1944 = vmatprep.subr.bf16.mxu1 %v6838_v19  ;;  %v5450_v13 = vld [vmem:[#allocation13 + $0x6c] ss:$16 sps:$4 sm:$0xff]  }
 0x3fc   :  { %v6907_v19 = vld [vmem:[#allocation98_spill] sm:$0xff] }
 0x3fd   :  { %v5560_v12 = vld [vmem:[#allocation14 + $0x2c] ss:$16 sps:$4 sm:$0xff]  }
 0x3fe   :  { %1904 = vmatpush1.bf16.msra.mxu0 %v5080_v45  ;;  %1945 = vmatpush1.bf16.msra.mxu1 %v5082_v18  ;;  %v6901_v45 = vld [vmem:[#allocation90_spill] sm:$0xff]  ;;  %6929 = vst [vmem:[#allocation47_spill] sm:$0xff] %v5560_v12 }
 0x3ff   :  { %1905 = vmatprep.subr.bf16.mxu0 %v5086_v25  ;;  %1946 = vmatprep.subr.bf16.mxu1 %v5088_v28  ;;  %v6895_v28 = vld [vmem:[#allocation72_spill] sm:$0xff]  ;;  %v6902_v25 = vld [vmem:[#allocation91_spill] sm:$0xff] }
 0x400   :  { %v5454_v18 = vld [vmem:[#allocation13 + $0x68] ss:$16 sps:$4 sm:$0xff]  }
 0x402   :  { %1906 = vmatpush1.bf16.msra.mxu0 %v5092_v39  ;;  %1947 = vmatpush1.bf16.msra.mxu1 %v5094_v22  ;;  %v6893_v22 = vld [vmem:[#allocation56_spill] sm:$0xff]  ;;  %v6894_v39 = vld [vmem:[#allocation71_spill] sm:$0xff] }
 0x403   :  { %2011 = vmatprep.subr.bf16.mxu0 %v5255_v17  ;;  %2052 = vmatprep.subr.bf16.mxu1 %v5258_v21 }
 0x405   :  { %1924 = vmatmul.mubr.bf16.vlgmr.msra.gmra.mxu0 %v1691_v6  ;;  %1965 = vmatmul.mubr.bf16.vlgmr.msra.gmra.mxu1 %v1691_v6  ;;  %v5557_v6 = vld [vmem:[#allocation14 + $0x24] ss:$16 sps:$4 sm:$0xff]  }
 0x406   :  { %2012 = vmatpush1.bf16.msra.mxu0 %v5261_v46  ;;  %2053 = vmatpush1.bf16.msra.mxu1 %v5264_v5  ;;  %6928 = vst [vmem:[#allocation46_spill] sm:$0xff] %v5557_v6 }
 0x407   :  { %2013 = vmatprep.subr.bf16.mxu0 %v5267_v29  ;;  %2054 = vmatprep.subr.bf16.mxu1 %v5270_v14 }
 0x408   :  { %2043 = vmatprep.mubr.bf16.mxu0 %v6779_v44  ;;  %2084 = vmatprep.mubr.bf16.mxu1 %v6779_v44 }
 0x40a   :  { %2014 = vmatpush1.bf16.msra.mxu0 %v6893_v22  ;;  %2055 = vmatpush1.bf16.msra.mxu1 %v6894_v39 }
 0x40b   :  { %2015 = vmatprep.subr.bf16.mxu0 %v6895_v28  ;;  %2056 = vmatprep.subr.bf16.mxu1 %v6896_v36 }
 0x40e   :  { %2016 = vmatpush1.bf16.msra.mxu0 %v6897_v11  ;;  %2057 = vmatpush1.bf16.msra.mxu1 %v5438_v41 }
 0x40f   :  { %2017 = vmatprep.subr.bf16.mxu0 %v6898_v10  ;;  %2058 = vmatprep.subr.bf16.mxu1 %v5442_v0 }
 0x412   :  { %2018 = vmatpush1.bf16.msra.mxu0 %v6899_v34  ;;  %2059 = vmatpush1.bf16.msra.mxu1 %v5446_v26 }
 0x413   :  { %2019 = vmatprep.subr.bf16.mxu0 %v6900_v32  ;;  %2060 = vmatprep.subr.bf16.mxu1 %v5450_v13 }
 0x416   :  { %2020 = vmatpush1.bf16.msra.mxu0 %v6901_v45  ;;  %2061 = vmatpush1.bf16.msra.mxu1 %v5454_v18 }
 0x417   :  { %2021 = vmatprep.subr.bf16.mxu0 %v6902_v25  ;;  %2062 = vmatprep.subr.bf16.mxu1 %v5458_v37 }
 0x41a   :  { %2022 = vmatpush1.bf16.msra.mxu0 %v6903_v16  ;;  %2063 = vmatpush1.bf16.msra.mxu1 %v5462_v9 }
 0x41b   :  { %2023 = vmatprep.subr.bf16.mxu0 %v6904_v31  ;;  %2064 = vmatprep.subr.bf16.mxu1 %v5466_v30 }
 0x41e   :  { %2024 = vmatpush1.bf16.msra.mxu0 %v6905_v48  ;;  %2065 = vmatpush1.bf16.msra.mxu1 %v5470_v8 }
 0x41f   :  { %2025 = vmatprep.subr.bf16.mxu0 %v6906_v4  ;;  %2066 = vmatprep.subr.bf16.mxu1 %v5474_v49 }
 0x422   :  { %2026 = vmatpush1.bf16.msra.mxu0 %v6907_v19  ;;  %2067 = vmatpush1.bf16.msra.mxu1 %v5478_v62 }
 0x423   :  { %2119 = vmatprep.subr.bf16.mxu0 %v5481_v52  ;;  %2160 = vmatprep.subr.bf16.mxu1 %v5484_v24 }
 0x425   :  { %2044 = vmatmul.mubr.bf16.vlgmr.msra.gmra.mxu0 %v5384_v58  ;;  %2085 = vmatmul.mubr.bf16.vlgmr.msra.gmra.mxu1 %v5384_v58  ;;  %v5539_v58 = vld [vmem:[#allocation14 + $0x60] ss:$16 sps:$4 sm:$0xff]  }
 0x426   :  { %2120 = vmatpush1.bf16.msra.mxu0 %v5489_v54  ;;  %2161 = vmatpush1.bf16.msra.mxu1 %v5492_v42  ;;  %6922 = vst [vmem:[#allocation40_spill] sm:$0xff] %v5539_v58 }
 0x427   :  { %2121 = vmatprep.subr.bf16.mxu0 %v5495_v56  ;;  %2162 = vmatprep.subr.bf16.mxu1 %v5498_v2 }
 0x428   :  { %2151 = vmatprep.mubr.bf16.mxu0 %v6779_v44  ;;  %2192 = vmatprep.mubr.bf16.mxu1 %v6779_v44 }
 0x42a   :  { %2122 = vmatpush1.bf16.msra.mxu0 %v5503_v23  ;;  %2163 = vmatpush1.bf16.msra.mxu1 %v5506_v61 }
 0x42b   :  { %2123 = vmatprep.subr.bf16.mxu0 %v5509_v59  ;;  %2164 = vmatprep.subr.bf16.mxu1 %v5512_v53 }
 0x42e   :  { %2124 = vmatpush1.bf16.msra.mxu0 %v5515_v55  ;;  %2165 = vmatpush1.bf16.msra.mxu1 %v5518_v63 }
 0x42f   :  { %2125 = vmatprep.subr.bf16.mxu0 %v5521_v57  ;;  %2166 = vmatprep.subr.bf16.mxu1 %v5524_v51 }
 0x432   :  { %2126 = vmatpush1.bf16.msra.mxu0 %v5527_v1  ;;  %2167 = vmatpush1.bf16.msra.mxu1 %v5530_v15 }
 0x433   :  { %2127 = vmatprep.subr.bf16.mxu0 %v5533_v27  ;;  %2168 = vmatprep.subr.bf16.mxu1 %v5536_v50 }
 0x436   :  { %2128 = vmatpush1.bf16.msra.mxu0 %v5539_v58  ;;  %2169 = vmatpush1.bf16.msra.mxu1 %v5542_v38 }
 0x437   :  { %2129 = vmatprep.subr.bf16.mxu0 %v5545_v7  ;;  %2170 = vmatprep.subr.bf16.mxu1 %v5548_v40  ;;  %v5563_v7 = vld [vmem:[#allocation14 + $0x20] ss:$16 sps:$4 sm:$0xff]   ;;  %v5566_v40 = vld [vmem:[#allocation14 + $0x28] ss:$16 sps:$4 sm:$0xff]  }
 0x438   :  { %6930 = vst [vmem:[#allocation48_spill] sm:$0xff] %v5563_v7  ;;  %6931 = vst [vmem:[#allocation49_spill] sm:$0xff] %v5566_v40 }
 0x43a   :  { %2130 = vmatpush1.bf16.msra.mxu0 %v5551_v20  ;;  %2171 = vmatpush1.bf16.msra.mxu1 %v5554_v43  ;;  %v5569_v20 = vld [vmem:[#allocation14 + $0x4] ss:$16 sps:$4 sm:$0xff]   ;;  %v5572_v43 = vld [vmem:[#allocation14 + $0xc] ss:$16 sps:$4 sm:$0xff]  }
 0x43b   :  { %2131 = vmatprep.subr.bf16.mxu0 %v5557_v6  ;;  %2172 = vmatprep.subr.bf16.mxu1 %v5560_v12  ;;  %6932 = vst [vmem:[#allocation50_spill] sm:$0xff] %v5569_v20  ;;  %6933 = vst [vmem:[#allocation51_spill] sm:$0xff] %v5572_v43  ;;  %v5575_v6 = vld [vmem:[#allocation14] ss:$16 sps:$4 sm:$0xff]   ;;  %v5578_v12 = vld [vmem:[#allocation14 + $0x8] ss:$16 sps:$4 sm:$0xff]  }
 0x43c   :  { %6934 = vst [vmem:[#allocation52_spill] sm:$0xff] %v5575_v6  ;;  %6935 = vst [vmem:[#allocation53_spill] sm:$0xff] %v5578_v12 }
 0x43e   :  { %2132 = vmatpush1.bf16.msra.mxu0 %v5563_v7  ;;  %2173 = vmatpush1.bf16.msra.mxu1 %v5566_v40  ;;  %v5581_v7 = vld [vmem:[#allocation16 + $0xe4] ss:$16 sps:$4 sm:$0xff]   ;;  %v5584_v40 = vld [vmem:[#allocation16 + $0xec] ss:$16 sps:$4 sm:$0xff]  }
 0x43f   :  { %2133 = vmatprep.subr.bf16.mxu0 %v5569_v20  ;;  %2174 = vmatprep.subr.bf16.mxu1 %v5572_v43  ;;  %6936 = vst [vmem:[#allocation54_spill] sm:$0xff] %v5581_v7  ;;  %6937 = vst [vmem:[#allocation55_spill] sm:$0xff] %v5584_v40 }
 0x442   :  { %2134 = vmatpush1.bf16.msra.mxu0 %v5575_v6  ;;  %2175 = vmatpush1.bf16.msra.mxu1 %v5578_v12 }
 0x443   :  { %2201 = vmatprep.subr.bf16.mxu0 %v5581_v7  ;;  %2242 = vmatprep.subr.bf16.mxu1 %v5584_v40 }
 0x4a5   :  { %v1843_v20 = vpop.f32.mrf.mxu0  ;;  %v1884_v38 = vpop.f32.mrf.mxu1 }
 0x4a7   :  { %v1845_v58 = vpop.f32.mrf.mxu0  ;;  %v1886_v43 = vpop.f32.mrf.mxu1 }
 0x4a9   :  { %v1847_v50 = vpop.f32.mrf.mxu0  ;;  %v1888_v27 = vpop.f32.mrf.mxu1 }
 0x4ab   :  { %v1848_v15 = vpop.f32.mrf.mxu0  ;;  %v1889_v6 = vpop.f32.mrf.mxu1 }
 0x4ac   :  { %v6938_v15 = vld [vmem:[#allocation95_spill] sm:$0xff] }
 0x4c5   :  { %v1925_v1 = vpop.f32.mrf.mxu0  ;;  %v1966_v51 = vpop.f32.mrf.mxu1 }
 0x4c6   :  { %v1926_v57 = vadd.f32 %v1925_v1, %v1843_v20  ;;  %v1967_v12 = vadd.f32 %v1966_v51, %v1884_v38 }
 0x4c7   :  { %v1927_v63 = vpop.f32.mrf.mxu0  ;;  %v1968_v55 = vpop.f32.mrf.mxu1 }
 0x4c8   :  { %v1973_v7 = vadd.f32 %v1926_v57, %v6885_v3  ;;  %v1928_v53 = vadd.f32 %v1927_v63, %v1845_v58  ;;  %v1969_v59 = vadd.f32 %v1968_v55, %v1886_v43  ;;  %v1975_v27 = vadd.f32 %v1967_v12, %v6938_v15 }
 0x4c9   :  { %v1929_v61 = vpop.f32.mrf.mxu0  ;;  %v1970_v40 = vpop.f32.mrf.mxu1 }
 0x4ca   :  { %v1978_v23 = vmul.f32 0.5, %v1973_v7  ;;  %v1974_v2 = vadd.f32 %v1928_v53, %v6886_v33  ;;  %v6940_v40 = vld [vmem:[#allocation62_spill] sm:$0xff] }
 0x4cb   :  { %v1930_v56 = vpop.f32.mrf.mxu0  ;;  %v1971_v50 = vpop.f32.mrf.mxu1 }
 0x4cc   :  { %4148 = vtanh.f32 %v1978_v23  ;;  %v1982_v6 = vmul.f32 0.5, %v1974_v2  ;;  %v6939_v23 = vld [vmem:[#allocation58_spill] sm:$0xff]  ;;  %v6941_v2 = vld [vmem:[#allocation61_spill] sm:$0xff] }
 0x4cd   :  { %v346_v12 = vadd.f32 %v6940_v40, %v6939_v23 }
 0x4ce   :  { %4150 = vtanh.f32 %v1982_v6 }
 0x4cf   :  { %4152 = vtanh.f32 %v1975_v27 }
 0x4d9   :  { %v4149_v51 = vpop.eup %4148 }
 0x4da   :  { %v1980_v1 = vadd.f32 1.0, %v4149_v51 }
 0x4db   :  { %v4151_v38 = vpop.eup %4150 }
 0x4dc   :  { %v1981_v20 = vmul.f32 0.5, %v1980_v1  ;;  %v1984_v57 = vadd.f32 1.0, %v4151_v38  ;;  %v4153_v63 = vpop.eup %4152 }
 0x4de   :  { %v1985_v55 = vmul.f32 0.5, %v1984_v57  ;;  %v1992_v61 = vmul.f32 %v4153_v63, %v1981_v20  ;;  %v6942_v57 = vld [vmem:[#allocation75_spill] sm:$0xff] }
 0x4e0   :  { %v1991_v58 = vmul.f32 %v1985_v55, %v5373_v60 }
 0x4e2   :  { %v5591_v7 = vadd.f32 %v1992_v61, %v1991_v58  ;;  %v6943_v61 = vld [vmem:[#allocation76_spill] sm:$0xff] }
 0x4e5   :  { %v2045_v56 = vpop.f32.mrf.mxu0  ;;  %v2086_v53 = vpop.f32.mrf.mxu1 }
 0x4e6   :  { %v2093_v43 = vadd.f32 %v2045_v56, %v6941_v2  ;;  %v2095_v20 = vadd.f32 %v2086_v53, %v6942_v57  ;;  %v1976_v57 = vadd.f32 %v1969_v59, %v5211_v35  ;;  %v5616_v59 = vld [vmem:[#allocation16 + $0xcc] ss:$16 sps:$4 sm:$0xff]  }
 0x4e7   :  { %v2047_v50 = vpop.f32.mrf.mxu0  ;;  %v2088_v27 = vpop.f32.mrf.mxu1 }
 0x4e8   :  { %v2098_v6 = vmul.f32 0.5, %v2093_v43  ;;  %v2094_v51 = vadd.f32 %v2047_v50, %v346_v12  ;;  %v2096_v58 = vadd.f32 %v2088_v27, %v6943_v61  ;;  %v5627_v61 = vld [vmem:[#allocation16 + $0xa4] ss:$16 sps:$4 sm:$0xff]  }
 0x4e9   :  { %v2049_v1 = vpop.f32.mrf.mxu0  ;;  %v2090_v38 = vpop.f32.mrf.mxu1 }
 0x4ea   :  { %4154 = vtanh.f32 %v2098_v6  ;;  %v2102_v63 = vmul.f32 0.5, %v2094_v51  ;;  %v2107_v15 = vmul.f32 0.5, %v2096_v58  ;;  %v5630_v58 = vld [vmem:[#allocation16 + $0xac] ss:$16 sps:$4 sm:$0xff]  }
 0x4eb   :  { %v2050_v60 = vpop.f32.mrf.mxu0  ;;  %v2091_v55 = vpop.f32.mrf.mxu1 }
 0x4ec   :  { %4156 = vtanh.f32 %v2102_v63  ;;  %v5621_v60 = vld [vmem:[#allocation16 + $0xc0] ss:$16 sps:$4 sm:$0xff]   ;;  %v5624_v55 = vld [vmem:[#allocation16 + $0xc8] ss:$16 sps:$4 sm:$0xff]  }
 0x4ed   :  { %4158 = vtanh.f32 %v2095_v20 }
 0x4ee   :  { %4160 = vtanh.f32 %v2107_v15  ;;  %v5613_v15 = vld [vmem:[#allocation16 + $0xc4] ss:$16 sps:$4 sm:$0xff]  }
 0x4f7   :  { %v4155_v40 = vpop.eup %4154 }
 0x4f8   :  { %v2100_v23 = vadd.f32 1.0, %v4155_v40  ;;  %v5633_v40 = vld [vmem:[#allocation16 + $0xa0] ss:$16 sps:$4 sm:$0xff]  }
 0x4f9   :  { %v4157_v56 = vpop.eup %4156 }
 0x4fa   :  { %v2101_v2 = vmul.f32 0.5, %v2100_v23  ;;  %v2104_v33 = vadd.f32 1.0, %v4157_v56  ;;  %v4159_v12 = vpop.eup %4158  ;;  %v1987_v23 = vmul.f32 0.5, %v1976_v57  ;;  %v5636_v56 = vld [vmem:[#allocation16 + $0xa8] ss:$16 sps:$4 sm:$0xff]  }
 0x4fb   :  { %v4161_v51 = vpop.eup %4160  ;;  %v5664_v57 = vld [vmem:[#allocation16 + $0x44] ss:$16 sps:$4 sm:$0xff]  }
 0x4fc   :  { %v2105_v43 = vmul.f32 0.5, %v2104_v33  ;;  %v2112_v50 = vmul.f32 %v4159_v12, %v2101_v2  ;;  %v2109_v1 = vadd.f32 1.0, %v4161_v51  ;;  %v5607_v33 = vld [vmem:[#allocation16 + $0xe0] ss:$16 sps:$4 sm:$0xff]   ;;  %v5640_v2 = vld [vmem:[#allocation16 + $0x84] ss:$16 sps:$4 sm:$0xff]  }
 0x4fd   :  { %v5643_v12 = vld [vmem:[#allocation16 + $0x8c] ss:$16 sps:$4 sm:$0xff]   ;;  %6949 = vst [vmem:[#allocation71_spill] sm:$0xff] %v5664_v57 }
 0x4fe   :  { %v2111_v6 = vmul.f32 %v2105_v43, %v5380_v47  ;;  %v2110_v38 = vmul.f32 0.5, %v2109_v1  ;;  %v5610_v47 = vld [vmem:[#allocation16 + $0xe8] ss:$16 sps:$4 sm:$0xff]   ;;  %v5646_v43 = vld [vmem:[#allocation16 + $0x80] ss:$16 sps:$4 sm:$0xff]  }
 0x4ff   :  { %v5655_v51 = vld [vmem:[#allocation16 + $0x6c] ss:$16 sps:$4 sm:$0xff]  }
 0x500   :  { %v5599_v53 = vadd.f32 %v2112_v50, %v2111_v6  ;;  %v5649_v50 = vld [vmem:[#allocation16 + $0x88] ss:$16 sps:$4 sm:$0xff]   ;;  %v5652_v6 = vld [vmem:[#allocation16 + $0x64] ss:$16 sps:$4 sm:$0xff]   ;;  %6946 = vst [vmem:[#allocation73_spill] sm:$0xff] %v5655_v51 }
 0x501   :  { %6944 = vst [vmem:[#allocation59_spill] sm:$0xff] %v5649_v50  ;;  %6945 = vst [vmem:[#allocation60_spill] sm:$0xff] %v5652_v6 }
 0x502   :  { %4162 = vtanh.f32 %v5599_v53 }
 0x503   :  { %4164 = vtanh.f32 %v1987_v23 }
 0x504   :  { %4166 = vtanh.f32 %v5591_v7 }
 0x50f   :  { %v4163_v27 = vpop.eup %4162 }
 0x510   :  { %v2115_v20 = vmul.f32 %v4163_v27, %v2110_v38  ;;  %v4165_v1 = vpop.eup %4164  ;;  %v5658_v38 = vld [vmem:[#allocation16 + $0x60] ss:$16 sps:$4 sm:$0xff]   ;;  %v5661_v27 = vld [vmem:[#allocation16 + $0x68] ss:$16 sps:$4 sm:$0xff]  }
 0x511   :  { %6947 = vst [vmem:[#allocation74_spill] sm:$0xff] %v5658_v38  ;;  %6948 = vst [vmem:[#allocation56_spill] sm:$0xff] %v5661_v27  ;;  %v1989_v23 = vadd.f32 1.0, %v4165_v1  ;;  %v5685_v1 = vld [vmem:[#allocation16 + $0x28] ss:$16 sps:$4 sm:$0xff]  }
 0x512   :  { %v5603_v63 = vpack.c.bf16 %v2115_v20, %v2115_v20  ;;  %v5667_v20 = vld [vmem:[#allocation16 + $0x4c] ss:$16 sps:$4 sm:$0xff]   ;;  %6955 = vst [vmem:[#allocation89_spill] sm:$0xff] %v5685_v1 }
 0x513   :  { %6950 = vst [vmem:[#allocation72_spill] sm:$0xff] %v5667_v20 }
 0x514   :  { %2152 = vmatmul.mubr.bf16.vlgmr.msra.gmra.mxu0 %v5603_v63  ;;  %2193 = vmatmul.mubr.bf16.vlgmr.msra.gmra.mxu1 %v5603_v63 }
 0x515   :  { %2202 = vmatpush1.bf16.msra.mxu0 %v5607_v33  ;;  %2243 = vmatpush1.bf16.msra.mxu1 %v5610_v47 }
 0x516   :  { %2203 = vmatprep.subr.bf16.mxu0 %v5613_v15  ;;  %2244 = vmatprep.subr.bf16.mxu1 %v5616_v59 }
 0x517   :  { %2233 = vmatprep.mubr.bf16.mxu0 %v6779_v44  ;;  %2274 = vmatprep.mubr.bf16.mxu1 %v6779_v44 }
 0x519   :  { %2204 = vmatpush1.bf16.msra.mxu0 %v5621_v60  ;;  %2245 = vmatpush1.bf16.msra.mxu1 %v5624_v55 }
 0x51a   :  { %2205 = vmatprep.subr.bf16.mxu0 %v5627_v61  ;;  %2246 = vmatprep.subr.bf16.mxu1 %v5630_v58 }
 0x51d   :  { %2206 = vmatpush1.bf16.msra.mxu0 %v5633_v40  ;;  %2247 = vmatpush1.bf16.msra.mxu1 %v5636_v56 }
 0x51e   :  { %2207 = vmatprep.subr.bf16.mxu0 %v5640_v2  ;;  %2248 = vmatprep.subr.bf16.mxu1 %v5643_v12 }
 0x521   :  { %2208 = vmatpush1.bf16.msra.mxu0 %v5646_v43  ;;  %2249 = vmatpush1.bf16.msra.mxu1 %v5649_v50  ;;  %v1990_v50 = vmul.f32 0.5, %v1989_v23  ;;  %v5699_v23 = vld [vmem:[#allocation16 + $0x8] ss:$16 sps:$4 sm:$0xff]  }
 0x522   :  { %2209 = vmatprep.subr.bf16.mxu0 %v5652_v6  ;;  %2250 = vmatprep.subr.bf16.mxu1 %v5655_v51  ;;  %v5670_v6 = vld [vmem:[#allocation16 + $0x40] ss:$16 sps:$4 sm:$0xff]   ;;  %v5673_v51 = vld [vmem:[#allocation16 + $0x48] ss:$16 sps:$4 sm:$0xff]  }
 0x523   :  { %6951 = vst [vmem:[#allocation85_spill] sm:$0xff] %v5670_v6  ;;  %6952 = vst [vmem:[#allocation86_spill] sm:$0xff] %v5673_v51 }
 0x525   :  { %2210 = vmatpush1.bf16.msra.mxu0 %v5658_v38  ;;  %2251 = vmatpush1.bf16.msra.mxu1 %v5661_v27  ;;  %v5676_v38 = vld [vmem:[#allocation16 + $0x24] ss:$16 sps:$4 sm:$0xff]   ;;  %v5679_v27 = vld [vmem:[#allocation16 + $0x2c] ss:$16 sps:$4 sm:$0xff]  }
 0x526   :  { %2211 = vmatprep.subr.bf16.mxu0 %v5664_v57  ;;  %2252 = vmatprep.subr.bf16.mxu1 %v5667_v20  ;;  %6953 = vst [vmem:[#allocation87_spill] sm:$0xff] %v5676_v38  ;;  %6954 = vst [vmem:[#allocation88_spill] sm:$0xff] %v5679_v27  ;;  %v4167_v57 = vpop.eup %4166  ;;  %v5682_v20 = vld [vmem:[#allocation16 + $0x20] ss:$16 sps:$4 sm:$0xff]  }
 0x529   :  { %2212 = vmatpush1.bf16.msra.mxu0 %v5670_v6  ;;  %2253 = vmatpush1.bf16.msra.mxu1 %v5673_v51  ;;  %v5688_v6 = vld [vmem:[#allocation16 + $0x4] ss:$16 sps:$4 sm:$0xff]   ;;  %v5691_v51 = vld [vmem:[#allocation16 + $0xc] ss:$16 sps:$4 sm:$0xff]  }
 0x52a   :  { %2213 = vmatprep.subr.bf16.mxu0 %v5676_v38  ;;  %2254 = vmatprep.subr.bf16.mxu1 %v5679_v27  ;;  %v5694_v38 = vmul.f32 %v4167_v57, %v1990_v50  ;;  %v5696_v27 = vld [vmem:[#allocation16] ss:$16 sps:$4 sm:$0xff]   ;;  %v6979_v50 = vld [vmem:[#allocation48_spill] sm:$0xff] }
 0x52b   :  { %v6980_v57 = vld [vmem:[#allocation49_spill] sm:$0xff] }
 0x52c   :  { %6956 = vst [vmem:[#allocation90_spill] sm:$0xff] %v5694_v38 }
 0x52d   :  { %2214 = vmatpush1.bf16.msra.mxu0 %v5682_v20  ;;  %2255 = vmatpush1.bf16.msra.mxu1 %v5685_v1  ;;  %v2001_v1 = vpack.c.bf16 %v5694_v38, %v5694_v38  ;;  %v6982_v38 = vld [vmem:[#allocation51_spill] sm:$0xff] }
 0x52e   :  { %2215 = vmatprep.subr.bf16.mxu0 %v5688_v6  ;;  %2256 = vmatprep.subr.bf16.mxu1 %v5691_v51 }
 0x531   :  { %2216 = vmatpush1.bf16.msra.mxu0 %v5696_v27  ;;  %2257 = vmatpush1.bf16.msra.mxu1 %v5699_v23 }
 0x532   :  { %2321 = vmatprep.subr.bf16.mxu0 %v5255_v17  ;;  %2362 = vmatprep.subr.bf16.mxu1 %v5258_v21  ;;  %v6957_v17 = vld [vmem:[#allocation26_spill] sm:$0xff]  ;;  %v6958_v21 = vld [vmem:[#allocation27_spill] sm:$0xff] }
 0x534   :  { %2234 = vmatmul.mubr.bf16.vlgmr.msra.gmra.mxu0 %v2001_v1  ;;  %2275 = vmatmul.mubr.bf16.vlgmr.msra.gmra.mxu1 %v2001_v1  ;;  %v6981_v1 = vld [vmem:[#allocation50_spill] sm:$0xff] }
 0x535   :  { %2322 = vmatpush1.bf16.msra.mxu0 %v5261_v46  ;;  %2363 = vmatpush1.bf16.msra.mxu1 %v5264_v5  ;;  %v6959_v46 = vld [vmem:[#allocation28_spill] sm:$0xff]  ;;  %v6960_v5 = vld [vmem:[#allocation29_spill] sm:$0xff] }
 0x536   :  { %2323 = vmatprep.subr.bf16.mxu0 %v5267_v29  ;;  %2364 = vmatprep.subr.bf16.mxu1 %v5270_v14  ;;  %v6961_v29 = vld [vmem:[#allocation30_spill] sm:$0xff]  ;;  %v6962_v14 = vld [vmem:[#allocation31_spill] sm:$0xff] }
 0x537   :  { %2353 = vmatprep.mubr.bf16.mxu0 %v6779_v44  ;;  %2394 = vmatprep.mubr.bf16.mxu1 %v6779_v44 }
 0x539   :  { %2324 = vmatpush1.bf16.msra.mxu0 %v6893_v22  ;;  %2365 = vmatpush1.bf16.msra.mxu1 %v6894_v39  ;;  %v6963_v22 = vld [vmem:[#allocation32_spill] sm:$0xff]  ;;  %v6964_v39 = vld [vmem:[#allocation33_spill] sm:$0xff] }
 0x53a   :  { %2325 = vmatprep.subr.bf16.mxu0 %v6895_v28  ;;  %2366 = vmatprep.subr.bf16.mxu1 %v6896_v36  ;;  %v6965_v28 = vld [vmem:[#allocation34_spill] sm:$0xff]  ;;  %v6966_v36 = vld [vmem:[#allocation35_spill] sm:$0xff] }
 0x53d   :  { %2326 = vmatpush1.bf16.msra.mxu0 %v6897_v11  ;;  %2367 = vmatpush1.bf16.msra.mxu1 %v5438_v41  ;;  %v6967_v11 = vld [vmem:[#allocation36_spill] sm:$0xff] }
 0x53e   :  { %2327 = vmatprep.subr.bf16.mxu0 %v6898_v10  ;;  %2368 = vmatprep.subr.bf16.mxu1 %v5442_v0  ;;  %v6968_v10 = vld [vmem:[#allocation37_spill] sm:$0xff] }
 0x541   :  { %2328 = vmatpush1.bf16.msra.mxu0 %v6899_v34  ;;  %2369 = vmatpush1.bf16.msra.mxu1 %v5446_v26  ;;  %v6969_v34 = vld [vmem:[#allocation38_spill] sm:$0xff] }
 0x542   :  { %2329 = vmatprep.subr.bf16.mxu0 %v6900_v32  ;;  %2370 = vmatprep.subr.bf16.mxu1 %v5450_v13  ;;  %v6970_v32 = vld [vmem:[#allocation39_spill] sm:$0xff] }
 0x545   :  { %2330 = vmatpush1.bf16.msra.mxu0 %v6901_v45  ;;  %2371 = vmatpush1.bf16.msra.mxu1 %v5454_v18  ;;  %v6971_v45 = vld [vmem:[#allocation40_spill] sm:$0xff] }
 0x546   :  { %2331 = vmatprep.subr.bf16.mxu0 %v6902_v25  ;;  %2372 = vmatprep.subr.bf16.mxu1 %v5458_v37  ;;  %v6972_v25 = vld [vmem:[#allocation41_spill] sm:$0xff] }
 0x549   :  { %2332 = vmatpush1.bf16.msra.mxu0 %v6903_v16  ;;  %2373 = vmatpush1.bf16.msra.mxu1 %v5462_v9  ;;  %v6973_v16 = vld [vmem:[#allocation42_spill] sm:$0xff] }
 0x54a   :  { %2333 = vmatprep.subr.bf16.mxu0 %v6904_v31  ;;  %2374 = vmatprep.subr.bf16.mxu1 %v5466_v30  ;;  %v6974_v31 = vld [vmem:[#allocation43_spill] sm:$0xff] }
 0x54d   :  { %2334 = vmatpush1.bf16.msra.mxu0 %v6905_v48  ;;  %2375 = vmatpush1.bf16.msra.mxu1 %v5470_v8  ;;  %v6975_v48 = vld [vmem:[#allocation44_spill] sm:$0xff] }
 0x54e   :  { %2335 = vmatprep.subr.bf16.mxu0 %v6906_v4  ;;  %2376 = vmatprep.subr.bf16.mxu1 %v5474_v49  ;;  %v6976_v4 = vld [vmem:[#allocation45_spill] sm:$0xff] }
 0x551   :  { %2336 = vmatpush1.bf16.msra.mxu0 %v6907_v19  ;;  %2377 = vmatpush1.bf16.msra.mxu1 %v5478_v62  ;;  %v6977_v19 = vld [vmem:[#allocation46_spill] sm:$0xff] }
 0x552   :  { %2429 = vmatprep.subr.bf16.mxu0 %v5481_v52  ;;  %2470 = vmatprep.subr.bf16.mxu1 %v5484_v24 }
 0x554   :  { %2354 = vmatmul.mubr.bf16.vlgmr.msra.gmra.mxu0 %v5603_v63  ;;  %2395 = vmatmul.mubr.bf16.vlgmr.msra.gmra.mxu1 %v5603_v63  ;;  %v6978_v63 = vld [vmem:[#allocation47_spill] sm:$0xff] }
 0x555   :  { %2430 = vmatpush1.bf16.msra.mxu0 %v5489_v54  ;;  %2471 = vmatpush1.bf16.msra.mxu1 %v5492_v42 }
 0x556   :  { %2431 = vmatprep.subr.bf16.mxu0 %v6957_v17  ;;  %2472 = vmatprep.subr.bf16.mxu1 %v6958_v21 }
 0x557   :  { %2461 = vmatprep.mubr.bf16.mxu0 %v6779_v44  ;;  %2502 = vmatprep.mubr.bf16.mxu1 %v6779_v44 }
 0x559   :  { %2432 = vmatpush1.bf16.msra.mxu0 %v6959_v46  ;;  %2473 = vmatpush1.bf16.msra.mxu1 %v6960_v5 }
 0x55a   :  { %2433 = vmatprep.subr.bf16.mxu0 %v6961_v29  ;;  %2474 = vmatprep.subr.bf16.mxu1 %v6962_v14  ;;  %v6987_v14 = vld [vmem:[#allocation94_spill] sm:$0xff] }
 0x55d   :  { %2434 = vmatpush1.bf16.msra.mxu0 %v6963_v22  ;;  %2475 = vmatpush1.bf16.msra.mxu1 %v6964_v39 }
 0x55e   :  { %2435 = vmatprep.subr.bf16.mxu0 %v6965_v28  ;;  %2476 = vmatprep.subr.bf16.mxu1 %v6966_v36 }
 0x561   :  { %2436 = vmatpush1.bf16.msra.mxu0 %v6967_v11  ;;  %2477 = vmatpush1.bf16.msra.mxu1 %v6968_v10 }
 0x562   :  { %2437 = vmatprep.subr.bf16.mxu0 %v6969_v34  ;;  %2478 = vmatprep.subr.bf16.mxu1 %v6970_v32 }
 0x565   :  { %2438 = vmatpush1.bf16.msra.mxu0 %v6971_v45  ;;  %2479 = vmatpush1.bf16.msra.mxu1 %v6972_v25  ;;  %v6983_v25 = vld [vmem:[#allocation52_spill] sm:$0xff] }
 0x566   :  { %2439 = vmatprep.subr.bf16.mxu0 %v6973_v16  ;;  %2480 = vmatprep.subr.bf16.mxu1 %v6974_v31  ;;  %v6984_v16 = vld [vmem:[#allocation53_spill] sm:$0xff]  ;;  %v6985_v31 = vld [vmem:[#allocation54_spill] sm:$0xff] }
 0x569   :  { %2440 = vmatpush1.bf16.msra.mxu0 %v6975_v48  ;;  %2481 = vmatpush1.bf16.msra.mxu1 %v6976_v4  ;;  %v6986_v48 = vld [vmem:[#allocation55_spill] sm:$0xff] }
 0x56a   :  { %2441 = vmatprep.subr.bf16.mxu0 %v6977_v19  ;;  %2482 = vmatprep.subr.bf16.mxu1 %v6978_v63 }
 0x56d   :  { %2442 = vmatpush1.bf16.msra.mxu0 %v6979_v50  ;;  %2483 = vmatpush1.bf16.msra.mxu1 %v6980_v57 }
 0x56e   :  { %2443 = vmatprep.subr.bf16.mxu0 %v6981_v1  ;;  %2484 = vmatprep.subr.bf16.mxu1 %v6982_v38 }
 0x571   :  { %2444 = vmatpush1.bf16.msra.mxu0 %v6983_v25  ;;  %2485 = vmatpush1.bf16.msra.mxu1 %v6984_v16 }
 0x572   :  { %2511 = vmatprep.subr.bf16.mxu0 %v6985_v31  ;;  %2552 = vmatprep.subr.bf16.mxu1 %v6986_v48 }
 0x5d4   :  { %v2153_v4 = vpop.f32.mrf.mxu0  ;;  %v2194_v19 = vpop.f32.mrf.mxu1 }
 0x5d6   :  { %v2155_v45 = vpop.f32.mrf.mxu0  ;;  %v2196_v63 = vpop.f32.mrf.mxu1 }
 0x5d8   :  { %v2157_v32 = vpop.f32.mrf.mxu0  ;;  %v2198_v50 = vpop.f32.mrf.mxu1 }
 0x5da   :  { %v2158_v34 = vpop.f32.mrf.mxu0  ;;  %v2199_v57 = vpop.f32.mrf.mxu1 }
 0x5db   :  { %v6988_v34 = vld [vmem:[#allocation95_spill] sm:$0xff] }
 0x5f4   :  { %v2235_v10 = vpop.f32.mrf.mxu0  ;;  %v2276_v1 = vpop.f32.mrf.mxu1 }
 0x5f5   :  { %v2236_v11 = vadd.f32 %v2235_v10, %v2153_v4  ;;  %v2277_v38 = vadd.f32 %v2276_v1, %v2194_v19 }
 0x5f6   :  { %v2237_v36 = vpop.f32.mrf.mxu0  ;;  %v2278_v25 = vpop.f32.mrf.mxu1 }
 0x5f7   :  { %v2283_v16 = vadd.f32 %v2236_v11, %v6885_v3  ;;  %v2238_v28 = vadd.f32 %v2237_v36, %v2155_v45  ;;  %v2279_v31 = vadd.f32 %v2278_v25, %v2196_v63  ;;  %v2285_v50 = vadd.f32 %v2277_v38, %v6988_v34 }
 0x5f8   :  { %v2239_v39 = vpop.f32.mrf.mxu0  ;;  %v2280_v48 = vpop.f32.mrf.mxu1 }
 0x5f9   :  { %v2288_v22 = vmul.f32 0.5, %v2283_v16  ;;  %v2284_v29 = vadd.f32 %v2238_v28, %v6987_v14 }
 0x5fa   :  { %v2240_v5 = vpop.f32.mrf.mxu0  ;;  %v2281_v32 = vpop.f32.mrf.mxu1 }
 0x5fb   :  { %4168 = vtanh.f32 %v2288_v22  ;;  %v2292_v57 = vmul.f32 0.5, %v2284_v29  ;;  %v6989_v22 = vld [vmem:[#allocation63_spill] sm:$0xff]  ;;  %v6990_v32 = vld [vmem:[#allocation64_spill] sm:$0xff] }
 0x5fd   :  { %4170 = vtanh.f32 %v2292_v57 }
 0x5fe   :  { %4172 = vtanh.f32 %v2285_v50 }
 0x608   :  { %v4169_v10 = vpop.eup %4168 }
 0x609   :  { %v2290_v4 = vadd.f32 1.0, %v4169_v10 }
 0x60a   :  { %v4171_v19 = vpop.eup %4170 }
 0x60b   :  { %v2291_v1 = vmul.f32 0.5, %v2290_v4  ;;  %v2294_v11 = vadd.f32 1.0, %v4171_v19  ;;  %v4173_v36 = vpop.eup %4172  ;;  %v6991_v4 = vld [vmem:[#allocation77_spill] sm:$0xff] }
 0x60d   :  { %v2295_v45 = vmul.f32 0.5, %v2294_v11  ;;  %v2302_v39 = vmul.f32 %v4173_v36, %v2291_v1 }
 0x60f   :  { %v2301_v25 = vmul.f32 %v2295_v45, %v5591_v7  ;;  %v6992_v7 = vld [vmem:[#allocation78_spill] sm:$0xff] }
 0x611   :  { %v5780_v16 = vadd.f32 %v2302_v39, %v2301_v25 }
 0x614   :  { %v2355_v5 = vpop.f32.mrf.mxu0  ;;  %v2396_v28 = vpop.f32.mrf.mxu1 }
 0x615   :  { %v2403_v48 = vadd.f32 %v2355_v5, %v6989_v22  ;;  %v2405_v19 = vadd.f32 %v2396_v28, %v6991_v4 }
 0x616   :  { %v2357_v38 = vpop.f32.mrf.mxu0  ;;  %v2398_v29 = vpop.f32.mrf.mxu1 }
 0x617   :  { %v2408_v63 = vmul.f32 0.5, %v2403_v48  ;;  %v2404_v50 = vadd.f32 %v2357_v38, %v6990_v32  ;;  %v2406_v45 = vadd.f32 %v2398_v29, %v6992_v7 }
 0x618   :  { %v2359_v57 = vpop.f32.mrf.mxu0  ;;  %v2400_v10 = vpop.f32.mrf.mxu1 }
 0x619   :  { %4174 = vtanh.f32 %v2408_v63  ;;  %v2412_v11 = vmul.f32 0.5, %v2404_v50  ;;  %v2417_v39 = vmul.f32 0.5, %v2406_v45  ;;  %v6996_v45 = vld [vmem:[#allocation74_spill] sm:$0xff] }
 0x61a   :  { %v2360_v1 = vpop.f32.mrf.mxu0  ;;  %v2401_v36 = vpop.f32.mrf.mxu1 }
 0x61b   :  { %4176 = vtanh.f32 %v2412_v11 }
 0x61c   :  { %4178 = vtanh.f32 %v2405_v19  ;;  %v2286_v19 = vadd.f32 %v2279_v31, %v5211_v35  ;;  %v6994_v31 = vld [vmem:[#allocation60_spill] sm:$0xff] }
 0x61d   :  { %4180 = vtanh.f32 %v2417_v39  ;;  %v6997_v39 = vld [vmem:[#allocation56_spill] sm:$0xff] }
 0x61e   :  { %v2297_v36 = vmul.f32 0.5, %v2286_v19  ;;  %v5832_v19 = vld [vmem:[#allocation13 + $0xe4] ss:$16 sps:$4 sm:$0xff]  }
 0x626   :  { %v4175_v25 = vpop.eup %4174 }
 0x627   :  { %v2410_v5 = vadd.f32 1.0, %v4175_v25  ;;  %v6998_v25 = vld [vmem:[#allocation71_spill] sm:$0xff] }
 0x628   :  { %v4177_v22 = vpop.eup %4176 }
 0x629   :  { %v2411_v34 = vmul.f32 0.5, %v2410_v5  ;;  %v2414_v48 = vadd.f32 1.0, %v4177_v22  ;;  %v4179_v38 = vpop.eup %4178  ;;  %v6999_v5 = vld [vmem:[#allocation72_spill] sm:$0xff] }
 0x62a   :  { %v4181_v50 = vpop.eup %4180 }
 0x62b   :  { %v2415_v32 = vmul.f32 0.5, %v2414_v48  ;;  %v2422_v57 = vmul.f32 %v4179_v38, %v2411_v34  ;;  %v2419_v10 = vadd.f32 1.0, %v4181_v50  ;;  %v6995_v34 = vld [vmem:[#allocation73_spill] sm:$0xff]  ;;  %v7001_v38 = vld [vmem:[#allocation86_spill] sm:$0xff] }
 0x62c   :  { %v7000_v48 = vld [vmem:[#allocation85_spill] sm:$0xff] }
 0x62d   :  { %v2421_v63 = vmul.f32 %v2415_v32, %v5599_v53  ;;  %v2420_v4 = vmul.f32 0.5, %v2419_v10  ;;  %v6993_v53 = vld [vmem:[#allocation59_spill] sm:$0xff]  ;;  %v7004_v10 = vld [vmem:[#allocation89_spill] sm:$0xff] }
 0x62e   :  { %v7002_v32 = vld [vmem:[#allocation87_spill] sm:$0xff] }
 0x62f   :  { %v5787_v28 = vadd.f32 %v2422_v57, %v2421_v63  ;;  %v7003_v57 = vld [vmem:[#allocation88_spill] sm:$0xff] }
 0x631   :  { %4182 = vtanh.f32 %v5787_v28 }
 0x632   :  { %4184 = vtanh.f32 %v2297_v36  ;;  %v5838_v36 = vld [vmem:[#allocation13 + $0xe0] ss:$16 sps:$4 sm:$0xff]  }
 0x633   :  { %4186 = vtanh.f32 %v5780_v16 }
 0x63e   :  { %v4183_v29 = vpop.eup %4182 }
 0x63f   :  { %v2425_v11 = vmul.f32 %v4183_v29, %v2420_v4  ;;  %v4185_v7 = vpop.eup %4184 }
 0x640   :  { %v2299_v22 = vadd.f32 1.0, %v4185_v7  ;;  %v4187_v63 = vpop.eup %4186  ;;  %v5841_v7 = vld [vmem:[#allocation13 + $0xe8] ss:$16 sps:$4 sm:$0xff]  }
 0x641   :  { %v5791_v1 = vpack.c.bf16 %v2425_v11, %v2425_v11  ;;  %v5835_v11 = vld [vmem:[#allocation13 + $0xec] ss:$16 sps:$4 sm:$0xff]   ;;  %7006 = vst [vmem:[#allocation92_spill] sm:$0xff] %v5841_v7 }
 0x642   :  { %v2300_v50 = vmul.f32 0.5, %v2299_v22  ;;  %v5844_v22 = vld [vmem:[#allocation13 + $0xc4] ss:$16 sps:$4 sm:$0xff]  }
 0x643   :  { %2462 = vmatmul.mubr.bf16.vlgmr.msra.gmra.mxu0 %v5791_v1  ;;  %2503 = vmatmul.mubr.bf16.vlgmr.msra.gmra.mxu1 %v5791_v1  ;;  %7007 = vst [vmem:[#allocation93_spill] sm:$0xff] %v5844_v22 }
 0x644   :  { %2512 = vmatpush1.bf16.msra.mxu0 %v5607_v33  ;;  %2553 = vmatpush1.bf16.msra.mxu1 %v5610_v47  ;;  %v5826_v4 = vmul.f32 %v4187_v63, %v2300_v50  ;;  %v5847_v63 = vld [vmem:[#allocation13 + $0xcc] ss:$16 sps:$4 sm:$0xff]   ;;  %v5852_v50 = vld [vmem:[#allocation13 + $0xc0] ss:$16 sps:$4 sm:$0xff]  }
 0x645   :  { %2513 = vmatprep.subr.bf16.mxu0 %v5613_v15  ;;  %2554 = vmatprep.subr.bf16.mxu1 %v5616_v59  ;;  %7008 = vst [vmem:[#allocation96_spill] sm:$0xff] %v5847_v63 }
 0x646   :  { %2543 = vmatprep.mubr.bf16.mxu0 %v6779_v44  ;;  %2584 = vmatprep.mubr.bf16.mxu1 %v6779_v44  ;;  %7005 = vst [vmem:[#allocation91_spill] sm:$0xff] %v5826_v4  ;;  %v2311_v29 = vpack.c.bf16 %v5826_v4, %v5826_v4  ;;  %v5858_v4 = vld [vmem:[#allocation13 + $0xa4] ss:$16 sps:$4 sm:$0xff]  }
 0x647   :  { %7010 = vst [vmem:[#allocation98_spill] sm:$0xff] %v5858_v4 }
 0x648   :  { %2514 = vmatpush1.bf16.msra.mxu0 %v5621_v60  ;;  %2555 = vmatpush1.bf16.msra.mxu1 %v5624_v55 }
 0x649   :  { %2515 = vmatprep.subr.bf16.mxu0 %v5627_v61  ;;  %2556 = vmatprep.subr.bf16.mxu1 %v5630_v58 }
 0x64c   :  { %2516 = vmatpush1.bf16.msra.mxu0 %v5633_v40  ;;  %2557 = vmatpush1.bf16.msra.mxu1 %v5636_v56 }
 0x64d   :  { %2517 = vmatprep.subr.bf16.mxu0 %v5640_v2  ;;  %2558 = vmatprep.subr.bf16.mxu1 %v5643_v12 }
 0x650   :  { %2518 = vmatpush1.bf16.msra.mxu0 %v5646_v43  ;;  %2559 = vmatpush1.bf16.msra.mxu1 %v6993_v53 }
 0x651   :  { %2519 = vmatprep.subr.bf16.mxu0 %v6994_v31  ;;  %2560 = vmatprep.subr.bf16.mxu1 %v6995_v34 }
 0x654   :  { %2520 = vmatpush1.bf16.msra.mxu0 %v6996_v45  ;;  %2561 = vmatpush1.bf16.msra.mxu1 %v6997_v39 }
 0x655   :  { %2521 = vmatprep.subr.bf16.mxu0 %v6998_v25  ;;  %2562 = vmatprep.subr.bf16.mxu1 %v6999_v5 }
 0x658   :  { %2522 = vmatpush1.bf16.msra.mxu0 %v7000_v48  ;;  %2563 = vmatpush1.bf16.msra.mxu1 %v7001_v38 }
 0x659   :  { %2523 = vmatprep.subr.bf16.mxu0 %v7002_v32  ;;  %2564 = vmatprep.subr.bf16.mxu1 %v7003_v57 }
 0x65c   :  { %2524 = vmatpush1.bf16.msra.mxu0 %v5682_v20  ;;  %2565 = vmatpush1.bf16.msra.mxu1 %v7004_v10 }
 0x65d   :  { %2525 = vmatprep.subr.bf16.mxu0 %v5688_v6  ;;  %2566 = vmatprep.subr.bf16.mxu1 %v5691_v51 }
 0x660   :  { %2526 = vmatpush1.bf16.msra.mxu0 %v5696_v27  ;;  %2567 = vmatpush1.bf16.msra.mxu1 %v5699_v23 }
 0x661   :  { %2631 = vmatprep.subr.bf16.mxu0 %v5832_v19  ;;  %2672 = vmatprep.subr.bf16.mxu1 %v5835_v11 }
 0x663   :  { %2544 = vmatmul.mubr.bf16.vlgmr.msra.gmra.mxu0 %v2311_v29  ;;  %2585 = vmatmul.mubr.bf16.vlgmr.msra.gmra.mxu1 %v2311_v29  ;;  %v5855_v29 = vld [vmem:[#allocation13 + $0xc8] ss:$16 sps:$4 sm:$0xff]  }
 0x664   :  { %2632 = vmatpush1.bf16.msra.mxu0 %v5838_v36  ;;  %2673 = vmatpush1.bf16.msra.mxu1 %v5841_v7  ;;  %7009 = vst [vmem:[#allocation97_spill] sm:$0xff] %v5855_v29  ;;  %v5868_v7 = vld [vmem:[#allocation13 + $0x84] ss:$16 sps:$4 sm:$0xff]  }
 0x665   :  { %2633 = vmatprep.subr.bf16.mxu0 %v5844_v22  ;;  %2674 = vmatprep.subr.bf16.mxu1 %v5847_v63  ;;  %v5861_v22 = vld [vmem:[#allocation13 + $0xac] ss:$16 sps:$4 sm:$0xff]   ;;  %v5864_v63 = vld [vmem:[#allocation13 + $0xa0] ss:$16 sps:$4 sm:$0xff]  }
 0x666   :  { %2663 = vmatprep.mubr.bf16.mxu0 %v6779_v44  ;;  %2704 = vmatprep.mubr.bf16.mxu1 %v6779_v44  ;;  %7011 = vst [vmem:[#allocation62_spill] sm:$0xff] %v5864_v63 }
 0x668   :  { %2634 = vmatpush1.bf16.msra.mxu0 %v5852_v50  ;;  %2675 = vmatpush1.bf16.msra.mxu1 %v5855_v29  ;;  %v5872_v29 = vld [vmem:[#allocation13 + $0x80] ss:$16 sps:$4 sm:$0xff]  }
 0x669   :  { %2635 = vmatprep.subr.bf16.mxu0 %v5858_v4  ;;  %2676 = vmatprep.subr.bf16.mxu1 %v5861_v22  ;;  %7012 = vst [vmem:[#allocation61_spill] sm:$0xff] %v5872_v29  ;;  %v5876_v4 = vld [vmem:[#allocation13 + $0x64] ss:$16 sps:$4 sm:$0xff]  }
 0x66a   :  { %7013 = vst [vmem:[#allocation75_spill] sm:$0xff] %v5876_v4 }
 0x66c   :  { %2636 = vmatpush1.bf16.msra.mxu0 %v5864_v63  ;;  %2677 = vmatpush1.bf16.msra.mxu1 %v5438_v41  ;;  %v5880_v63 = vld [vmem:[#allocation13 + $0x60] ss:$16 sps:$4 sm:$0xff]   ;;  %v5884_v41 = vld [vmem:[#allocation13 + $0x44] ss:$16 sps:$4 sm:$0xff]  }
 0x66d   :  { %2637 = vmatprep.subr.bf16.mxu0 %v5868_v7  ;;  %2678 = vmatprep.subr.bf16.mxu1 %v5442_v0  ;;  %7014 = vst [vmem:[#allocation76_spill] sm:$0xff] %v5880_v63  ;;  %7015 = vst [vmem:[#allocation26_spill] sm:$0xff] %v5884_v41  ;;  %v5888_v0 = vld [vmem:[#allocation13 + $0x40] ss:$16 sps:$4 sm:$0xff]  }
 0x66e   :  { %7016 = vst [vmem:[#allocation27_spill] sm:$0xff] %v5888_v0 }
 0x670   :  { %2638 = vmatpush1.bf16.msra.mxu0 %v5872_v29  ;;  %2679 = vmatpush1.bf16.msra.mxu1 %v5446_v26  ;;  %v5892_v26 = vld [vmem:[#allocation13 + $0x24] ss:$16 sps:$4 sm:$0xff]  }
 0x671   :  { %2639 = vmatprep.subr.bf16.mxu0 %v5876_v4  ;;  %2680 = vmatprep.subr.bf16.mxu1 %v5450_v13  ;;  %7017 = vst [vmem:[#allocation28_spill] sm:$0xff] %v5892_v26  ;;  %v5896_v13 = vld [vmem:[#allocation13 + $0x20] ss:$16 sps:$4 sm:$0xff]  }
 0x672   :  { %7018 = vst [vmem:[#allocation63_spill] sm:$0xff] %v5896_v13 }
 0x674   :  { %2640 = vmatpush1.bf16.msra.mxu0 %v5880_v63  ;;  %2681 = vmatpush1.bf16.msra.mxu1 %v5454_v18  ;;  %v5900_v18 = vld [vmem:[#allocation13 + $0x4] ss:$16 sps:$4 sm:$0xff]  }
 0x675   :  { %2641 = vmatprep.subr.bf16.mxu0 %v5884_v41  ;;  %2682 = vmatprep.subr.bf16.mxu1 %v5458_v37  ;;  %7019 = vst [vmem:[#allocation64_spill] sm:$0xff] %v5900_v18  ;;  %v5904_v37 = vld [vmem:[#allocation13] ss:$16 sps:$4 sm:$0xff]  }
 0x676   :  { %7020 = vst [vmem:[#allocation77_spill] sm:$0xff] %v5904_v37 }
 0x678   :  { %2642 = vmatpush1.bf16.msra.mxu0 %v5888_v0  ;;  %2683 = vmatpush1.bf16.msra.mxu1 %v5462_v9  ;;  %v7021_v9 = vld [vmem:[#allocation29_spill] sm:$0xff] }
 0x679   :  { %2643 = vmatprep.subr.bf16.mxu0 %v5892_v26  ;;  %2684 = vmatprep.subr.bf16.mxu1 %v5466_v30  ;;  %v7022_v30 = vld [vmem:[#allocation30_spill] sm:$0xff] }
 0x67c   :  { %2644 = vmatpush1.bf16.msra.mxu0 %v5896_v13  ;;  %2685 = vmatpush1.bf16.msra.mxu1 %v5470_v8  ;;  %v7023_v8 = vld [vmem:[#allocation31_spill] sm:$0xff] }
 0x67d   :  { %2645 = vmatprep.subr.bf16.mxu0 %v5900_v18  ;;  %2686 = vmatprep.subr.bf16.mxu1 %v5474_v49  ;;  %v7024_v49 = vld [vmem:[#allocation32_spill] sm:$0xff] }
 0x680   :  { %2646 = vmatpush1.bf16.msra.mxu0 %v5904_v37  ;;  %2687 = vmatpush1.bf16.msra.mxu1 %v5478_v62  ;;  %v7025_v62 = vld [vmem:[#allocation33_spill] sm:$0xff] }
 0x681   :  { %2739 = vmatprep.subr.bf16.mxu0 %v5481_v52  ;;  %2780 = vmatprep.subr.bf16.mxu1 %v5484_v24  ;;  %v7026_v52 = vld [vmem:[#allocation34_spill] sm:$0xff]  ;;  %v7027_v24 = vld [vmem:[#allocation35_spill] sm:$0xff] }
 0x683   :  { %2664 = vmatmul.mubr.bf16.vlgmr.msra.gmra.mxu0 %v5791_v1  ;;  %2705 = vmatmul.mubr.bf16.vlgmr.msra.gmra.mxu1 %v5791_v1  ;;  %v7033_v1 = vld [vmem:[#allocation41_spill] sm:$0xff] }
 0x684   :  { %2740 = vmatpush1.bf16.msra.mxu0 %v5489_v54  ;;  %2781 = vmatpush1.bf16.msra.mxu1 %v5492_v42  ;;  %v7028_v54 = vld [vmem:[#allocation36_spill] sm:$0xff]  ;;  %v7029_v42 = vld [vmem:[#allocation37_spill] sm:$0xff] }
 0x685   :  { %2741 = vmatprep.subr.bf16.mxu0 %v6957_v17  ;;  %2782 = vmatprep.subr.bf16.mxu1 %v6958_v21  ;;  %v7030_v17 = vld [vmem:[#allocation38_spill] sm:$0xff]  ;;  %v7031_v21 = vld [vmem:[#allocation39_spill] sm:$0xff] }
 0x686   :  { %2771 = vmatprep.mubr.bf16.mxu0 %v6779_v44  ;;  %2812 = vmatprep.mubr.bf16.mxu1 %v6779_v44 }
 0x688   :  { %2742 = vmatpush1.bf16.msra.mxu0 %v6959_v46  ;;  %2783 = vmatpush1.bf16.msra.mxu1 %v7021_v9  ;;  %v7032_v46 = vld [vmem:[#allocation40_spill] sm:$0xff]  ;;  %v7034_v9 = vld [vmem:[#allocation42_spill] sm:$0xff] }
 0x689   :  { %2743 = vmatprep.subr.bf16.mxu0 %v7022_v30  ;;  %2784 = vmatprep.subr.bf16.mxu1 %v7023_v8  ;;  %v7035_v30 = vld [vmem:[#allocation43_spill] sm:$0xff]  ;;  %v7036_v8 = vld [vmem:[#allocation44_spill] sm:$0xff] }
 0x68c   :  { %2744 = vmatpush1.bf16.msra.mxu0 %v7024_v49  ;;  %2785 = vmatpush1.bf16.msra.mxu1 %v7025_v62  ;;  %v7037_v49 = vld [vmem:[#allocation45_spill] sm:$0xff]  ;;  %v7038_v62 = vld [vmem:[#allocation46_spill] sm:$0xff] }
 0x68d   :  { %2745 = vmatprep.subr.bf16.mxu0 %v7026_v52  ;;  %2786 = vmatprep.subr.bf16.mxu1 %v7027_v24  ;;  %v7039_v52 = vld [vmem:[#allocation47_spill] sm:$0xff]  ;;  %v7040_v24 = vld [vmem:[#allocation48_spill] sm:$0xff] }
 0x690   :  { %2746 = vmatpush1.bf16.msra.mxu0 %v7028_v54  ;;  %2787 = vmatpush1.bf16.msra.mxu1 %v7029_v42  ;;  %v7041_v54 = vld [vmem:[#allocation49_spill] sm:$0xff]  ;;  %v7042_v42 = vld [vmem:[#allocation50_spill] sm:$0xff] }
 0x691   :  { %2747 = vmatprep.subr.bf16.mxu0 %v7030_v17  ;;  %2788 = vmatprep.subr.bf16.mxu1 %v7031_v21  ;;  %v7043_v17 = vld [vmem:[#allocation51_spill] sm:$0xff]  ;;  %v7044_v21 = vld [vmem:[#allocation52_spill] sm:$0xff] }
 0x694   :  { %2748 = vmatpush1.bf16.msra.mxu0 %v7032_v46  ;;  %2789 = vmatpush1.bf16.msra.mxu1 %v7033_v1  ;;  %v7045_v46 = vld [vmem:[#allocation53_spill] sm:$0xff]  ;;  %v7046_v1 = vld [vmem:[#allocation54_spill] sm:$0xff] }
 0x695   :  { %2749 = vmatprep.subr.bf16.mxu0 %v7034_v9  ;;  %2790 = vmatprep.subr.bf16.mxu1 %v7035_v30  ;;  %v7047_v9 = vld [vmem:[#allocation55_spill] sm:$0xff] }
 0x698   :  { %2750 = vmatpush1.bf16.msra.mxu0 %v7036_v8  ;;  %2791 = vmatpush1.bf16.msra.mxu1 %v7037_v49 }
 0x699   :  { %2751 = vmatprep.subr.bf16.mxu0 %v7038_v62  ;;  %2792 = vmatprep.subr.bf16.mxu1 %v7039_v52 }
 0x69c   :  { %2752 = vmatpush1.bf16.msra.mxu0 %v7040_v24  ;;  %2793 = vmatpush1.bf16.msra.mxu1 %v7041_v54 }
 0x69d   :  { %2753 = vmatprep.subr.bf16.mxu0 %v7042_v42  ;;  %2794 = vmatprep.subr.bf16.mxu1 %v7043_v17 }
 0x6a0   :  { %2754 = vmatpush1.bf16.msra.mxu0 %v7044_v21  ;;  %2795 = vmatpush1.bf16.msra.mxu1 %v7045_v46 }
 0x6a1   :  { %2821 = vmatprep.subr.bf16.mxu0 %v7046_v1  ;;  %2862 = vmatprep.subr.bf16.mxu1 %v7047_v9 }
 0x703   :  { %v2463_v30 = vpop.f32.mrf.mxu0  ;;  %v2504_v8 = vpop.f32.mrf.mxu1 }
 0x705   :  { %v2465_v49 = vpop.f32.mrf.mxu0  ;;  %v2506_v62 = vpop.f32.mrf.mxu1 }
 0x707   :  { %v2467_v52 = vpop.f32.mrf.mxu0  ;;  %v2508_v24 = vpop.f32.mrf.mxu1 }
 0x709   :  { %v2468_v37 = vpop.f32.mrf.mxu0  ;;  %v2509_v54 = vpop.f32.mrf.mxu1 }
 0x70a   :  { %v7048_v37 = vld [vmem:[#allocation95_spill] sm:$0xff] }
 0x723   :  { %v2545_v18 = vpop.f32.mrf.mxu0  ;;  %v2586_v42 = vpop.f32.mrf.mxu1 }
 0x724   :  { %v2546_v13 = vadd.f32 %v2545_v18, %v2463_v30  ;;  %v2587_v17 = vadd.f32 %v2586_v42, %v2504_v8 }
 0x725   :  { %v2547_v26 = vpop.f32.mrf.mxu0  ;;  %v2588_v21 = vpop.f32.mrf.mxu1 }
 0x726   :  { %v2593_v46 = vadd.f32 %v2546_v13, %v6885_v3  ;;  %v2548_v0 = vadd.f32 %v2547_v26, %v2465_v49  ;;  %v2589_v1 = vadd.f32 %v2588_v21, %v2506_v62  ;;  %v2595_v24 = vadd.f32 %v2587_v17, %v7048_v37 }
 0x727   :  { %v2549_v41 = vpop.f32.mrf.mxu0  ;;  %v2590_v9 = vpop.f32.mrf.mxu1 }
 0x728   :  { %v2598_v63 = vmul.f32 0.5, %v2593_v46  ;;  %v2594_v4 = vadd.f32 %v2548_v0, %v6987_v14  ;;  %v7050_v46 = vld [vmem:[#allocation66_spill] sm:$0xff] }
 0x729   :  { %v2550_v29 = vpop.f32.mrf.mxu0  ;;  %v2591_v52 = vpop.f32.mrf.mxu1 }
 0x72a   :  { %4188 = vtanh.f32 %v2598_v63  ;;  %v2602_v54 = vmul.f32 0.5, %v2594_v4  ;;  %v7049_v63 = vld [vmem:[#allocation58_spill] sm:$0xff]  ;;  %v7051_v4 = vld [vmem:[#allocation65_spill] sm:$0xff] }
 0x72b   :  { %v356_v17 = vadd.f32 %v7050_v46, %v7049_v63 }
 0x72c   :  { %4190 = vtanh.f32 %v2602_v54 }
 0x72d   :  { %4192 = vtanh.f32 %v2595_v24 }
 0x737   :  { %v4189_v18 = vpop.eup %4188 }
 0x738   :  { %v2600_v30 = vadd.f32 1.0, %v4189_v18 }
 0x739   :  { %v4191_v8 = vpop.eup %4190 }
 0x73a   :  { %v2601_v42 = vmul.f32 0.5, %v2600_v30  ;;  %v2604_v13 = vadd.f32 1.0, %v4191_v8  ;;  %v4193_v26 = vpop.eup %4192 }
 0x73c   :  { %v2605_v49 = vmul.f32 0.5, %v2604_v13  ;;  %v2612_v41 = vmul.f32 %v4193_v26, %v2601_v42  ;;  %v7052_v13 = vld [vmem:[#allocation79_spill] sm:$0xff] }
 0x73e   :  { %v2611_v62 = vmul.f32 %v2605_v49, %v5780_v16 }
 0x740   :  { %v5950_v21 = vadd.f32 %v2612_v41, %v2611_v62  ;;  %v7053_v41 = vld [vmem:[#allocation80_spill] sm:$0xff] }
 0x743   :  { %v2665_v29 = vpop.f32.mrf.mxu0  ;;  %v2706_v0 = vpop.f32.mrf.mxu1 }
 0x744   :  { %v2713_v9 = vadd.f32 %v2665_v29, %v7051_v4  ;;  %v2715_v42 = vadd.f32 %v2706_v0, %v7052_v13  ;;  %v2596_v13 = vadd.f32 %v2589_v1, %v5211_v35  ;;  %v6059_v1 = vld [vmem:[#allocation14 + $0xe4] ss:$16 sps:$4 sm:$0xff]  }
 0x745   :  { %v2667_v52 = vpop.f32.mrf.mxu0  ;;  %v2708_v24 = vpop.f32.mrf.mxu1 }
 0x746   :  { %v2718_v54 = vmul.f32 0.5, %v2713_v9  ;;  %v2714_v18 = vadd.f32 %v2667_v52, %v356_v17  ;;  %v2716_v62 = vadd.f32 %v2708_v24, %v7053_v41  ;;  %v6073_v41 = vld [vmem:[#allocation14 + $0xc4] ss:$16 sps:$4 sm:$0xff]  }
 0x747   :  { %v2669_v30 = vpop.f32.mrf.mxu0  ;;  %v2710_v8 = vpop.f32.mrf.mxu1  ;;  %7070 = vst [vmem:[#allocation59_spill] sm:$0xff] %v6073_v41 }
 0x748   :  { %4194 = vtanh.f32 %v2718_v54  ;;  %v2722_v26 = vmul.f32 0.5, %v2714_v18  ;;  %v2727_v37 = vmul.f32 0.5, %v2716_v62  ;;  %v6076_v62 = vld [vmem:[#allocation14 + $0xcc] ss:$16 sps:$4 sm:$0xff]  }
 0x749   :  { %v2670_v16 = vpop.f32.mrf.mxu0  ;;  %v2711_v49 = vpop.f32.mrf.mxu1  ;;  %7071 = vst [vmem:[#allocation60_spill] sm:$0xff] %v6076_v62 }
 0x74a   :  { %4196 = vtanh.f32 %v2722_v26  ;;  %v6067_v16 = vld [vmem:[#allocation14 + $0xe0] ss:$16 sps:$4 sm:$0xff]   ;;  %v6070_v49 = vld [vmem:[#allocation14 + $0xe8] ss:$16 sps:$4 sm:$0xff]  }
 0x74b   :  { %4198 = vtanh.f32 %v2715_v42 }
 0x74c   :  { %4200 = vtanh.f32 %v2727_v37  ;;  %v6062_v37 = vld [vmem:[#allocation14 + $0xec] ss:$16 sps:$4 sm:$0xff]  }
 0x755   :  { %v4195_v46 = vpop.eup %4194 }
 0x756   :  { %v2720_v63 = vadd.f32 1.0, %v4195_v46  ;;  %v6081_v46 = vld [vmem:[#allocation14 + $0xc0] ss:$16 sps:$4 sm:$0xff]  }
 0x757   :  { %v4197_v29 = vpop.eup %4196  ;;  %7072 = vst [vmem:[#allocation73_spill] sm:$0xff] %v6081_v46 }
 0x758   :  { %v2721_v4 = vmul.f32 0.5, %v2720_v63  ;;  %v2724_v14 = vadd.f32 1.0, %v4197_v29  ;;  %v4199_v17 = vpop.eup %4198  ;;  %v2607_v63 = vmul.f32 0.5, %v2596_v13  ;;  %v6084_v29 = vld [vmem:[#allocation14 + $0xc8] ss:$16 sps:$4 sm:$0xff]  }
 0x759   :  { %v4201_v18 = vpop.eup %4200  ;;  %7073 = vst [vmem:[#allocation74_spill] sm:$0xff] %v6084_v29  ;;  %v6114_v13 = vld [vmem:[#allocation14 + $0x6c] ss:$16 sps:$4 sm:$0xff]  }
 0x75a   :  { %v2725_v9 = vmul.f32 0.5, %v2724_v14  ;;  %v2732_v52 = vmul.f32 %v4199_v17, %v2721_v4  ;;  %v2729_v30 = vadd.f32 1.0, %v4201_v18  ;;  %v7063_v14 = vld [vmem:[#allocation76_spill] sm:$0xff]  ;;  %v6087_v4 = vld [vmem:[#allocation14 + $0xa4] ss:$16 sps:$4 sm:$0xff]   ;;  %7083 = vst [vmem:[#allocation30_spill] sm:$0xff] %v6114_v13 }
 0x75b   :  { %7074 = vst [vmem:[#allocation56_spill] sm:$0xff] %v6087_v4  ;;  %v6090_v17 = vld [vmem:[#allocation14 + $0xac] ss:$16 sps:$4 sm:$0xff]  }
 0x75c   :  { %v2731_v54 = vmul.f32 %v2725_v9, %v5787_v28  ;;  %v2730_v8 = vmul.f32 0.5, %v2729_v30  ;;  %v6032_v28 = vld [vmem:[#allocation13 + $0x68] ss:$16 sps:$4 sm:$0xff]   ;;  %7075 = vst [vmem:[#allocation71_spill] sm:$0xff] %v6090_v17  ;;  %v6093_v9 = vld [vmem:[#allocation14 + $0xa0] ss:$16 sps:$4 sm:$0xff]  }
 0x75d   :  { %7076 = vst [vmem:[#allocation72_spill] sm:$0xff] %v6093_v9  ;;  %v6102_v18 = vld [vmem:[#allocation14 + $0x8c] ss:$16 sps:$4 sm:$0xff]   ;;  %v6105_v30 = vld [vmem:[#allocation14 + $0x80] ss:$16 sps:$4 sm:$0xff]  }
 0x75e   :  { %v5958_v0 = vadd.f32 %v2732_v52, %v2731_v54  ;;  %v6096_v52 = vld [vmem:[#allocation14 + $0xa8] ss:$16 sps:$4 sm:$0xff]   ;;  %v6099_v54 = vld [vmem:[#allocation14 + $0x84] ss:$16 sps:$4 sm:$0xff]   ;;  %7079 = vst [vmem:[#allocation87_spill] sm:$0xff] %v6102_v18  ;;  %7080 = vst [vmem:[#allocation88_spill] sm:$0xff] %v6105_v30 }
 0x75f   :  { %7077 = vst [vmem:[#allocation85_spill] sm:$0xff] %v6096_v52  ;;  %7078 = vst [vmem:[#allocation86_spill] sm:$0xff] %v6099_v54 }
 0x760   :  { %4202 = vtanh.f32 %v5958_v0 }
 0x761   :  { %4204 = vtanh.f32 %v2607_v63  ;;  %v6123_v63 = vld [vmem:[#allocation14 + $0x44] ss:$16 sps:$4 sm:$0xff]  }
 0x762   :  { %4206 = vtanh.f32 %v5950_v21  ;;  %7086 = vst [vmem:[#allocation33_spill] sm:$0xff] %v6123_v63 }
 0x76d   :  { %v4203_v24 = vpop.eup %4202 }
 0x76e   :  { %v2735_v42 = vmul.f32 %v4203_v24, %v2730_v8  ;;  %v6108_v8 = vld [vmem:[#allocation14 + $0x88] ss:$16 sps:$4 sm:$0xff]   ;;  %v6111_v24 = vld [vmem:[#allocation14 + $0x64] ss:$16 sps:$4 sm:$0xff]  }
 0x76f   :  { %7081 = vst [vmem:[#allocation89_spill] sm:$0xff] %v6108_v8  ;;  %7082 = vst [vmem:[#allocation29_spill] sm:$0xff] %v6111_v24 }
 0x770   :  { %v5962_v26 = vpack.c.bf16 %v2735_v42, %v2735_v42  ;;  %v6117_v42 = vld [vmem:[#allocation14 + $0x60] ss:$16 sps:$4 sm:$0xff]  }
 0x771   :  { %7084 = vst [vmem:[#allocation31_spill] sm:$0xff] %v6117_v42 }
 0x772   :  { %2772 = vmatmul.mubr.bf16.vlgmr.msra.gmra.mxu0 %v5962_v26  ;;  %2813 = vmatmul.mubr.bf16.vlgmr.msra.gmra.mxu1 %v5962_v26 }
 0x773   :  { %2822 = vmatpush1.bf16.msra.mxu0 %v5607_v33  ;;  %2863 = vmatpush1.bf16.msra.mxu1 %v5610_v47  ;;  %v4205_v33 = vpop.eup %4204 }
 0x774   :  { %2823 = vmatprep.subr.bf16.mxu0 %v5613_v15  ;;  %2864 = vmatprep.subr.bf16.mxu1 %v5616_v59  ;;  %v2609_v47 = vadd.f32 1.0, %v4205_v33  ;;  %v4207_v15 = vpop.eup %4206  ;;  %v6126_v33 = vld [vmem:[#allocation14 + $0x4c] ss:$16 sps:$4 sm:$0xff]  }
 0x775   :  { %2853 = vmatprep.mubr.bf16.mxu0 %v6779_v44  ;;  %2894 = vmatprep.mubr.bf16.mxu1 %v6779_v44  ;;  %7087 = vst [vmem:[#allocation34_spill] sm:$0xff] %v6126_v33 }
 0x776   :  { %v2610_v59 = vmul.f32 0.5, %v2609_v47  ;;  %v6129_v47 = vld [vmem:[#allocation14 + $0x40] ss:$16 sps:$4 sm:$0xff]  }
 0x777   :  { %2824 = vmatpush1.bf16.msra.mxu0 %v5621_v60  ;;  %2865 = vmatpush1.bf16.msra.mxu1 %v5624_v55  ;;  %7088 = vst [vmem:[#allocation35_spill] sm:$0xff] %v6129_v47 }
 0x778   :  { %2825 = vmatprep.subr.bf16.mxu0 %v5627_v61  ;;  %2866 = vmatprep.subr.bf16.mxu1 %v5630_v58  ;;  %v5997_v60 = vmul.f32 %v4207_v15, %v2610_v59  ;;  %v7055_v61 = vld [vmem:[#allocation92_spill] sm:$0xff]  ;;  %v7056_v58 = vld [vmem:[#allocation93_spill] sm:$0xff] }
 0x779   :  { %v6132_v15 = vld [vmem:[#allocation14 + $0x48] ss:$16 sps:$4 sm:$0xff]   ;;  %v6135_v59 = vld [vmem:[#allocation14 + $0x24] ss:$16 sps:$4 sm:$0xff]  }
 0x77a   :  { %7054 = vst [vmem:[#allocation78_spill] sm:$0xff] %v5997_v60  ;;  %v2621_v55 = vpack.c.bf16 %v5997_v60, %v5997_v60  ;;  %7089 = vst [vmem:[#allocation36_spill] sm:$0xff] %v6132_v15  ;;  %v6141_v60 = vld [vmem:[#allocation14 + $0x20] ss:$16 sps:$4 sm:$0xff]  }
 0x77b   :  { %2826 = vmatpush1.bf16.msra.mxu0 %v5633_v40  ;;  %2867 = vmatpush1.bf16.msra.mxu1 %v5636_v56  ;;  %v7057_v40 = vld [vmem:[#allocation96_spill] sm:$0xff]  ;;  %v7058_v56 = vld [vmem:[#allocation97_spill] sm:$0xff]  ;;  %7090 = vst [vmem:[#allocation37_spill] sm:$0xff] %v6135_v59  ;;  %7092 = vst [vmem:[#allocation39_spill] sm:$0xff] %v6141_v60 }
 0x77c   :  { %2827 = vmatprep.subr.bf16.mxu0 %v5640_v2  ;;  %2868 = vmatprep.subr.bf16.mxu1 %v5643_v12  ;;  %v7059_v2 = vld [vmem:[#allocation98_spill] sm:$0xff] }
 0x77d   :  { %v7060_v12 = vld [vmem:[#allocation62_spill] sm:$0xff] }
 0x77f   :  { %2828 = vmatpush1.bf16.msra.mxu0 %v5646_v43  ;;  %2869 = vmatpush1.bf16.msra.mxu1 %v6993_v53  ;;  %v6016_v43 = vld [vmem:[#allocation13 + $0xa8] ss:$16 sps:$4 sm:$0xff]  }
 0x780   :  { %2829 = vmatprep.subr.bf16.mxu0 %v6994_v31  ;;  %2870 = vmatprep.subr.bf16.mxu1 %v6995_v34  ;;  %v7064_v53 = vld [vmem:[#allocation26_spill] sm:$0xff]  ;;  %v7065_v34 = vld [vmem:[#allocation27_spill] sm:$0xff] }
 0x781   :  { %v6036_v31 = vld [vmem:[#allocation13 + $0x4c] ss:$16 sps:$4 sm:$0xff]  }
 0x783   :  { %2830 = vmatpush1.bf16.msra.mxu0 %v6996_v45  ;;  %2871 = vmatpush1.bf16.msra.mxu1 %v6997_v39  ;;  %v6040_v45 = vld [vmem:[#allocation13 + $0x48] ss:$16 sps:$4 sm:$0xff]  }
 0x784   :  { %2831 = vmatprep.subr.bf16.mxu0 %v6998_v25  ;;  %2872 = vmatprep.subr.bf16.mxu1 %v6999_v5  ;;  %v7066_v39 = vld [vmem:[#allocation28_spill] sm:$0xff]  ;;  %v7067_v5 = vld [vmem:[#allocation63_spill] sm:$0xff] }
 0x785   :  { %v6044_v25 = vld [vmem:[#allocation13 + $0x2c] ss:$16 sps:$4 sm:$0xff]  }
 0x787   :  { %2832 = vmatpush1.bf16.msra.mxu0 %v7000_v48  ;;  %2873 = vmatpush1.bf16.msra.mxu1 %v7001_v38  ;;  %v6048_v48 = vld [vmem:[#allocation13 + $0x28] ss:$16 sps:$4 sm:$0xff]  }
 0x788   :  { %2833 = vmatprep.subr.bf16.mxu0 %v7002_v32  ;;  %2874 = vmatprep.subr.bf16.mxu1 %v7003_v57  ;;  %v7068_v38 = vld [vmem:[#allocation64_spill] sm:$0xff]  ;;  %v7069_v57 = vld [vmem:[#allocation77_spill] sm:$0xff] }
 0x789   :  { %v6052_v32 = vld [vmem:[#allocation13 + $0xc] ss:$16 sps:$4 sm:$0xff]  }
 0x78b   :  { %2834 = vmatpush1.bf16.msra.mxu0 %v5682_v20  ;;  %2875 = vmatpush1.bf16.msra.mxu1 %v7004_v10  ;;  %v7062_v20 = vld [vmem:[#allocation75_spill] sm:$0xff]  ;;  %v6056_v10 = vld [vmem:[#allocation13 + $0x8] ss:$16 sps:$4 sm:$0xff]  }
 0x78c   :  { %2835 = vmatprep.subr.bf16.mxu0 %v5688_v6  ;;  %2876 = vmatprep.subr.bf16.mxu1 %v5691_v51  ;;  %v6020_v6 = vld [vmem:[#allocation13 + $0x8c] ss:$16 sps:$4 sm:$0xff]   ;;  %v7061_v51 = vld [vmem:[#allocation61_spill] sm:$0xff] }
 0x78f   :  { %2836 = vmatpush1.bf16.msra.mxu0 %v5696_v27  ;;  %2877 = vmatpush1.bf16.msra.mxu1 %v5699_v23  ;;  %v6024_v27 = vld [vmem:[#allocation13 + $0x88] ss:$16 sps:$4 sm:$0xff]   ;;  %v6028_v23 = vld [vmem:[#allocation13 + $0x6c] ss:$16 sps:$4 sm:$0xff]  }
 0x790   :  { %2941 = vmatprep.subr.bf16.mxu0 %v5832_v19  ;;  %2982 = vmatprep.subr.bf16.mxu1 %v5835_v11 }
 0x792   :  { %2854 = vmatmul.mubr.bf16.vlgmr.msra.gmra.mxu0 %v2621_v55  ;;  %2895 = vmatmul.mubr.bf16.vlgmr.msra.gmra.mxu1 %v2621_v55  ;;  %v6138_v55 = vld [vmem:[#allocation14 + $0x2c] ss:$16 sps:$4 sm:$0xff]  }
 0x793   :  { %2942 = vmatpush1.bf16.msra.mxu0 %v5838_v36  ;;  %2983 = vmatpush1.bf16.msra.mxu1 %v7055_v61  ;;  %7091 = vst [vmem:[#allocation38_spill] sm:$0xff] %v6138_v55 }
 0x794   :  { %2943 = vmatprep.subr.bf16.mxu0 %v7056_v58  ;;  %2984 = vmatprep.subr.bf16.mxu1 %v7057_v40 }
 0x795   :  { %2973 = vmatprep.mubr.bf16.mxu0 %v6779_v44  ;;  %3014 = vmatprep.mubr.bf16.mxu1 %v6779_v44 }
 0x797   :  { %2944 = vmatpush1.bf16.msra.mxu0 %v5852_v50  ;;  %2985 = vmatpush1.bf16.msra.mxu1 %v7058_v56 }
 0x798   :  { %2945 = vmatprep.subr.bf16.mxu0 %v7059_v2  ;;  %2986 = vmatprep.subr.bf16.mxu1 %v5861_v22 }
 0x79b   :  { %2946 = vmatpush1.bf16.msra.mxu0 %v7060_v12  ;;  %2987 = vmatpush1.bf16.msra.mxu1 %v6016_v43 }
 0x79c   :  { %2947 = vmatprep.subr.bf16.mxu0 %v5868_v7  ;;  %2988 = vmatprep.subr.bf16.mxu1 %v6020_v6 }
 0x79f   :  { %2948 = vmatpush1.bf16.msra.mxu0 %v7061_v51  ;;  %2989 = vmatpush1.bf16.msra.mxu1 %v6024_v27 }
 0x7a0   :  { %2949 = vmatprep.subr.bf16.mxu0 %v7062_v20  ;;  %2990 = vmatprep.subr.bf16.mxu1 %v6028_v23 }
 0x7a3   :  { %2950 = vmatpush1.bf16.msra.mxu0 %v7063_v14  ;;  %2991 = vmatpush1.bf16.msra.mxu1 %v6032_v28 }
 0x7a4   :  { %2951 = vmatprep.subr.bf16.mxu0 %v7064_v53  ;;  %2992 = vmatprep.subr.bf16.mxu1 %v6036_v31 }
 0x7a7   :  { %2952 = vmatpush1.bf16.msra.mxu0 %v7065_v34  ;;  %2993 = vmatpush1.bf16.msra.mxu1 %v6040_v45 }
 0x7a8   :  { %2953 = vmatprep.subr.bf16.mxu0 %v7066_v39  ;;  %2994 = vmatprep.subr.bf16.mxu1 %v6044_v25 }
 0x7ab   :  { %2954 = vmatpush1.bf16.msra.mxu0 %v7067_v5  ;;  %2995 = vmatpush1.bf16.msra.mxu1 %v6048_v48 }
 0x7ac   :  { %2955 = vmatprep.subr.bf16.mxu0 %v7068_v38  ;;  %2996 = vmatprep.subr.bf16.mxu1 %v6052_v32 }
 0x7af   :  { %2956 = vmatpush1.bf16.msra.mxu0 %v7069_v57  ;;  %2997 = vmatpush1.bf16.msra.mxu1 %v6056_v10 }
 0x7b0   :  { %3049 = vmatprep.subr.bf16.mxu0 %v6059_v1  ;;  %3090 = vmatprep.subr.bf16.mxu1 %v6062_v37 }
 0x7b2   :  { %2974 = vmatmul.mubr.bf16.vlgmr.msra.gmra.mxu0 %v5962_v26  ;;  %3015 = vmatmul.mubr.bf16.vlgmr.msra.gmra.mxu1 %v5962_v26  ;;  %v6120_v26 = vld [vmem:[#allocation14 + $0x68] ss:$16 sps:$4 sm:$0xff]  }
 0x7b3   :  { %3050 = vmatpush1.bf16.msra.mxu0 %v6067_v16  ;;  %3091 = vmatpush1.bf16.msra.mxu1 %v6070_v49  ;;  %7085 = vst [vmem:[#allocation32_spill] sm:$0xff] %v6120_v26 }
 0x7b4   :  { %3051 = vmatprep.subr.bf16.mxu0 %v6073_v41  ;;  %3092 = vmatprep.subr.bf16.mxu1 %v6076_v62 }
 0x7b5   :  { %3081 = vmatprep.mubr.bf16.mxu0 %v6779_v44  ;;  %3122 = vmatprep.mubr.bf16.mxu1 %v6779_v44 }
 0x7b7   :  { %3052 = vmatpush1.bf16.msra.mxu0 %v6081_v46  ;;  %3093 = vmatpush1.bf16.msra.mxu1 %v6084_v29  ;;  %v7100_v46 = vld [vmem:[#allocation94_spill] sm:$0xff] }
 0x7b8   :  { %3053 = vmatprep.subr.bf16.mxu0 %v6087_v4  ;;  %3094 = vmatprep.subr.bf16.mxu1 %v6090_v17 }
 0x7bb   :  { %3054 = vmatpush1.bf16.msra.mxu0 %v6093_v9  ;;  %3095 = vmatpush1.bf16.msra.mxu1 %v6096_v52 }
 0x7bc   :  { %3055 = vmatprep.subr.bf16.mxu0 %v6099_v54  ;;  %3096 = vmatprep.subr.bf16.mxu1 %v6102_v18 }
 0x7bf   :  { %3056 = vmatpush1.bf16.msra.mxu0 %v6105_v30  ;;  %3097 = vmatpush1.bf16.msra.mxu1 %v6108_v8 }
 0x7c0   :  { %3057 = vmatprep.subr.bf16.mxu0 %v6111_v24  ;;  %3098 = vmatprep.subr.bf16.mxu1 %v6114_v13 }
 0x7c3   :  { %3058 = vmatpush1.bf16.msra.mxu0 %v6117_v42  ;;  %3099 = vmatpush1.bf16.msra.mxu1 %v6120_v26 }
 0x7c4   :  { %3059 = vmatprep.subr.bf16.mxu0 %v6123_v63  ;;  %3100 = vmatprep.subr.bf16.mxu1 %v6126_v33  ;;  %v6144_v33 = vld [vmem:[#allocation14 + $0x28] ss:$16 sps:$4 sm:$0xff]  }
 0x7c5   :  { %7093 = vst [vmem:[#allocation40_spill] sm:$0xff] %v6144_v33 }
 0x7c7   :  { %3060 = vmatpush1.bf16.msra.mxu0 %v6129_v47  ;;  %3101 = vmatpush1.bf16.msra.mxu1 %v6132_v15  ;;  %v6147_v47 = vld [vmem:[#allocation14 + $0x4] ss:$16 sps:$4 sm:$0xff]   ;;  %v6150_v15 = vld [vmem:[#allocation14 + $0xc] ss:$16 sps:$4 sm:$0xff]  }
 0x7c8   :  { %3061 = vmatprep.subr.bf16.mxu0 %v6135_v59  ;;  %3102 = vmatprep.subr.bf16.mxu1 %v6138_v55  ;;  %7094 = vst [vmem:[#allocation41_spill] sm:$0xff] %v6147_v47  ;;  %7095 = vst [vmem:[#allocation42_spill] sm:$0xff] %v6150_v15  ;;  %v6153_v59 = vld [vmem:[#allocation14] ss:$16 sps:$4 sm:$0xff]   ;;  %v6156_v55 = vld [vmem:[#allocation14 + $0x8] ss:$16 sps:$4 sm:$0xff]  }
 0x7c9   :  { %7096 = vst [vmem:[#allocation43_spill] sm:$0xff] %v6153_v59  ;;  %7097 = vst [vmem:[#allocation44_spill] sm:$0xff] %v6156_v55 }
 0x7cb   :  { %3062 = vmatpush1.bf16.msra.mxu0 %v6141_v60  ;;  %3103 = vmatpush1.bf16.msra.mxu1 %v6144_v33  ;;  %v6159_v60 = vld [vmem:[#allocation16 + $0xe4] ss:$16 sps:$4 sm:$0xff]   ;;  %v6162_v33 = vld [vmem:[#allocation16 + $0xec] ss:$16 sps:$4 sm:$0xff]  }
 0x7cc   :  { %3063 = vmatprep.subr.bf16.mxu0 %v6147_v47  ;;  %3104 = vmatprep.subr.bf16.mxu1 %v6150_v15  ;;  %7098 = vst [vmem:[#allocation45_spill] sm:$0xff] %v6159_v60  ;;  %7099 = vst [vmem:[#allocation46_spill] sm:$0xff] %v6162_v33 }
 0x7cf   :  { %3064 = vmatpush1.bf16.msra.mxu0 %v6153_v59  ;;  %3105 = vmatpush1.bf16.msra.mxu1 %v6156_v55 }
 0x7d0   :  { %3131 = vmatprep.subr.bf16.mxu0 %v6159_v60  ;;  %3172 = vmatprep.subr.bf16.mxu1 %v6162_v33 }
 0x832   :  { %v2773_v47 = vpop.f32.mrf.mxu0  ;;  %v2814_v63 = vpop.f32.mrf.mxu1 }
 0x834   :  { %v2775_v26 = vpop.f32.mrf.mxu0  ;;  %v2816_v15 = vpop.f32.mrf.mxu1 }
 0x836   :  { %v2777_v42 = vpop.f32.mrf.mxu0  ;;  %v2818_v13 = vpop.f32.mrf.mxu1 }
 0x838   :  { %v2778_v24 = vpop.f32.mrf.mxu0  ;;  %v2819_v59 = vpop.f32.mrf.mxu1 }
 0x839   :  { %v7101_v24 = vld [vmem:[#allocation95_spill] sm:$0xff] }
 0x852   :  { %v2855_v8 = vpop.f32.mrf.mxu0  ;;  %v2896_v30 = vpop.f32.mrf.mxu1 }
 0x853   :  { %v2856_v18 = vadd.f32 %v2855_v8, %v2773_v47  ;;  %v2897_v55 = vadd.f32 %v2896_v30, %v2814_v63 }
 0x854   :  { %v2857_v54 = vpop.f32.mrf.mxu0  ;;  %v2898_v52 = vpop.f32.mrf.mxu1 }
 0x855   :  { %v2903_v60 = vadd.f32 %v2856_v18, %v6885_v3  ;;  %v2858_v9 = vadd.f32 %v2857_v54, %v2775_v26  ;;  %v2899_v17 = vadd.f32 %v2898_v52, %v2816_v15  ;;  %v2905_v13 = vadd.f32 %v2897_v55, %v7101_v24 }
 0x856   :  { %v2859_v4 = vpop.f32.mrf.mxu0  ;;  %v2900_v33 = vpop.f32.mrf.mxu1 }
 0x857   :  { %v2908_v29 = vmul.f32 0.5, %v2903_v60  ;;  %v2904_v62 = vadd.f32 %v2858_v9, %v7100_v46 }
 0x858   :  { %v2860_v41 = vpop.f32.mrf.mxu0  ;;  %v2901_v42 = vpop.f32.mrf.mxu1 }
 0x859   :  { %4208 = vtanh.f32 %v2908_v29  ;;  %v2912_v59 = vmul.f32 0.5, %v2904_v62  ;;  %v7102_v29 = vld [vmem:[#allocation67_spill] sm:$0xff]  ;;  %v7103_v42 = vld [vmem:[#allocation68_spill] sm:$0xff] }
 0x85b   :  { %4210 = vtanh.f32 %v2912_v59 }
 0x85c   :  { %4212 = vtanh.f32 %v2905_v13 }
 0x866   :  { %v4209_v30 = vpop.eup %4208 }
 0x867   :  { %v2910_v8 = vadd.f32 1.0, %v4209_v30 }
 0x868   :  { %v4211_v63 = vpop.eup %4210 }
 0x869   :  { %v2911_v47 = vmul.f32 0.5, %v2910_v8  ;;  %v2914_v18 = vadd.f32 1.0, %v4211_v63  ;;  %v4213_v54 = vpop.eup %4212  ;;  %v7104_v8 = vld [vmem:[#allocation81_spill] sm:$0xff] }
 0x86b   :  { %v2915_v52 = vmul.f32 0.5, %v2914_v18  ;;  %v2922_v4 = vmul.f32 %v4213_v54, %v2911_v47 }
 0x86d   :  { %v2921_v60 = vmul.f32 %v2915_v52, %v5950_v21  ;;  %v7105_v21 = vld [vmem:[#allocation82_spill] sm:$0xff] }
 0x86f   :  { %v6169_v26 = vadd.f32 %v2922_v4, %v2921_v60 }
 0x872   :  { %v2975_v41 = vpop.f32.mrf.mxu0  ;;  %v3016_v9 = vpop.f32.mrf.mxu1 }
 0x873   :  { %v3023_v33 = vadd.f32 %v2975_v41, %v7102_v29  ;;  %v3025_v63 = vadd.f32 %v3016_v9, %v7104_v8 }
 0x874   :  { %v2977_v15 = vpop.f32.mrf.mxu0  ;;  %v3018_v62 = vpop.f32.mrf.mxu1 }
 0x875   :  { %v3028_v55 = vmul.f32 0.5, %v3023_v33  ;;  %v3024_v13 = vadd.f32 %v2977_v15, %v7103_v42  ;;  %v3026_v52 = vadd.f32 %v3018_v62, %v7105_v21  ;;  %v6190_v21 = vld [vmem:[#allocation16 + $0xc4] ss:$16 sps:$4 sm:$0xff]  }
 0x876   :  { %v2979_v59 = vpop.f32.mrf.mxu0  ;;  %v3020_v30 = vpop.f32.mrf.mxu1 }
 0x877   :  { %4214 = vtanh.f32 %v3028_v55  ;;  %v3032_v18 = vmul.f32 0.5, %v3024_v13  ;;  %v3037_v4 = vmul.f32 0.5, %v3026_v52  ;;  %v6198_v52 = vld [vmem:[#allocation16 + $0xc0] ss:$16 sps:$4 sm:$0xff]  }
 0x878   :  { %v2980_v47 = vpop.f32.mrf.mxu0  ;;  %v3021_v54 = vpop.f32.mrf.mxu1 }
 0x879   :  { %4216 = vtanh.f32 %v3032_v18 }
 0x87a   :  { %4218 = vtanh.f32 %v3025_v63  ;;  %v2906_v63 = vadd.f32 %v2899_v17, %v5211_v35  ;;  %v6193_v17 = vld [vmem:[#allocation16 + $0xcc] ss:$16 sps:$4 sm:$0xff]  }
 0x87b   :  { %4220 = vtanh.f32 %v3037_v4  ;;  %v6201_v4 = vld [vmem:[#allocation16 + $0xc8] ss:$16 sps:$4 sm:$0xff]  }
 0x87c   :  { %v2917_v54 = vmul.f32 0.5, %v2906_v63  ;;  %v6238_v63 = vld [vmem:[#allocation16 + $0x68] ss:$16 sps:$4 sm:$0xff]  }
 0x87d   :  { %7111 = vst [vmem:[#allocation52_spill] sm:$0xff] %v6238_v63 }
 0x884   :  { %v4215_v60 = vpop.eup %4214 }
 0x885   :  { %v3030_v41 = vadd.f32 1.0, %v4215_v60  ;;  %v6204_v60 = vld [vmem:[#allocation16 + $0xa4] ss:$16 sps:$4 sm:$0xff]  }
 0x886   :  { %v4217_v29 = vpop.eup %4216 }
 0x887   :  { %v3031_v24 = vmul.f32 0.5, %v3030_v41  ;;  %v3034_v33 = vadd.f32 1.0, %v4217_v29  ;;  %v4219_v15 = vpop.eup %4218  ;;  %v6207_v41 = vld [vmem:[#allocation16 + $0xac] ss:$16 sps:$4 sm:$0xff]   ;;  %v6210_v29 = vld [vmem:[#allocation16 + $0xa0] ss:$16 sps:$4 sm:$0xff]  }
 0x888   :  { %v4221_v13 = vpop.eup %4220 }
 0x889   :  { %v3035_v42 = vmul.f32 0.5, %v3034_v33  ;;  %v3042_v59 = vmul.f32 %v4219_v15, %v3031_v24  ;;  %v3039_v30 = vadd.f32 1.0, %v4221_v13  ;;  %v6184_v24 = vld [vmem:[#allocation16 + $0xe0] ss:$16 sps:$4 sm:$0xff]   ;;  %v6213_v33 = vld [vmem:[#allocation16 + $0xa8] ss:$16 sps:$4 sm:$0xff]  }
 0x88a   :  { %v6217_v15 = vld [vmem:[#allocation16 + $0x84] ss:$16 sps:$4 sm:$0xff]  }
 0x88b   :  { %v3041_v55 = vmul.f32 %v3035_v42, %v5958_v0  ;;  %v3040_v8 = vmul.f32 0.5, %v3039_v30  ;;  %v6187_v0 = vld [vmem:[#allocation16 + $0xe8] ss:$16 sps:$4 sm:$0xff]   ;;  %v6220_v42 = vld [vmem:[#allocation16 + $0x8c] ss:$16 sps:$4 sm:$0xff]  }
 0x88c   :  { %v6229_v13 = vld [vmem:[#allocation16 + $0x64] ss:$16 sps:$4 sm:$0xff]   ;;  %v6232_v30 = vld [vmem:[#allocation16 + $0x6c] ss:$16 sps:$4 sm:$0xff]  }
 0x88d   :  { %v6176_v9 = vadd.f32 %v3042_v59, %v3041_v55  ;;  %v6223_v59 = vld [vmem:[#allocation16 + $0x80] ss:$16 sps:$4 sm:$0xff]   ;;  %v6226_v55 = vld [vmem:[#allocation16 + $0x88] ss:$16 sps:$4 sm:$0xff]   ;;  %7108 = vst [vmem:[#allocation49_spill] sm:$0xff] %v6229_v13  ;;  %7109 = vst [vmem:[#allocation50_spill] sm:$0xff] %v6232_v30 }
 0x88e   :  { %7106 = vst [vmem:[#allocation47_spill] sm:$0xff] %v6223_v59  ;;  %7107 = vst [vmem:[#allocation48_spill] sm:$0xff] %v6226_v55 }
 0x88f   :  { %4222 = vtanh.f32 %v6176_v9 }
 0x890   :  { %4224 = vtanh.f32 %v2917_v54  ;;  %v6244_v54 = vld [vmem:[#allocation16 + $0x4c] ss:$16 sps:$4 sm:$0xff]  }
 0x891   :  { %4226 = vtanh.f32 %v6169_v26  ;;  %7113 = vst [vmem:[#allocation54_spill] sm:$0xff] %v6244_v54 }
 0x89c   :  { %v4223_v62 = vpop.eup %4222 }
 0x89d   :  { %v3045_v18 = vmul.f32 %v4223_v62, %v3040_v8  ;;  %v4225_v8 = vpop.eup %4224  ;;  %v6235_v62 = vld [vmem:[#allocation16 + $0x60] ss:$16 sps:$4 sm:$0xff]  }
 0x89e   :  { %7110 = vst [vmem:[#allocation51_spill] sm:$0xff] %v6235_v62 }
 0x89f   :  { %v6180_v47 = vpack.c.bf16 %v3045_v18, %v3045_v18  ;;  %v6241_v18 = vld [vmem:[#allocation16 + $0x44] ss:$16 sps:$4 sm:$0xff]  }
 0x8a0   :  { %7112 = vst [vmem:[#allocation53_spill] sm:$0xff] %v6241_v18 }
 0x8a1   :  { %3082 = vmatmul.mubr.bf16.vlgmr.msra.gmra.mxu0 %v6180_v47  ;;  %3123 = vmatmul.mubr.bf16.vlgmr.msra.gmra.mxu1 %v6180_v47 }
 0x8a2   :  { %3132 = vmatpush1.bf16.msra.mxu0 %v6184_v24  ;;  %3173 = vmatpush1.bf16.msra.mxu1 %v6187_v0 }
 0x8a3   :  { %3133 = vmatprep.subr.bf16.mxu0 %v6190_v21  ;;  %3174 = vmatprep.subr.bf16.mxu1 %v6193_v17 }
 0x8a4   :  { %3163 = vmatprep.mubr.bf16.mxu0 %v6779_v44  ;;  %3204 = vmatprep.mubr.bf16.mxu1 %v6779_v44 }
 0x8a6   :  { %3134 = vmatpush1.bf16.msra.mxu0 %v6198_v52  ;;  %3175 = vmatpush1.bf16.msra.mxu1 %v6201_v4 }
 0x8a7   :  { %3135 = vmatprep.subr.bf16.mxu0 %v6204_v60  ;;  %3176 = vmatprep.subr.bf16.mxu1 %v6207_v41 }
 0x8aa   :  { %3136 = vmatpush1.bf16.msra.mxu0 %v6210_v29  ;;  %3177 = vmatpush1.bf16.msra.mxu1 %v6213_v33 }
 0x8ab   :  { %3137 = vmatprep.subr.bf16.mxu0 %v6217_v15  ;;  %3178 = vmatprep.subr.bf16.mxu1 %v6220_v42 }
 0x8ae   :  { %3138 = vmatpush1.bf16.msra.mxu0 %v6223_v59  ;;  %3179 = vmatpush1.bf16.msra.mxu1 %v6226_v55  ;;  %v6247_v55 = vld [vmem:[#allocation16 + $0x40] ss:$16 sps:$4 sm:$0xff]  }
 0x8af   :  { %3139 = vmatprep.subr.bf16.mxu0 %v6229_v13  ;;  %3180 = vmatprep.subr.bf16.mxu1 %v6232_v30  ;;  %v2919_v13 = vadd.f32 1.0, %v4225_v8  ;;  %7114 = vst [vmem:[#allocation55_spill] sm:$0xff] %v6247_v55  ;;  %v6250_v30 = vld [vmem:[#allocation16 + $0x48] ss:$16 sps:$4 sm:$0xff]  }
 0x8b0   :  { %7115 = vst [vmem:[#allocation66_spill] sm:$0xff] %v6250_v30  ;;  %v6262_v8 = vld [vmem:[#allocation16 + $0x28] ss:$16 sps:$4 sm:$0xff]  }
 0x8b1   :  { %v2920_v59 = vmul.f32 0.5, %v2919_v13  ;;  %7118 = vst [vmem:[#allocation80_spill] sm:$0xff] %v6262_v8  ;;  %v6276_v13 = vld [vmem:[#allocation16 + $0x8] ss:$16 sps:$4 sm:$0xff]  }
 0x8b2   :  { %3140 = vmatpush1.bf16.msra.mxu0 %v6235_v62  ;;  %3181 = vmatpush1.bf16.msra.mxu1 %v6238_v63  ;;  %v6253_v62 = vld [vmem:[#allocation16 + $0x24] ss:$16 sps:$4 sm:$0xff]   ;;  %v6256_v63 = vld [vmem:[#allocation16 + $0x2c] ss:$16 sps:$4 sm:$0xff]  }
 0x8b3   :  { %3141 = vmatprep.subr.bf16.mxu0 %v6241_v18  ;;  %3182 = vmatprep.subr.bf16.mxu1 %v6244_v54  ;;  %7116 = vst [vmem:[#allocation65_spill] sm:$0xff] %v6253_v62  ;;  %7117 = vst [vmem:[#allocation79_spill] sm:$0xff] %v6256_v63  ;;  %v4227_v18 = vpop.eup %4226  ;;  %v6259_v54 = vld [vmem:[#allocation16 + $0x20] ss:$16 sps:$4 sm:$0xff]  }
 0x8b6   :  { %3142 = vmatpush1.bf16.msra.mxu0 %v6247_v55  ;;  %3183 = vmatpush1.bf16.msra.mxu1 %v6250_v30  ;;  %v6265_v55 = vld [vmem:[#allocation16 + $0x4] ss:$16 sps:$4 sm:$0xff]   ;;  %v6268_v30 = vld [vmem:[#allocation16 + $0xc] ss:$16 sps:$4 sm:$0xff]  }
 0x8b7   :  { %3143 = vmatprep.subr.bf16.mxu0 %v6253_v62  ;;  %3184 = vmatprep.subr.bf16.mxu1 %v6256_v63  ;;  %v6271_v62 = vmul.f32 %v4227_v18, %v2920_v59  ;;  %v6273_v63 = vld [vmem:[#allocation16] ss:$16 sps:$4 sm:$0xff]  }
 0x8ba   :  { %3144 = vmatpush1.bf16.msra.mxu0 %v6259_v54  ;;  %3185 = vmatpush1.bf16.msra.mxu1 %v6262_v8  ;;  %v2931_v8 = vpack.c.bf16 %v6271_v62, %v6271_v62 }
 0x8bb   :  { %3145 = vmatprep.subr.bf16.mxu0 %v6265_v55  ;;  %3186 = vmatprep.subr.bf16.mxu1 %v6268_v30 }
 0x8be   :  { %3146 = vmatpush1.bf16.msra.mxu0 %v6273_v63  ;;  %3187 = vmatpush1.bf16.msra.mxu1 %v6276_v13 }
 0x8bf   :  { %3251 = vmatprep.subr.bf16.mxu0 %v5832_v19  ;;  %3292 = vmatprep.subr.bf16.mxu1 %v5835_v11  ;;  %v7119_v19 = vld [vmem:[#allocation59_spill] sm:$0xff]  ;;  %v7120_v11 = vld [vmem:[#allocation60_spill] sm:$0xff] }
 0x8c1   :  { %3164 = vmatmul.mubr.bf16.vlgmr.msra.gmra.mxu0 %v2931_v8  ;;  %3205 = vmatmul.mubr.bf16.vlgmr.msra.gmra.mxu1 %v2931_v8 }
 0x8c2   :  { %3252 = vmatpush1.bf16.msra.mxu0 %v5838_v36  ;;  %3293 = vmatpush1.bf16.msra.mxu1 %v7055_v61  ;;  %v7121_v36 = vld [vmem:[#allocation73_spill] sm:$0xff]  ;;  %v7125_v61 = vld [vmem:[#allocation72_spill] sm:$0xff] }
 0x8c3   :  { %3253 = vmatprep.subr.bf16.mxu0 %v7056_v58  ;;  %3294 = vmatprep.subr.bf16.mxu1 %v7057_v40  ;;  %v7126_v58 = vld [vmem:[#allocation85_spill] sm:$0xff]  ;;  %v7127_v40 = vld [vmem:[#allocation86_spill] sm:$0xff] }
 0x8c4   :  { %3283 = vmatprep.mubr.bf16.mxu0 %v6779_v44  ;;  %3324 = vmatprep.mubr.bf16.mxu1 %v6779_v44 }
 0x8c6   :  { %3254 = vmatpush1.bf16.msra.mxu0 %v5852_v50  ;;  %3295 = vmatpush1.bf16.msra.mxu1 %v7058_v56  ;;  %v7124_v50 = vld [vmem:[#allocation71_spill] sm:$0xff] }
 0x8c7   :  { %3255 = vmatprep.subr.bf16.mxu0 %v7059_v2  ;;  %3296 = vmatprep.subr.bf16.mxu1 %v5861_v22  ;;  %v7123_v22 = vld [vmem:[#allocation56_spill] sm:$0xff]  ;;  %v7128_v56 = vld [vmem:[#allocation87_spill] sm:$0xff] }
 0x8c8   :  { %v7129_v2 = vld [vmem:[#allocation88_spill] sm:$0xff] }
 0x8ca   :  { %3256 = vmatpush1.bf16.msra.mxu0 %v7060_v12  ;;  %3297 = vmatpush1.bf16.msra.mxu1 %v6016_v43  ;;  %v7130_v12 = vld [vmem:[#allocation89_spill] sm:$0xff] }
 0x8cb   :  { %3257 = vmatprep.subr.bf16.mxu0 %v5868_v7  ;;  %3298 = vmatprep.subr.bf16.mxu1 %v6020_v6  ;;  %v7122_v7 = vld [vmem:[#allocation74_spill] sm:$0xff]  ;;  %v7131_v43 = vld [vmem:[#allocation29_spill] sm:$0xff] }
 0x8cc   :  { %v7132_v6 = vld [vmem:[#allocation30_spill] sm:$0xff] }
 0x8ce   :  { %3258 = vmatpush1.bf16.msra.mxu0 %v7061_v51  ;;  %3299 = vmatpush1.bf16.msra.mxu1 %v6024_v27  ;;  %v7133_v51 = vld [vmem:[#allocation31_spill] sm:$0xff]  ;;  %v7134_v27 = vld [vmem:[#allocation32_spill] sm:$0xff] }
 0x8cf   :  { %3259 = vmatprep.subr.bf16.mxu0 %v7062_v20  ;;  %3300 = vmatprep.subr.bf16.mxu1 %v6028_v23  ;;  %v7135_v20 = vld [vmem:[#allocation33_spill] sm:$0xff]  ;;  %v7136_v23 = vld [vmem:[#allocation34_spill] sm:$0xff] }
 0x8d2   :  { %3260 = vmatpush1.bf16.msra.mxu0 %v7063_v14  ;;  %3301 = vmatpush1.bf16.msra.mxu1 %v6032_v28  ;;  %v7137_v14 = vld [vmem:[#allocation35_spill] sm:$0xff]  ;;  %v7138_v28 = vld [vmem:[#allocation36_spill] sm:$0xff] }
 0x8d3   :  { %3261 = vmatprep.subr.bf16.mxu0 %v7064_v53  ;;  %3302 = vmatprep.subr.bf16.mxu1 %v6036_v31  ;;  %v7139_v53 = vld [vmem:[#allocation37_spill] sm:$0xff]  ;;  %v7140_v31 = vld [vmem:[#allocation38_spill] sm:$0xff] }
 0x8d6   :  { %3262 = vmatpush1.bf16.msra.mxu0 %v7065_v34  ;;  %3303 = vmatpush1.bf16.msra.mxu1 %v6040_v45  ;;  %v7141_v34 = vld [vmem:[#allocation39_spill] sm:$0xff]  ;;  %v7142_v45 = vld [vmem:[#allocation40_spill] sm:$0xff] }
 0x8d7   :  { %3263 = vmatprep.subr.bf16.mxu0 %v7066_v39  ;;  %3304 = vmatprep.subr.bf16.mxu1 %v6044_v25  ;;  %v7143_v39 = vld [vmem:[#allocation41_spill] sm:$0xff]  ;;  %v7144_v25 = vld [vmem:[#allocation42_spill] sm:$0xff] }
 0x8da   :  { %3264 = vmatpush1.bf16.msra.mxu0 %v7067_v5  ;;  %3305 = vmatpush1.bf16.msra.mxu1 %v6048_v48  ;;  %v7145_v5 = vld [vmem:[#allocation43_spill] sm:$0xff]  ;;  %v7146_v48 = vld [vmem:[#allocation44_spill] sm:$0xff] }
 0x8db   :  { %3265 = vmatprep.subr.bf16.mxu0 %v7068_v38  ;;  %3306 = vmatprep.subr.bf16.mxu1 %v6052_v32  ;;  %v7147_v38 = vld [vmem:[#allocation45_spill] sm:$0xff]  ;;  %v7148_v32 = vld [vmem:[#allocation46_spill] sm:$0xff] }
 0x8de   :  { %3266 = vmatpush1.bf16.msra.mxu0 %v7069_v57  ;;  %3307 = vmatpush1.bf16.msra.mxu1 %v6056_v10 }
 0x8df   :  { %3359 = vmatprep.subr.bf16.mxu0 %v6059_v1  ;;  %3400 = vmatprep.subr.bf16.mxu1 %v6062_v37 }
 0x8e1   :  { %3284 = vmatmul.mubr.bf16.vlgmr.msra.gmra.mxu0 %v6180_v47  ;;  %3325 = vmatmul.mubr.bf16.vlgmr.msra.gmra.mxu1 %v6180_v47 }
 0x8e2   :  { %3360 = vmatpush1.bf16.msra.mxu0 %v6067_v16  ;;  %3401 = vmatpush1.bf16.msra.mxu1 %v6070_v49 }
 0x8e3   :  { %3361 = vmatprep.subr.bf16.mxu0 %v7119_v19  ;;  %3402 = vmatprep.subr.bf16.mxu1 %v7120_v11 }
 0x8e4   :  { %3391 = vmatprep.mubr.bf16.mxu0 %v6779_v44  ;;  %3432 = vmatprep.mubr.bf16.mxu1 %v6779_v44 }
 0x8e6   :  { %3362 = vmatpush1.bf16.msra.mxu0 %v7121_v36  ;;  %3403 = vmatpush1.bf16.msra.mxu1 %v7122_v7 }
 0x8e7   :  { %3363 = vmatprep.subr.bf16.mxu0 %v7123_v22  ;;  %3404 = vmatprep.subr.bf16.mxu1 %v7124_v50 }
 0x8ea   :  { %3364 = vmatpush1.bf16.msra.mxu0 %v7125_v61  ;;  %3405 = vmatpush1.bf16.msra.mxu1 %v7126_v58 }
 0x8eb   :  { %3365 = vmatprep.subr.bf16.mxu0 %v7127_v40  ;;  %3406 = vmatprep.subr.bf16.mxu1 %v7128_v56 }
 0x8ee   :  { %3366 = vmatpush1.bf16.msra.mxu0 %v7129_v2  ;;  %3407 = vmatpush1.bf16.msra.mxu1 %v7130_v12 }
 0x8ef   :  { %3367 = vmatprep.subr.bf16.mxu0 %v7131_v43  ;;  %3408 = vmatprep.subr.bf16.mxu1 %v7132_v6  ;;  %v7149_v6 = vld [vmem:[#allocation95_spill] sm:$0xff] }
 0x8f2   :  { %3368 = vmatpush1.bf16.msra.mxu0 %v7133_v51  ;;  %3409 = vmatpush1.bf16.msra.mxu1 %v7134_v27 }
 0x8f3   :  { %3369 = vmatprep.subr.bf16.mxu0 %v7135_v20  ;;  %3410 = vmatprep.subr.bf16.mxu1 %v7136_v23 }
 0x8f6   :  { %3370 = vmatpush1.bf16.msra.mxu0 %v7137_v14  ;;  %3411 = vmatpush1.bf16.msra.mxu1 %v7138_v28 }
 0x8f7   :  { %3371 = vmatprep.subr.bf16.mxu0 %v7139_v53  ;;  %3412 = vmatprep.subr.bf16.mxu1 %v7140_v31 }
 0x8fa   :  { %3372 = vmatpush1.bf16.msra.mxu0 %v7141_v34  ;;  %3413 = vmatpush1.bf16.msra.mxu1 %v7142_v45 }
 0x8fb   :  { %3373 = vmatprep.subr.bf16.mxu0 %v7143_v39  ;;  %3414 = vmatprep.subr.bf16.mxu1 %v7144_v25 }
 0x8fe   :  { %3374 = vmatpush1.bf16.msra.mxu0 %v7145_v5  ;;  %3415 = vmatpush1.bf16.msra.mxu1 %v7146_v48 }
 0x8ff   :  { %3441 = vmatprep.subr.bf16.mxu0 %v7147_v38  ;;  %3482 = vmatprep.subr.bf16.mxu1 %v7148_v32  ;;  %v7150_v38 = vld [vmem:[#allocation58_spill] sm:$0xff] }
 0x900   :  { %v7151_v32 = vld [vmem:[#allocation70_spill] sm:$0xff] }
 0x961   :  { %v3083_v57 = vpop.f32.mrf.mxu0  ;;  %v3124_v10 = vpop.f32.mrf.mxu1 }
 0x963   :  { %v3085_v1 = vpop.f32.mrf.mxu0  ;;  %v3126_v37 = vpop.f32.mrf.mxu1 }
 0x965   :  { %v3087_v16 = vpop.f32.mrf.mxu0  ;;  %v3128_v49 = vpop.f32.mrf.mxu1 }
 0x967   :  { %v3088_v47 = vpop.f32.mrf.mxu0  ;;  %v3129_v59 = vpop.f32.mrf.mxu1 }
 0x981   :  { %v3165_v18 = vpop.f32.mrf.mxu0  ;;  %v3206_v8 = vpop.f32.mrf.mxu1 }
 0x982   :  { %v3166_v19 = vadd.f32 %v3165_v18, %v3083_v57  ;;  %v3207_v11 = vadd.f32 %v3206_v8, %v3124_v10  ;;  %v366_v57 = vadd.f32 %v7151_v32, %v7150_v38  ;;  %v7152_v10 = vld [vmem:[#allocation69_spill] sm:$0xff]  ;;  %v7153_v8 = vld [vmem:[#allocation83_spill] sm:$0xff]  ;;  %v7167_v38 = vld [vmem:[#allocation80_spill] sm:$0xff] }
 0x983   :  { %v3167_v36 = vpop.f32.mrf.mxu0  ;;  %v3208_v7 = vpop.f32.mrf.mxu1 }
 0x984   :  { %v3213_v22 = vadd.f32 %v3166_v19, %v6885_v3  ;;  %v3168_v50 = vadd.f32 %v3167_v36, %v3085_v1  ;;  %v3209_v61 = vadd.f32 %v3208_v7, %v3126_v37  ;;  %v3215_v51 = vadd.f32 %v3207_v11, %v7149_v6  ;;  %v7154_v7 = vld [vmem:[#allocation84_spill] sm:$0xff] }
 0x985   :  { %v3169_v58 = vpop.f32.mrf.mxu0  ;;  %v3210_v40 = vpop.f32.mrf.mxu1 }
 0x986   :  { %v3218_v56 = vmul.f32 0.5, %v3213_v22  ;;  %v3214_v2 = vadd.f32 %v3168_v50, %v7100_v46 }
 0x987   :  { %v3170_v12 = vpop.f32.mrf.mxu0  ;;  %v3211_v43 = vpop.f32.mrf.mxu1 }
 0x988   :  { %4228 = vtanh.f32 %v3218_v56  ;;  %v3222_v27 = vmul.f32 0.5, %v3214_v2 }
 0x98a   :  { %4230 = vtanh.f32 %v3222_v27 }
 0x98b   :  { %4232 = vtanh.f32 %v3215_v51 }
 0x995   :  { %v4229_v20 = vpop.eup %4228 }
 0x996   :  { %v3220_v23 = vadd.f32 1.0, %v4229_v20 }
 0x997   :  { %v4231_v14 = vpop.eup %4230 }
 0x998   :  { %v3221_v28 = vmul.f32 0.5, %v3220_v23  ;;  %v3224_v53 = vadd.f32 1.0, %v4231_v14  ;;  %v4233_v31 = vpop.eup %4232 }
 0x99a   :  { %v3225_v34 = vmul.f32 0.5, %v3224_v53  ;;  %v3232_v45 = vmul.f32 %v4233_v31, %v3221_v28 }
 0x99c   :  { %v3231_v39 = vmul.f32 %v3225_v34, %v6169_v26  ;;  %v3216_v34 = vadd.f32 %v3209_v61, %v5211_v35 }
 0x99e   :  { %v6357_v25 = vadd.f32 %v3232_v45, %v3231_v39 }
 0x9a1   :  { %v3285_v5 = vpop.f32.mrf.mxu0  ;;  %v3326_v48 = vpop.f32.mrf.mxu1 }
 0x9a2   :  { %v3333_v1 = vadd.f32 %v3285_v5, %v7152_v10  ;;  %v3335_v19 = vadd.f32 %v3326_v48, %v7153_v8  ;;  %v3227_v5 = vmul.f32 0.5, %v3216_v34 }
 0x9a3   :  { %v3287_v37 = vpop.f32.mrf.mxu0  ;;  %v3328_v16 = vpop.f32.mrf.mxu1 }
 0x9a4   :  { %v3338_v49 = vmul.f32 0.5, %v3333_v1  ;;  %v3334_v47 = vadd.f32 %v3287_v37, %v366_v57  ;;  %v3336_v22 = vadd.f32 %v3328_v16, %v7154_v7  ;;  %v4090_v57 = vld [vmem:[#allocation17 + $0x38] sm:$0xff]   ;;  %v4091_v1 = vld [vmem:[#allocation17 + $0x30] sm:$0xff]   ;;  %v7168_v37 = vld [vmem:[#allocation57_spill] sm:$0xff] }
 0x9a5   :  { %v3289_v59 = vpop.f32.mrf.mxu0  ;;  %v3330_v18 = vpop.f32.mrf.mxu1 }
 0x9a6   :  { %4234 = vtanh.f32 %v3338_v49  ;;  %v3342_v11 = vmul.f32 0.5, %v3334_v47  ;;  %v3347_v50 = vmul.f32 0.5, %v3336_v22  ;;  %v4096_v49 = vld [vmem:[#allocation17 + $0x8] sm:$0xff]   ;;  %v4097_v47 = vld [vmem:[#allocation17] sm:$0xff]   ;;  %v7171_v18 = vld [vmem:[#allocation91_spill] sm:$0xff] }
 0x9a7   :  { %v3290_v26 = vpop.f32.mrf.mxu0  ;;  %v3331_v36 = vpop.f32.mrf.mxu1  ;;  %v7170_v59 = vld [vmem:[#allocation90_spill] sm:$0xff] }
 0x9a8   :  { %4236 = vtanh.f32 %v3342_v11  ;;  %v3559_v8 = vpack.c.bf16 %v7171_v18, %v7170_v59 }
 0x9a9   :  { %4238 = vtanh.f32 %v3335_v19  ;;  %v7172_v19 = vld [vmem:[#allocation78_spill] sm:$0xff] }
 0x9aa   :  { %4240 = vtanh.f32 %v3347_v50  ;;  %v3560_v11 = vpack.c.bf16 %v6271_v62, %v7172_v19 }
 0x9b3   :  { %v4235_v58 = vpop.eup %4234 }
 0x9b4   :  { %v3340_v40 = vadd.f32 1.0, %v4235_v58 }
 0x9b5   :  { %v4237_v56 = vpop.eup %4236 }
 0x9b6   :  { %v3341_v2 = vmul.f32 0.5, %v3340_v40  ;;  %v3344_v12 = vadd.f32 1.0, %v4237_v56  ;;  %v4239_v43 = vpop.eup %4238 }
 0x9b7   :  { %v4241_v14 = vpop.eup %4240 }
 0x9b8   :  { %v3345_v51 = vmul.f32 0.5, %v3344_v12  ;;  %v3352_v27 = vmul.f32 %v4239_v43, %v3341_v2  ;;  %v3349_v28 = vadd.f32 1.0, %v4241_v14 }
 0x9ba   :  { %v3351_v20 = vmul.f32 %v3345_v51, %v6176_v9  ;;  %v3350_v53 = vmul.f32 0.5, %v3349_v28  ;;  %v7156_v9 = vld [vmem:[#allocation48_spill] sm:$0xff] }
 0x9bc   :  { %v3353_v23 = vadd.f32 %v3352_v27, %v3351_v20 }
 0x9be   :  { %4242 = vtanh.f32 %v3353_v23 }
 0x9bf   :  { %4244 = vtanh.f32 %v3227_v5 }
 0x9c0   :  { %4246 = vtanh.f32 %v6357_v25 }
 0x9cb   :  { %v4243_v31 = vpop.eup %4242 }
 0x9cc   :  { %v3355_v45 = vmul.f32 %v4243_v31, %v3350_v53 }
 0x9ce   :  { %v3358_v39 = vpack.c.bf16 %v3355_v45, %v3355_v45 }
 0x9d0   :  { %3392 = vmatmul.mubr.bf16.vlgmr.msra.gmra.mxu0 %v3358_v39  ;;  %3433 = vmatmul.mubr.bf16.vlgmr.msra.gmra.mxu1 %v3358_v39 }
 0x9d1   :  { %3442 = vmatpush1.bf16.msra.mxu0 %v6184_v24  ;;  %3483 = vmatpush1.bf16.msra.mxu1 %v6187_v0  ;;  %v7157_v24 = vld [vmem:[#allocation49_spill] sm:$0xff]  ;;  %v7158_v0 = vld [vmem:[#allocation50_spill] sm:$0xff] }
 0x9d2   :  { %3443 = vmatprep.subr.bf16.mxu0 %v6190_v21  ;;  %3484 = vmatprep.subr.bf16.mxu1 %v6193_v17  ;;  %v4245_v21 = vpop.eup %4244  ;;  %v7159_v17 = vld [vmem:[#allocation51_spill] sm:$0xff] }
 0x9d3   :  { %3473 = vmatprep.mubr.bf16.mxu0 %v6779_v44  ;;  %3514 = vmatprep.mubr.bf16.mxu1 %v6779_v44  ;;  %v7155_v44 = vld [vmem:[#allocation47_spill] sm:$0xff]  ;;  %v4247_v61 = vpop.eup %4246 }
 0x9d5   :  { %3444 = vmatpush1.bf16.msra.mxu0 %v6198_v52  ;;  %3485 = vmatpush1.bf16.msra.mxu1 %v6201_v4  ;;  %v7160_v52 = vld [vmem:[#allocation52_spill] sm:$0xff]  ;;  %v7161_v4 = vld [vmem:[#allocation53_spill] sm:$0xff] }
 0x9d6   :  { %3445 = vmatprep.subr.bf16.mxu0 %v6204_v60  ;;  %3486 = vmatprep.subr.bf16.mxu1 %v6207_v41  ;;  %v7162_v60 = vld [vmem:[#allocation54_spill] sm:$0xff]  ;;  %v3229_v41 = vadd.f32 1.0, %v4245_v21 }
 0x9d8   :  { %v3230_v48 = vmul.f32 0.5, %v3229_v41 }
 0x9d9   :  { %3446 = vmatpush1.bf16.msra.mxu0 %v6210_v29  ;;  %3487 = vmatpush1.bf16.msra.mxu1 %v6213_v33  ;;  %v7163_v29 = vld [vmem:[#allocation55_spill] sm:$0xff]  ;;  %v7164_v33 = vld [vmem:[#allocation66_spill] sm:$0xff] }
 0x9da   :  { %3447 = vmatprep.subr.bf16.mxu0 %v6217_v15  ;;  %3488 = vmatprep.subr.bf16.mxu1 %v6220_v42  ;;  %v7165_v15 = vld [vmem:[#allocation65_spill] sm:$0xff]  ;;  %v7166_v42 = vld [vmem:[#allocation79_spill] sm:$0xff]  ;;  %v6397_v32 = vmul.f32 %v4247_v61, %v3230_v48 }
 0x9dc   :  { %v3241_v10 = vpack.c.bf16 %v6397_v32, %v6397_v32 }
 0x9dd   :  { %3448 = vmatpush1.bf16.msra.mxu0 %v7155_v44  ;;  %3489 = vmatpush1.bf16.msra.mxu1 %v7156_v9 }
 0x9de   :  { %3449 = vmatprep.subr.bf16.mxu0 %v7157_v24  ;;  %3490 = vmatprep.subr.bf16.mxu1 %v7158_v0 }
 0x9e1   :  { %3450 = vmatpush1.bf16.msra.mxu0 %v7159_v17  ;;  %3491 = vmatpush1.bf16.msra.mxu1 %v7160_v52 }
 0x9e2   :  { %3451 = vmatprep.subr.bf16.mxu0 %v7161_v4  ;;  %3492 = vmatprep.subr.bf16.mxu1 %v7162_v60 }
 0x9e5   :  { %3452 = vmatpush1.bf16.msra.mxu0 %v7163_v29  ;;  %3493 = vmatpush1.bf16.msra.mxu1 %v7164_v33 }
 0x9e6   :  { %3453 = vmatprep.subr.bf16.mxu0 %v7165_v15  ;;  %3494 = vmatprep.subr.bf16.mxu1 %v7166_v42 }
 0x9e9   :  { %3454 = vmatpush1.bf16.msra.mxu0 %v6259_v54  ;;  %3495 = vmatpush1.bf16.msra.mxu1 %v7167_v38  ;;  %v7169_v54 = vld [vmem:[#allocation25_spill] sm:$0xff] }
 0x9ea   :  { %3455 = vmatprep.subr.bf16.mxu0 %v6265_v55  ;;  %3496 = vmatprep.subr.bf16.mxu1 %v6268_v30  ;;  %v3558_v16 = vpack.c.bf16 %v7169_v54, %v7168_v37  ;;  %v4092_v55 = vld [vmem:[#allocation17 + $0x28] sm:$0xff]   ;;  %v4093_v30 = vld [vmem:[#allocation17 + $0x20] sm:$0xff]  }
 0x9ed   :  { %3456 = vmatpush1.bf16.msra.mxu0 %v6273_v63  ;;  %3497 = vmatpush1.bf16.msra.mxu1 %v6276_v13  ;;  %v4094_v63 = vld [vmem:[#allocation17 + $0x18] sm:$0xff]   ;;  %v4095_v13 = vld [vmem:[#allocation17 + $0x10] sm:$0xff]  }
 0x9ee   :  { %3878 = vmatprep.subr.bf16.mxu0 %v4090_v57 }
 0x9f0   :  { %3474 = vmatmul.mubr.bf16.vlgmr.msra.gmra.mxu0 %v3241_v10  ;;  %3515 = vmatmul.mubr.bf16.vlgmr.msra.gmra.mxu1 %v3241_v10 }
 0x9f1   :  { %3879 = vmatpush3.bf16.msra.mxu0 %v4090_v57  ;;  %3894 = vmatprep.mubr.bf16.mxu0 %v3558_v16 }
 0x9f2   :  { %3880 = vmatprep.subr.bf16.mxu0 %v4091_v1 }
 0x9f5   :  { %3881 = vmatpush3.bf16.msra.mxu0 %v4091_v1 }
 0x9f6   :  { %3882 = vmatprep.subr.bf16.mxu0 %v4092_v55 }
 0x9f9   :  { %3883 = vmatpush3.bf16.msra.mxu0 %v4092_v55 }
 0x9fa   :  { %3884 = vmatprep.subr.bf16.mxu0 %v4093_v30 }
 0x9fd   :  { %3885 = vmatpush3.bf16.msra.mxu0 %v4093_v30 }
 0x9fe   :  { %3886 = vmatprep.subr.bf16.mxu0 %v4094_v63 }
 0xa01   :  { %3887 = vmatpush3.bf16.msra.mxu0 %v4094_v63 }
 0xa02   :  { %3888 = vmatprep.subr.bf16.mxu0 %v4095_v13 }
 0xa05   :  { %3889 = vmatpush3.bf16.msra.mxu0 %v4095_v13 }
 0xa06   :  { %3890 = vmatprep.subr.bf16.mxu0 %v4096_v49 }
 0xa09   :  { %3891 = vmatpush3.bf16.msra.mxu0 %v4096_v49 }
 0xa0a   :  { %3892 = vmatprep.subr.bf16.mxu0 %v4097_v47 }
 0xa0d   :  { %3893 = vmatpush3.bf16.msra.mxu0 %v4097_v47 }
 0xa10   :  { %3895 = vmatmul.mubr.bf16.vlgmr.msra.gmra.mxu0 %v3559_v8 }
 0xa11   :  { %3898 = vmatprep.mubr.bf16.mxu0 %v3560_v11 }
 0xa90   :  { %v3393_v26 = vpop.f32.mrf.mxu0  ;;  %v3434_v36 = vpop.f32.mrf.mxu1 }
 0xa92   :  { %v3395_v7 = vpop.f32.mrf.mxu0  ;;  %v3436_v22 = vpop.f32.mrf.mxu1 }
 0xa94   :  { %v3397_v50 = vpop.f32.mrf.mxu0  ;;  %v3438_v58 = vpop.f32.mrf.mxu1 }
 0xa96   :  { %v3398_v40 = vpop.f32.mrf.mxu0  ;;  %v3439_v56 = vpop.f32.mrf.mxu1 }
 0xab0   :  { %v3475_v2 = vpop.f32.mrf.mxu0  ;;  %v3516_v12 = vpop.f32.mrf.mxu1 }
 0xab1   :  { %v3476_v43 = vadd.f32 %v3475_v2, %v3393_v26  ;;  %v3517_v53 = vadd.f32 %v3516_v12, %v3434_v36 }
 0xab2   :  { %v3477_v51 = vpop.f32.mrf.mxu0  ;;  %v3518_v27 = vpop.f32.mrf.mxu1 }
 0xab3   :  { %v3523_v20 = vadd.f32 %v3476_v43, %v6885_v3  ;;  %v3478_v23 = vadd.f32 %v3477_v51, %v3395_v7  ;;  %v3525_v5 = vadd.f32 %v3517_v53, %v7149_v6  ;;  %v3519_v44 = vadd.f32 %v3518_v27, %v3436_v22  ;;  %v3857_v6 = vld [vmem:[%s6429_s8] ss:$0 sm:$0xff]  ;;  %s4613_s8 = smov [#allocation19]  }
 0xab4   :  { %v3479_v14 = vpop.f32.mrf.mxu0  ;;  %v3520_v62 = vpop.f32.mrf.mxu1  ;;  %s3711_s20 = sshll.u32 %s4613_s8, 4  ;;  %s3712_s20 = int_to_ptr.vmem [resolvable:$true] %s3711_s20 }
 0xab5   :  { %v3528_v28 = vmul.f32 0.5, %v3523_v20  ;;  %v3524_v31 = vadd.f32 %v3478_v23, %v7100_v46  ;;  %v3526_v9 = vadd.f32 %v3519_v44, %v5211_v35  ;;  %s4570_s21 = scalar_lea.vmem %s3712_s20, 1024  ;;  %p4575_p3 = scmp.lt.s32.totalorder %s3712_s20, %s3712_s20 }
 0xab6   :  { %v3480_v34 = vpop.f32.mrf.mxu0  ;;  %v3521_v45 = vpop.f32.mrf.mxu1  ;;  %p4571_p2 = scmp.ne.s32.totalorder %s3712_s20, %s4570_s21  ;;  %p4576_p4 = scmp.lt.s32.totalorder %s4570_s21, %s4570_s21 }
 0xab7   :  { %4248 = vtanh.f32 %v3528_v28  ;;  %v3532_v39 = vmul.f32 0.5, %v3524_v31  ;;  %v3537_v24 = vmul.f32 0.5, %v3526_v9 }
 0xab8   :  { %p4577_p5 = por %p4576_p4, %p4575_p3 }
 0xab9   :  { %4250 = vtanh.f32 %v3532_v39 }
 0xaba   :  { %4252 = vtanh.f32 %v3525_v5  ;;  %p4578_p6 = pnand %p4577_p5, %p4571_p2 }
 0xabb   :  { %4254 = vtanh.f32 %v3537_v24 }
 0xac4   :  { %v4249_v3 = vpop.eup %4248 }
 0xac5   :  { %v3530_v0 = vadd.f32 1.0, %v4249_v3 }
 0xac6   :  { %v4251_v21 = vpop.eup %4250 }
 0xac7   :  { %v3531_v17 = vmul.f32 0.5, %v3530_v0  ;;  %v3534_v52 = vadd.f32 1.0, %v4251_v21  ;;  %v4253_v46 = vpop.eup %4252 }
 0xac8   :  { %v4255_v61 = vpop.eup %4254 }
 0xac9   :  { %v3535_v4 = vmul.f32 0.5, %v3534_v52  ;;  %v3542_v41 = vmul.f32 %v4253_v46, %v3531_v17  ;;  %v3539_v10 = vadd.f32 1.0, %v4255_v61 }
 0xacb   :  { %v3541_v60 = vmul.f32 %v3535_v4, %v6357_v25  ;;  %v3540_v1 = vmul.f32 0.5, %v3539_v10 }
 0xacd   :  { %v3543_v29 = vadd.f32 %v3542_v41, %v3541_v60 }
 0xacf   :  { %4256 = vtanh.f32 %v3543_v29 }
 0xad0   :  { %v3896_v33 = vpop.f32.mrf.mxu0 }
 0xad1   :  { %v3676_v35 = vadd.f32 %v3896_v33, %v3857_v6 }
 0xad2   :  { %v3667_v15 = vpop.f32.mrf.mxu0 }
 0xad3   :  { %3700 = vst [vmem:[#allocation19 + $0x10] sm:$0xff] %v3676_v35  ;;  %v3668_v42 = vadd.f32 %v3857_v6, %v3667_v15 }
 0xad4   :  { %v3897_v48 = vpop.f32.mrf.mxu0 }
 0xad5   :  { %3698 = vst [vmem:[#allocation19] sm:$0xff] %v3668_v42  ;;  %v3679_v38 = vadd.f32 %v3897_v48, %v3857_v6 }
 0xad6   :  { %v3670_v57 = vpop.f32.mrf.mxu0 }
 0xad7   :  { %3701 = vst [vmem:[#allocation19 + $0x18] sm:$0xff] %v3679_v38  ;;  %v3671_v25 = vadd.f32 %v3857_v6, %v3670_v57 }
 0xad9   :  { %3699 = vst [vmem:[#allocation19 + $0x8] sm:$0xff] %v3671_v25 }
 0xadc   :  { %v4257_v37 = vpop.eup %4256 }
 0xadd   :  { %v3545_v54 = vmul.f32 %v4257_v37, %v3540_v1 }
 0xadf   :  { %v3561_v16 = vpack.c.bf16 %v3545_v54, %v6397_v32 }
 0xae1   :  { %3899 = vmatmul.mubr.bf16.gmra.mxu0 %v3561_v16 }
 0xba1   :  { %v3900_v55 = vpop.f32.mrf.mxu0 }
 0xba2   :  { %v3692_v30 = vadd.f32 %v3900_v55, %v3857_v6 }
 0xba3   :  { %v3683_v63 = vpop.f32.mrf.mxu0 }
 0xba4   :  { %3704 = vst [vmem:[#allocation19 + $0x30] sm:$0xff] %v3692_v30  ;;  %v3684_v13 = vadd.f32 %v3857_v6, %v3683_v63 }
 0xba5   :  { %v3901_v49 = vpop.f32.mrf.mxu0 }
 0xba6   :  { %3702 = vst [vmem:[#allocation19 + $0x20] sm:$0xff] %v3684_v13  ;;  %v3695_v47 = vadd.f32 %v3901_v49, %v3857_v6 }
 0xba7   :  { %v3686_v59 = vpop.f32.mrf.mxu0 }
 0xba8   :  { %3705 = vst [vmem:[#allocation19 + $0x38] sm:$0xff] %v3695_v47  ;;  %v3687_v18 = vadd.f32 %v3857_v6, %v3686_v59 }
 0xbaa   :  { %3703 = vst [vmem:[#allocation19 + $0x28] sm:$0xff] %v3687_v18 }
 0xbab   :  { %4581 = shalt.err (!%p4578_p6)
}
 0xbac   :  { %s4614_s22 = smov 128   ;;  %s4615_s1 = smov 8  }
 0xbad   :  { %3717 = dma.vmem_to_hbm [thread:$0]  %s3712_s20, 1024, %s6430_s9, [#allocation10], %s4614_s22, %s4614_s22, %s4615_s1  }
 0xbae   :  { %4598 = dma.done.wait [#allocation10], 1024  }
 0xbaf   :  { %4599 = vsyncadd [#allocation10], 4294966272 }
 0xbb0   :  { %3721 = vsyncpa [#allocation9], 1 }
 0xbb1   :  { %3722 = vsyncpa [#allocation12], 1 }
 0xbb2   :  { %3723 = vsyncpa [#allocation15], 1 }
 0xbb3   :  { %3724 = vsyncpa [#allocation18], 1 }
 0xbb4   :  { %3725 = vsyncpa [#allocation10], 1 }

</bundles_post_ra>
